<compile_context>
chip_gen: v7x
topology: tpu7x:2x2x1
jax: 0.10.0
libtpu: 0.0.40
codegen_flags: <defaults>
</compile_context>

<pallas_src>
import numpy as np
import jax
import jax.numpy as jnp
from jax import lax
from jax.experimental import pallas as pl
from jax.experimental.pallas import tpu as pltpu


# ------------------------------ small helpers -------------------------------
def _round_up(x, m):
    return ((x + m - 1) // m) * m


def _interp_matrix(n_out, n_in):
    """Bilinear interpolation matrix, align_corners=True (PyTorch semantics)."""
    A = np.zeros((n_out, n_in), dtype=np.float32)
    if n_out == 1:
        A[0, 0] = 1.0
        return A
    scale = (n_in - 1) / (n_out - 1)
    for i in range(n_out):
        s = i * scale
        p0 = min(int(np.floor(s)), n_in - 1)
        p1 = min(p0 + 1, n_in - 1)
        f = s - p0
        A[i, p0] += 1.0 - f
        A[i, p1] += f
    return A


def _fold_bn(gamma, beta, mean, var, eps=1e-5):
    scale = gamma / jnp.sqrt(var + eps)
    shift = beta - mean * scale
    return scale, shift


# ------------------------------- Pallas wrapper ------------------------------
def gau_forward_pallas(fms_high, fms_low, params, compute_dtype=jnp.bfloat16,
                       dense_upsample_limit_bytes=2 * 1024 * 1024):
    """fms_high: (B, C_hi, H, W) NCHW; fms_low: (B, C_lo, HL, WL) NCHW."""
    B, C_hi, H, W = fms_high.shape
    _, C_lo, HL, WL = fms_low.shape
    Chi = _round_up(C_hi, 128)
    Clo = _round_up(C_lo, 128)
    HW, HLWL = H * W, HL * WL
    # Sublane-align the padded widths (halo of 1 each side, then round to 8);
    # extra zero columns on the right are never read by the dx<3 windows.
    Wp_hi = _round_up(W + 2, 8)
    Wp_lo = _round_up(WL + 2, 8)

    # Batch blocking: process a few images per grid step so conv matmuls have
    # M = bb*H*W instead of H*W (weights are shared across the batch).
    bb = 1
    for cand in (4, 3, 2):
        if B % cand == 0:
            bb = cand
            break
    nb = B // bb

    # -- glue: NCHW -> NHWC, +1 spatial halo (for in-kernel 3x3 convs) padded
    #    to an 8-aligned width, channels zero-padded to 128-multiple, bf16.
    def prep(x, c_pad, w_pad):
        x = jnp.transpose(x, (0, 2, 3, 1))                       # NCHW -> NHWC
        x = jnp.pad(x, ((0, 0), (1, 1), (1, w_pad - x.shape[2] - 1),
                        (0, c_pad - x.shape[3])))
        return x.astype(compute_dtype)

    hi_pad = prep(fms_high, Chi, Wp_hi)                  # (B, H+2,  Wp_hi, Chi)
    lo_pad = prep(fms_low, Clo, Wp_lo)                   # (B, HL+2, Wp_lo, Clo)

    # -- fold BN scales into the conv weights (wrapper-side, f32)
    sc_h, sf_h = _fold_bn(*params['bn_high'])
    sc_l, sf_l = _fold_bn(*params['bn_low'])
    sc_u, sf_u = _fold_bn(*params['bn_upsample'])

    w1 = params['w1'][:, :, 0, 0].T * sc_h[None, :]                 # (C_hi, C_lo)
    w3l = jnp.transpose(params['w3l'], (2, 3, 1, 0)).reshape(9, C_lo, C_lo) * sc_l
    w3h = jnp.transpose(params['w3h'], (2, 3, 1, 0)).reshape(9, C_hi, C_lo) * sc_u

    w1_p = jnp.pad(w1, ((0, Chi - C_hi), (0, Clo - C_lo))).astype(jnp.float32)
    # Fused-K layout: (tap, Cin, Cout) -> (9*Cin_pad, Cout_pad).  Row order
    # must match the kernel's im2col concat order (taps outer, channels inner).
    w3l_p = jnp.pad(w3l, ((0, 0), (0, Clo - C_lo), (0, Clo - C_lo))
                    ).reshape(9 * Clo, Clo).astype(compute_dtype)
    w3h_p = jnp.pad(w3h, ((0, 0), (0, Chi - C_hi), (0, Clo - C_lo))
                    ).reshape(9 * Chi, Clo).astype(compute_dtype)

    shifts = jnp.pad(jnp.stack([sf_h, sf_l, sf_u], axis=0),
                     ((0, 0), (0, Clo - C_lo))).astype(jnp.float32)  # (3, Clo)

    # -- bilinear (align_corners=True).  Small maps: one dense matrix
    #    U = kron(Ah, Aw) -> single MXU dot.  Large maps: separable, with both
    #    the W- and the H-interp expressed as matmuls (no row gather).
    ah = _interp_matrix(HL, H)
    aw = _interp_matrix(WL, W)
    use_dense = (HLWL * HW * 4) <= dense_upsample_limit_bytes
    if use_dense:
        up_ops = (jnp.asarray(np.kron(ah, aw), dtype=jnp.float32),)   # (HLWL, HW)
        up_specs = [pl.BlockSpec((HLWL, HW), lambda b: (0, 0))]
    else:
        up_ops = (jnp.asarray(aw, dtype=jnp.float32),                 # (WL, W)
                  jnp.asarray(ah, dtype=jnp.float32))                 # (HL, H)
        up_specs = [pl.BlockSpec((WL, W), lambda b: (0, 0)),
                    pl.BlockSpec((HL, H), lambda b: (0, 0))]

    # --------------------------------- kernel --------------------------------
    def kernel(hi_ref, lo_ref, w3h_ref, w3l_ref, w1_ref, shift_ref, *rest):
        # hi_ref : (bb, H+2,  Wp_hi, Chi) bf16   padded high features
        # lo_ref : (bb, HL+2, Wp_lo, Clo) bf16   padded low features
        # w3h_ref: (9*Chi, Clo) bf16             3x3 high conv (BN scale folded)
        # w3l_ref: (9*Clo, Clo) bf16             3x3 low conv (BN scale folded)
        # w1_ref : (Chi, Clo) f32                1x1 conv (BN scale folded)
        # shift_ref: (3, Clo) f32                rows = (att, low, high) BN shifts
        # rest   : upsample operand(s) + out_ref
        if use_dense:
            u_ref, out_ref = rest
        else:
            aw_ref, ah_ref, out_ref = rest
        f32 = jnp.float32

        hi = hi_ref[...]                                  # (bb, H+2,  Wp_hi, Chi)
        lo = lo_ref[...]                                  # (bb, HL+2, Wp_lo, Clo)

        def im2col(x, hh, ww):
            # 9 shifted windows concatenated along the lane (channel) axis,
            # then one leading-dims collapse -> (bb*hh*ww, 9*Cin).
            taps = [x[:, dy:dy + hh, dx:dx + ww, :]
                    for dy in range(3) for dx in range(3)]
            return jnp.concatenate(taps, axis=-1).reshape(
                bb * hh * ww, 9 * x.shape[-1])

        # ---- high branch: fused-K 3x3 conv (+ folded BN shift) -> ReLU
        hif = jnp.dot(im2col(hi, H, W), w3h_ref[...],
                      preferred_element_type=f32)            # (bb*H*W, Clo)
        hif = jnp.maximum(hif + shift_ref[2:3, :], 0.0)

        # ---- channel attention: per-image global avg+max pool -> 1x1 -> ReLU
        gps = []
        for b in range(bb):
            hc = hi[b, 1:1 + H, 1:1 + W, :].astype(f32).reshape(H * W, Chi)
            gps.append(jnp.mean(hc, axis=0, keepdims=True) +
                       jnp.max(hc, axis=0, keepdims=True))
        gp = jnp.concatenate(gps, axis=0)                    # (bb, Chi)
        att = jnp.dot(gp, w1_ref[...], preferred_element_type=f32)
        att = jnp.maximum(att + shift_ref[0:1, :], 0.0)      # (bb, Clo)

        # ---- low branch: fused-K 3x3 conv (+ folded BN shift), * attention
        low = jnp.dot(im2col(lo, HL, WL), w3l_ref[...],
                      preferred_element_type=f32)            # (bb*HL*WL, Clo)
        low = (low + shift_ref[1:2, :]).reshape(bb, HLWL, Clo)
        fms_att = low * att[:, None, :]

        # ---- bilinear upsample (align_corners=True)
        hif_b = hif.reshape(bb, HW, Clo)
        if use_dense:
            u_b = jnp.broadcast_to(u_ref[...][None], (bb, HLWL, HW))
            up = lax.dot_general(u_b, hif_b,
                                 dimension_numbers=(((2,), (1,)), ((0,), (0,))),
                                 preferred_element_type=f32)  # (bb, HLWL, Clo)
        else:
            # W-interp: batched (WL, W) @ (W, Clo) over the bb*H image rows.
            t = hif_b.reshape(bb * H, W, Clo)
            aw_b = jnp.broadcast_to(aw_ref[...][None], (bb * H, WL, W))
            t1 = lax.dot_general(aw_b, t,
                                 dimension_numbers=(((2,), (1,)), ((0,), (0,))),
                                 preferred_element_type=f32)  # (bb*H, WL, Clo)
            # H-interp as one matmul per image: (HL, H) @ (H, WL*Clo).
            t1 = t1.reshape(bb, H, WL * Clo)
            ah_b = jnp.broadcast_to(ah_ref[...][None], (bb, HL, H))
            up = lax.dot_general(ah_b, t1,
                                 dimension_numbers=(((2,), (1,)), ((0,), (0,))),
                                 preferred_element_type=f32)
            up = up.reshape(bb, HLWL, Clo)

        out_ref[...] = jnp.maximum(up + fms_att, 0.0).astype(out_ref.dtype)

    out = pl.pallas_call(
        kernel,
        out_shape=jax.ShapeDtypeStruct((B, HLWL, Clo), jnp.float32),
        grid=(nb,),
        in_specs=[
            pl.BlockSpec((bb, H + 2, Wp_hi, Chi), lambda b: (b, 0, 0, 0)),
            pl.BlockSpec((bb, HL + 2, Wp_lo, Clo), lambda b: (b, 0, 0, 0)),
            pl.BlockSpec((9 * Chi, Clo), lambda b: (0, 0)),
            pl.BlockSpec((9 * Clo, Clo), lambda b: (0, 0)),
            pl.BlockSpec((Chi, Clo), lambda b: (0, 0)),
            pl.BlockSpec((3, Clo), lambda b: (0, 0)),
        ] + up_specs,
        out_specs=pl.BlockSpec((bb, HLWL, Clo), lambda b: (b, 0, 0)),
        compiler_params=pltpu.CompilerParams(
            dimension_semantics=("parallel",),
            vmem_limit_bytes=32 * 1024 * 1024),
    )(hi_pad, lo_pad, w3h_p, w3l_p, w1_p, shifts, *up_ops)

    # (B, HL*WL, Clo) -> drop channel padding -> NCHW (glue for the reference)
    out = out[:, :, :C_lo].reshape(B, HL, WL, C_lo)
    return jnp.transpose(out, (0, 3, 1, 2))


# ------------------------- pure-JAX reference (check) -----------------------
def gau_forward_ref(fms_high, fms_low, params):
    dn = ('NCHW', 'OIHW', 'NCHW')
    relu = lambda x: jnp.maximum(x, 0.0)

    def bn(x, p):
        gamma, beta, mean, var = p
        s = gamma / jnp.sqrt(var + 1e-5)
        return x * s[None, :, None, None] + (beta - mean * s)[None, :, None, None]

    B, C_hi, H, W = fms_high.shape
    _, C_lo, HL, WL = fms_low.shape

    gp = (jnp.mean(fms_high, axis=(2, 3), keepdims=True) +
          jnp.max(fms_high, axis=(2, 3), keepdims=True))
    gp = lax.conv_general_dilated(gp, params['w1'], (1, 1), 'VALID',
                                  dimension_numbers=dn)
    gp = relu(bn(gp, params['bn_high']))

    low = lax.conv_general_dilated(fms_low, params['w3l'], (1, 1),
                                   ((1, 1), (1, 1)), dimension_numbers=dn)
    low = bn(low, params['bn_low'])
    fms_att = low * gp

    hi = lax.conv_general_dilated(fms_high, params['w3h'], (1, 1),
                                  ((1, 1), (1, 1)), dimension_numbers=dn)
    hi = relu(bn(hi, params['bn_upsample']))

    Ah = jnp.asarray(_interp_matrix(HL, H))
    Aw = jnp.asarray(_interp_matrix(WL, W))
    up = jnp.einsum('ip,bcpq->bciq', Ah, hi)
    up = jnp.einsum('jq,bciq->bcij', Aw, up)
    return relu(up + fms_att)


# --------------------------------- main -------------------------------------
if __name__ == "__main__":
    B, C_hi, C_lo = 2, 8, 4
    H, W = 8, 8          # high-level (coarse) feature map
    HL, WL = 16, 16      # low-level (fine) feature map

    key = jax.random.PRNGKey(0)
    ks = jax.random.split(key, 16)

    params = {
        # PyTorch OIHW conv weights (bias=False everywhere)
        'w1':  0.1 * jax.random.normal(ks[0], (C_lo, C_hi, 1, 1), jnp.float32),
        'w3l': 0.1 * jax.random.normal(ks[1], (C_lo, C_lo, 3, 3), jnp.float32),
        'w3h': 0.1 * jax.random.normal(ks[2], (C_lo, C_hi, 3, 3), jnp.float32),
        # BatchNorm2d params (gamma, beta, running_mean, running_var), eval mode
        'bn_high': (jax.random.uniform(ks[3], (C_lo,), minval=0.5, maxval=1.5),
                    0.1 * jax.random.normal(ks[4], (C_lo,)),
                    0.1 * jax.random.normal(ks[5], (C_lo,)),
                    jax.random.uniform(ks[6], (C_lo,), minval=0.5, maxval=1.5)),
        'bn_low': (jax.random.uniform(ks[7], (C_lo,), minval=0.5, maxval=1.5),
                   0.1 * jax.random.normal(ks[8], (C_lo,)),
                   0.1 * jax.random.normal(ks[9], (C_lo,)),
                   jax.random.uniform(ks[10], (C_lo,), minval=0.5, maxval=1.5)),
        'bn_upsample': (jax.random.uniform(ks[11], (C_lo,), minval=0.5, maxval=1.5),
                        0.1 * jax.random.normal(ks[12], (C_lo,)),
                        0.1 * jax.random.normal(ks[13], (C_lo,)),
                        jax.random.uniform(ks[14], (C_lo,), minval=0.5, maxval=1.5)),
    }

    kx = jax.random.split(ks[15], 2)
    fms_high = jax.random.normal(kx[0], (B, C_hi, H, W), jnp.float32)
    fms_low = jax.random.normal(kx[1], (B, C_lo, HL, WL), jnp.float32)

    # Pre-round activations to bf16 precision so the f32 reference and the
    # bf16-operand kernel see identical input values; remaining differences
    # come from bf16 rounding of the BN-folded conv weights only.
    fms_high = fms_high.astype(jnp.bfloat16).astype(jnp.float32)
    fms_low = fms_low.astype(jnp.bfloat16).astype(jnp.float32)

    out = gau_forward_pallas(fms_high, fms_low, params)
    out = jax.block_until_ready(out)

    ref = jax.block_until_ready(gau_forward_ref(fms_high, fms_low, params))
    # Tolerance accounts for bf16 conv-weight quantization inside the kernel.
    np.testing.assert_allclose(np.asarray(out), np.asarray(ref),
                               rtol=2e-2, atol=2e-2)

    print("KERNEL_OK")
</pallas_src>

<mosaic_0001>
module attributes {stable_mosaic.version = 11 : i64} {
  func.func @kernel(%arg0: i32, %arg1: memref<2x10x16x128xbf16, #tpu.memory_space<vmem>>, %arg2: memref<2x18x24x128xbf16, #tpu.memory_space<vmem>>, %arg3: memref<1152x128xbf16, #tpu.memory_space<vmem>>, %arg4: memref<1152x128xbf16, #tpu.memory_space<vmem>>, %arg5: memref<128x128xf32, #tpu.memory_space<vmem>>, %arg6: memref<3x128xf32, #tpu.memory_space<vmem>>, %arg7: memref<256x64xf32, #tpu.memory_space<vmem>>, %arg8: memref<2x256x128xf32, #tpu.memory_space<vmem>>) attributes {dimension_semantics = [#tpu.dimension_semantics<parallel>], iteration_bounds = array<i64: 1>, scalar_prefetch = 0 : i64, scratch_operands = 0 : i64, tpu.core_type = #tpu.core_type<tc>, window_params = [{transform_indices = @transform_0, window_bounds = array<i64: 2, 10, 16, 128>}, {transform_indices = @transform_1, window_bounds = array<i64: 2, 18, 24, 128>}, {pipeline_mode = #tpu.pipeline_mode<synchronous>, transform_indices = @transform_2, window_bounds = array<i64: 1152, 128>}, {pipeline_mode = #tpu.pipeline_mode<synchronous>, transform_indices = @transform_3, window_bounds = array<i64: 1152, 128>}, {pipeline_mode = #tpu.pipeline_mode<synchronous>, transform_indices = @transform_4, window_bounds = array<i64: 128, 128>}, {pipeline_mode = #tpu.pipeline_mode<synchronous>, transform_indices = @transform_5, window_bounds = array<i64: 3, 128>}, {pipeline_mode = #tpu.pipeline_mode<synchronous>, transform_indices = @transform_6, window_bounds = array<i64: 256, 64>}, {transform_indices = @transform_7, window_bounds = array<i64: 2, 256, 128>}]} {
    %c0 = arith.constant 0 : index
    %c0_0 = arith.constant 0 : index
    %c0_1 = arith.constant 0 : index
    %c0_2 = arith.constant 0 : index
    %0 = vector.load %arg1[%c0, %c0_0, %c0_1, %c0_2] : memref<2x10x16x128xbf16, #tpu.memory_space<vmem>>, vector<2x10x16x128xbf16>
    %c0_3 = arith.constant 0 : index
    %c0_4 = arith.constant 0 : index
    %c0_5 = arith.constant 0 : index
    %c0_6 = arith.constant 0 : index
    %1 = vector.load %arg2[%c0_3, %c0_4, %c0_5, %c0_6] : memref<2x18x24x128xbf16, #tpu.memory_space<vmem>>, vector<2x18x24x128xbf16>
    %2 = vector.extract_strided_slice %0 {offsets = [0, 0, 0, 0], sizes = [2, 8, 8, 128], strides = [1, 1, 1, 1]} : vector<2x10x16x128xbf16> to vector<2x8x8x128xbf16>
    %3 = vector.extract_strided_slice %0 {offsets = [0, 0, 1, 0], sizes = [2, 8, 8, 128], strides = [1, 1, 1, 1]} : vector<2x10x16x128xbf16> to vector<2x8x8x128xbf16>
    %4 = vector.extract_strided_slice %0 {offsets = [0, 0, 2, 0], sizes = [2, 8, 8, 128], strides = [1, 1, 1, 1]} : vector<2x10x16x128xbf16> to vector<2x8x8x128xbf16>
    %5 = vector.extract_strided_slice %0 {offsets = [0, 1, 0, 0], sizes = [2, 8, 8, 128], strides = [1, 1, 1, 1]} : vector<2x10x16x128xbf16> to vector<2x8x8x128xbf16>
    %6 = vector.extract_strided_slice %0 {offsets = [0, 1, 1, 0], sizes = [2, 8, 8, 128], strides = [1, 1, 1, 1]} : vector<2x10x16x128xbf16> to vector<2x8x8x128xbf16>
    %7 = vector.extract_strided_slice %0 {offsets = [0, 1, 2, 0], sizes = [2, 8, 8, 128], strides = [1, 1, 1, 1]} : vector<2x10x16x128xbf16> to vector<2x8x8x128xbf16>
    %8 = vector.extract_strided_slice %0 {offsets = [0, 2, 0, 0], sizes = [2, 8, 8, 128], strides = [1, 1, 1, 1]} : vector<2x10x16x128xbf16> to vector<2x8x8x128xbf16>
    %9 = vector.extract_strided_slice %0 {offsets = [0, 2, 1, 0], sizes = [2, 8, 8, 128], strides = [1, 1, 1, 1]} : vector<2x10x16x128xbf16> to vector<2x8x8x128xbf16>
    %10 = vector.extract_strided_slice %0 {offsets = [0, 2, 2, 0], sizes = [2, 8, 8, 128], strides = [1, 1, 1, 1]} : vector<2x10x16x128xbf16> to vector<2x8x8x128xbf16>
    %11 = tpu.concatenate %2, %3, %4, %5, %6, %7, %8, %9, %10 in 3 : vector<2x8x8x128xbf16>, vector<2x8x8x128xbf16>, vector<2x8x8x128xbf16>, vector<2x8x8x128xbf16>, vector<2x8x8x128xbf16>, vector<2x8x8x128xbf16>, vector<2x8x8x128xbf16>, vector<2x8x8x128xbf16>, vector<2x8x8x128xbf16> -> vector<2x8x8x1152xbf16>
    %12 = vector.shape_cast %11 : vector<2x8x8x1152xbf16> to vector<128x1152xbf16>
    %c0_7 = arith.constant 0 : index
    %c0_8 = arith.constant 0 : index
    %13 = vector.load %arg3[%c0_7, %c0_8] : memref<1152x128xbf16, #tpu.memory_space<vmem>>, vector<1152x128xbf16>
    %cst = arith.constant dense<0.000000e+00> : vector<128x128xf32>
    %14 = tpu.matmul %12, %13, %cst {dimension_numbers = #tpu.dot_dimension_numbers<[1], [0], [0], [1], [0, 0, 1, 1], [], []>} : vector<128x1152xbf16>, vector<1152x128xbf16>, vector<128x128xf32> -> vector<128x128xf32>
    %c2 = arith.constant 2 : index
    %c0_9 = arith.constant 0 : index
    %15 = vector.load %arg6[%c2, %c0_9] : memref<3x128xf32, #tpu.memory_space<vmem>>, vector<1x128xf32>
    %16 = vector.broadcast %15 : vector<1x128xf32> to vector<128x128xf32>
    %17 = arith.addf %14, %16 : vector<128x128xf32>
    %cst_10 = arith.constant 0.000000e+00 : f32
    %18 = vector.broadcast %cst_10 : f32 to vector<128x128xf32>
    %19 = arith.maximumf %17, %18 : vector<128x128xf32>
    %20 = vector.extract_strided_slice %0 {offsets = [0, 1, 1, 0], sizes = [1, 8, 8, 128], strides = [1, 1, 1, 1]} : vector<2x10x16x128xbf16> to vector<1x8x8x128xbf16>
    %21 = vector.shape_cast %20 : vector<1x8x8x128xbf16> to vector<8x8x128xbf16>
    %22 = arith.extf %21 : vector<8x8x128xbf16> to vector<8x8x128xf32>
    %23 = vector.shape_cast %22 : vector<8x8x128xf32> to vector<64x128xf32>
    %cst_11 = arith.constant dense<0.000000e+00> : vector<128xf32>
    %24 = vector.multi_reduction <add>, %23, %cst_11 [0] : vector<64x128xf32> to vector<128xf32>
    %25 = vector.shape_cast %24 : vector<128xf32> to vector<1x128xf32>
    %cst_12 = arith.constant 6.400000e+01 : f32
    %26 = vector.broadcast %cst_12 : f32 to vector<1x128xf32>
    %27 = arith.divf %25, %26 : vector<1x128xf32>
    %cst_13 = arith.constant dense<0xFF800000> : vector<128xf32>
    %28 = vector.multi_reduction <maximumf>, %23, %cst_13 [0] : vector<64x128xf32> to vector<128xf32>
    %29 = vector.shape_cast %28 : vector<128xf32> to vector<1x128xf32>
    %30 = arith.addf %27, %29 : vector<1x128xf32>
    %31 = vector.extract_strided_slice %0 {offsets = [1, 1, 1, 0], sizes = [1, 8, 8, 128], strides = [1, 1, 1, 1]} : vector<2x10x16x128xbf16> to vector<1x8x8x128xbf16>
    %32 = vector.shape_cast %31 : vector<1x8x8x128xbf16> to vector<8x8x128xbf16>
    %33 = arith.extf %32 : vector<8x8x128xbf16> to vector<8x8x128xf32>
    %34 = vector.shape_cast %33 : vector<8x8x128xf32> to vector<64x128xf32>
    %cst_14 = arith.constant dense<0.000000e+00> : vector<128xf32>
    %35 = vector.multi_reduction <add>, %34, %cst_14 [0] : vector<64x128xf32> to vector<128xf32>
    %36 = vector.shape_cast %35 : vector<128xf32> to vector<1x128xf32>
    %cst_15 = arith.constant 6.400000e+01 : f32
    %37 = vector.broadcast %cst_15 : f32 to vector<1x128xf32>
    %38 = arith.divf %36, %37 : vector<1x128xf32>
    %cst_16 = arith.constant dense<0xFF800000> : vector<128xf32>
    %39 = vector.multi_reduction <maximumf>, %34, %cst_16 [0] : vector<64x128xf32> to vector<128xf32>
    %40 = vector.shape_cast %39 : vector<128xf32> to vector<1x128xf32>
    %41 = arith.addf %38, %40 : vector<1x128xf32>
    %42 = tpu.concatenate %30, %41 in 0 : vector<1x128xf32>, vector<1x128xf32> -> vector<2x128xf32>
    %c0_17 = arith.constant 0 : index
    %c0_18 = arith.constant 0 : index
    %43 = vector.load %arg5[%c0_17, %c0_18] : memref<128x128xf32, #tpu.memory_space<vmem>>, vector<128x128xf32>
    %cst_19 = arith.constant dense<0.000000e+00> : vector<2x128xf32>
    %44 = tpu.matmul %42, %43, %cst_19 {dimension_numbers = #tpu.dot_dimension_numbers<[1], [0], [0], [1], [0, 0, 1, 1], [], []>} : vector<2x128xf32>, vector<128x128xf32>, vector<2x128xf32> -> vector<2x128xf32>
    %c0_20 = arith.constant 0 : index
    %c0_21 = arith.constant 0 : index
    %45 = vector.load %arg6[%c0_20, %c0_21] : memref<3x128xf32, #tpu.memory_space<vmem>>, vector<1x128xf32>
    %46 = vector.broadcast %45 : vector<1x128xf32> to vector<2x128xf32>
    %47 = arith.addf %44, %46 : vector<2x128xf32>
    %cst_22 = arith.constant 0.000000e+00 : f32
    %48 = vector.broadcast %cst_22 : f32 to vector<2x128xf32>
    %49 = arith.maximumf %47, %48 : vector<2x128xf32>
    %50 = vector.extract_strided_slice %1 {offsets = [0, 0, 0, 0], sizes = [2, 16, 16, 128], strides = [1, 1, 1, 1]} : vector<2x18x24x128xbf16> to vector<2x16x16x128xbf16>
    %51 = vector.extract_strided_slice %1 {offsets = [0, 0, 1, 0], sizes = [2, 16, 16, 128], strides = [1, 1, 1, 1]} : vector<2x18x24x128xbf16> to vector<2x16x16x128xbf16>
    %52 = vector.extract_strided_slice %1 {offsets = [0, 0, 2, 0], sizes = [2, 16, 16, 128], strides = [1, 1, 1, 1]} : vector<2x18x24x128xbf16> to vector<2x16x16x128xbf16>
    %53 = vector.extract_strided_slice %1 {offsets = [0, 1, 0, 0], sizes = [2, 16, 16, 128], strides = [1, 1, 1, 1]} : vector<2x18x24x128xbf16> to vector<2x16x16x128xbf16>
    %54 = vector.extract_strided_slice %1 {offsets = [0, 1, 1, 0], sizes = [2, 16, 16, 128], strides = [1, 1, 1, 1]} : vector<2x18x24x128xbf16> to vector<2x16x16x128xbf16>
    %55 = vector.extract_strided_slice %1 {offsets = [0, 1, 2, 0], sizes = [2, 16, 16, 128], strides = [1, 1, 1, 1]} : vector<2x18x24x128xbf16> to vector<2x16x16x128xbf16>
    %56 = vector.extract_strided_slice %1 {offsets = [0, 2, 0, 0], sizes = [2, 16, 16, 128], strides = [1, 1, 1, 1]} : vector<2x18x24x128xbf16> to vector<2x16x16x128xbf16>
    %57 = vector.extract_strided_slice %1 {offsets = [0, 2, 1, 0], sizes = [2, 16, 16, 128], strides = [1, 1, 1, 1]} : vector<2x18x24x128xbf16> to vector<2x16x16x128xbf16>
    %58 = vector.extract_strided_slice %1 {offsets = [0, 2, 2, 0], sizes = [2, 16, 16, 128], strides = [1, 1, 1, 1]} : vector<2x18x24x128xbf16> to vector<2x16x16x128xbf16>
    %59 = tpu.concatenate %50, %51, %52, %53, %54, %55, %56, %57, %58 in 3 : vector<2x16x16x128xbf16>, vector<2x16x16x128xbf16>, vector<2x16x16x128xbf16>, vector<2x16x16x128xbf16>, vector<2x16x16x128xbf16>, vector<2x16x16x128xbf16>, vector<2x16x16x128xbf16>, vector<2x16x16x128xbf16>, vector<2x16x16x128xbf16> -> vector<2x16x16x1152xbf16>
    %60 = vector.shape_cast %59 : vector<2x16x16x1152xbf16> to vector<512x1152xbf16>
    %c0_23 = arith.constant 0 : index
    %c0_24 = arith.constant 0 : index
    %61 = vector.load %arg4[%c0_23, %c0_24] : memref<1152x128xbf16, #tpu.memory_space<vmem>>, vector<1152x128xbf16>
    %cst_25 = arith.constant dense<0.000000e+00> : vector<512x128xf32>
    %62 = tpu.matmul %60, %61, %cst_25 {dimension_numbers = #tpu.dot_dimension_numbers<[1], [0], [0], [1], [0, 0, 1, 1], [], []>} : vector<512x1152xbf16>, vector<1152x128xbf16>, vector<512x128xf32> -> vector<512x128xf32>
    %c1 = arith.constant 1 : index
    %c0_26 = arith.constant 0 : index
    %63 = vector.load %arg6[%c1, %c0_26] : memref<3x128xf32, #tpu.memory_space<vmem>>, vector<1x128xf32>
    %64 = vector.broadcast %63 : vector<1x128xf32> to vector<512x128xf32>
    %65 = arith.addf %62, %64 : vector<512x128xf32>
    %66 = vector.shape_cast %65 : vector<512x128xf32> to vector<2x256x128xf32>
    %67 = vector.shape_cast %49 : vector<2x128xf32> to vector<2x1x128xf32>
    %68 = vector.broadcast %67 : vector<2x1x128xf32> to vector<2x256x128xf32>
    %69 = arith.mulf %66, %68 : vector<2x256x128xf32>
    %70 = vector.shape_cast %19 : vector<128x128xf32> to vector<2x64x128xf32>
    %c0_27 = arith.constant 0 : index
    %c0_28 = arith.constant 0 : index
    %71 = vector.load %arg7[%c0_27, %c0_28] : memref<256x64xf32, #tpu.memory_space<vmem>>, vector<256x64xf32>
    %72 = vector.shape_cast %71 : vector<256x64xf32> to vector<1x256x64xf32>
    %73 = vector.shape_cast %72 : vector<1x256x64xf32> to vector<1x256x64xf32>
    %74 = vector.broadcast %73 : vector<1x256x64xf32> to vector<2x256x64xf32>
    %cst_29 = arith.constant dense<0.000000e+00> : vector<2x256x128xf32>
    %75 = tpu.matmul %74, %70, %cst_29 {dimension_numbers = #tpu.dot_dimension_numbers<[2], [1], [1], [2], [0, 0, 0, 1, 1, 2], [0], [0]>} : vector<2x256x64xf32>, vector<2x64x128xf32>, vector<2x256x128xf32> -> vector<2x256x128xf32>
    %76 = arith.addf %75, %69 : vector<2x256x128xf32>
    %cst_30 = arith.constant 0.000000e+00 : f32
    %77 = vector.broadcast %cst_30 : f32 to vector<2x256x128xf32>
    %78 = arith.maximumf %76, %77 : vector<2x256x128xf32>
    %c0_31 = arith.constant 0 : index
    %c0_32 = arith.constant 0 : index
    %c0_33 = arith.constant 0 : index
    %79 = vector.load %arg8[%c0_31, %c0_32, %c0_33] : memref<2x256x128xf32, #tpu.memory_space<vmem>>, vector<2x256x128xf32>
    tpu.vector_store %arg8[%c0_31, %c0_32, %c0_33], %78 {strides = array<i32>} : memref<2x256x128xf32, #tpu.memory_space<vmem>>, vector<2x256x128xf32>,
    return
  }
  func.func @transform_0(%arg0: i32) -> (i32, i32, i32, i32) {
    %c0_i32 = arith.constant 0 : i32
    %c0_i32_0 = arith.constant 0 : i32
    %c0_i32_1 = arith.constant 0 : i32
    %c0_i32_2 = arith.constant 0 : i32
    return %arg0, %c0_i32, %c0_i32_0, %c0_i32_1 : i32, i32, i32, i32
  }
  func.func @transform_1(%arg0: i32) -> (i32, i32, i32, i32) {
    %c0_i32 = arith.constant 0 : i32
    %c0_i32_0 = arith.constant 0 : i32
    %c0_i32_1 = arith.constant 0 : i32
    %c0_i32_2 = arith.constant 0 : i32
    return %arg0, %c0_i32, %c0_i32_0, %c0_i32_1 : i32, i32, i32, i32
  }
  func.func @transform_2(%arg0: i32) -> (i32, i32) {
    %c0_i32 = arith.constant 0 : i32
    %c0_i32_0 = arith.constant 0 : i32
    %c0_i32_1 = arith.constant 0 : i32
    return %c0_i32, %c0_i32_0 : i32, i32
  }
  func.func @transform_3(%arg0: i32) -> (i32, i32) {
    %c0_i32 = arith.constant 0 : i32
    %c0_i32_0 = arith.constant 0 : i32
    %c0_i32_1 = arith.constant 0 : i32
    return %c0_i32, %c0_i32_0 : i32, i32
  }
  func.func @transform_4(%arg0: i32) -> (i32, i32) {
    %c0_i32 = arith.constant 0 : i32
    %c0_i32_0 = arith.constant 0 : i32
    %c0_i32_1 = arith.constant 0 : i32
    return %c0_i32, %c0_i32_0 : i32, i32
  }
  func.func @transform_5(%arg0: i32) -> (i32, i32) {
    %c0_i32 = arith.constant 0 : i32
    %c0_i32_0 = arith.constant 0 : i32
    %c0_i32_1 = arith.constant 0 : i32
    return %c0_i32, %c0_i32_0 : i32, i32
  }
  func.func @transform_6(%arg0: i32) -> (i32, i32) {
    %c0_i32 = arith.constant 0 : i32
    %c0_i32_0 = arith.constant 0 : i32
    %c0_i32_1 = arith.constant 0 : i32
    return %c0_i32, %c0_i32_0 : i32, i32
  }
  func.func @transform_7(%arg0: i32) -> (i32, i32, i32) {
    %c0_i32 = arith.constant 0 : i32
    %c0_i32_0 = arith.constant 0 : i32
    %c0_i32_1 = arith.constant 0 : i32
    return %arg0, %c0_i32, %c0_i32_0 : i32, i32, i32
  }
}

</mosaic_0001>

<bundles_post_ra>
// kernel: tpu_custom_call.1
= control target key start
LH: loop header
LB: loop body
LE: loop exit
PB: predicated region body
PF: predicated region fallthrough
CT: control target
= control target key end

     0   :  { %12 = vsyncpa [#allocation3], 0  ;;  %s10457_s0 = inlined_call_operand.vmem [shape: bf16[2,10,16,128], index: 0, kind: input, shape index: {}]   ;;  %s10458_s1 = inlined_call_operand.hbm [shape: bf16[2,18,24,128], index: 1, kind: input, shape index: {}]   ;;  %s10459_s2 = inlined_call_operand.hbm [shape: bf16[1152,128], index: 2, kind: input, shape index: {}]   ;;  %s10460_s3 = inlined_call_operand.hbm [shape: bf16[1152,128], index: 3, kind: input, shape index: {}]   ;;  %s10461_s4 = inlined_call_operand.vmem [shape: f32[128,128], index: 4, kind: input, shape index: {}]   ;;  %s10462_s5 = inlined_call_operand.vmem [shape: f32[3,128], index: 5, kind: input, shape index: {}]   ;;  %s10463_s6 = inlined_call_operand.vmem [shape: f32[256,64], index: 6, kind: input, shape index: {}]   ;;  %s10464_s7 = inlined_call_operand.hbm [shape: f32[2,256,128], index: 7, kind: output, shape index: {}]  }
   0x1   :  { %13 = vsyncpa [#allocation6], 0 }
   0x2   :  { %14 = vsyncpa [#allocation4], 0  ;;  %s7677_s24 = smov [#allocation5]   ;;  %s7678_s26 = smov [#allocation2]  }
   0x3   :  { %s34_s25 = sshll.u32 %s7677_s24, 4  ;;  %s22_s27 = sshll.u32 %s7678_s26, 4  ;;  %s35_s25 = int_to_ptr.vmem [resolvable:$true] %s34_s25  ;;  %s7730_s27 = int_to_ptr.vmem [resolvable:$true] %s22_s27 }
   0x4   :  { %s7583_s30 = scalar_lea.hbm %s10459_s2, 9216 }
   0x5   :  { %p7584_p0 = scmp.ne.s32.totalorder %s10459_s2, %s7583_s30  ;;  %p7587_p1 = scmp.lt.u32.totalorder %s7583_s30, %s10459_s2 }
   0x7   :  { %p7589_p2 = pnand %p7587_p1, %p7584_p0 }
   0x9   :  { %7592 = shalt.err (!%p7589_p2)
}
   0xa   :  { %s7593_s12 = scalar_lea.vmem %s35_s25, 9216  ;;  %p7598_p4 = scmp.lt.s32.totalorder %s35_s25, %s35_s25 }
   0xb   :  { %p7594_p3 = scmp.ne.s32.totalorder %s35_s25, %s7593_s12  ;;  %p7599_p5 = scmp.lt.s32.totalorder %s7593_s12, %s7593_s12 }
   0xd   :  { %p7600_p6 = por %p7599_p5, %p7598_p4 }
   0xf   :  { %p7601_p7 = pnand %p7600_p6, %p7594_p3 }
  0x11   :  { %7604 = shalt.err (!%p7601_p7)
}
  0x12   :  { %s7679_s13 = smov 64   ;;  %s7680_s14 = smov 4  }
  0x13   :  { %40 = dma.hbm_to_vmem [thread:$0]  %s10459_s2, 9216, %s35_s25, [#allocation6], %s7679_s13, %s7679_s13, %s7680_s14  }
  0x14   :  { %s7605_s19 = scalar_lea.hbm %s10458_s1, 6912 }
  0x15   :  { %p7606_p8 = scmp.ne.s32.totalorder %s10458_s1, %s7605_s19  ;;  %p7609_p9 = scmp.lt.u32.totalorder %s7605_s19, %s10458_s1 }
  0x17   :  { %p7611_p10 = pnand %p7609_p9, %p7606_p8 }
  0x19   :  { %7614 = shalt.err (!%p7611_p10)
}
  0x1a   :  { %s7615_s24 = scalar_lea.vmem %s7730_s27, 6912  ;;  %p7620_p12 = scmp.lt.s32.totalorder %s7730_s27, %s7730_s27 }
  0x1b   :  { %p7616_p11 = scmp.ne.s32.totalorder %s7730_s27, %s7615_s24  ;;  %p7621_p13 = scmp.lt.s32.totalorder %s7615_s24, %s7615_s24 }
  0x1d   :  { %p7622_p0 = por %p7621_p13, %p7620_p12 }
  0x1f   :  { %p7623_p1 = pnand %p7622_p0, %p7616_p11 }
  0x21   :  { %7626 = shalt.err (!%p7623_p1)
}
  0x22   :  { %28 = dma.hbm_to_vmem [thread:$0]  %s10458_s1, 6912, %s7730_s27, [#allocation3], %s7679_s13, %s7679_s13, %s7680_s14  }
  0x23   :  { %s7681_s26 = smov [#allocation7]   ;;  %s7627_s8 = scalar_lea.hbm %s10460_s3, 9216 }
  0x24   :  { %s46_s28 = sshll.u32 %s7681_s26, 4  ;;  %p7628_p2 = scmp.ne.s32.totalorder %s10460_s3, %s7627_s8  ;;  %s47_s28 = int_to_ptr.vmem [resolvable:$true] %s46_s28 }
  0x25   :  { %p7631_p3 = scmp.lt.u32.totalorder %s7627_s8, %s10460_s3 }
  0x27   :  { %p7633_p4 = pnand %p7631_p3, %p7628_p2 }
  0x29   :  { %7636 = shalt.err (!%p7633_p4)
}
  0x2a   :  { %s7637_s15 = scalar_lea.vmem %s47_s28, 9216  ;;  %p7642_p6 = scmp.lt.s32.totalorder %s47_s28, %s47_s28 }
  0x2b   :  { %p7638_p5 = scmp.ne.s32.totalorder %s47_s28, %s7637_s15  ;;  %p7643_p7 = scmp.lt.s32.totalorder %s7637_s15, %s7637_s15 }
  0x2d   :  { %p7644_p8 = por %p7643_p7, %p7642_p6 }
  0x2f   :  { %p7645_p9 = pnand %p7644_p8, %p7638_p5 }
  0x31   :  { %7648 = shalt.err (!%p7645_p9)
}
  0x32   :  { %52 = dma.hbm_to_vmem [thread:$0]  %s10460_s3, 9216, %s47_s28, [#allocation6], %s7679_s13, %s7679_s13, %s7680_s14  }
  0x33   :  { %7671 = dma.done.wait [#allocation3], 6912  }
  0x34   :  { %7672 = vsyncadd [#allocation3], 4294960384 }
  0x35   :  { %7673 = dma.done.wait [#allocation6], 18432  }
  0x36   :  { %7674 = vsyncadd [#allocation6], 4294948864  ;;  %v7299_v0 = vld [vmem:[#allocation5 + $0x40] sm:$0xff]   ;;  %v7303_v4 = vld [vmem:[#allocation5 + $0x48] sm:$0xff]   ;;  %vm1739_vm0 = vcmask 1046528   ;;  %vm1893_vm1 = vcmask 1040384  }
  0x37   :  { %v7300_v1 = vld [vmem:[#allocation5 + $0xc0] sm:$0xff]   ;;  %6130 = vmatprep.subr.bf16.mxu0 %v7299_v0  ;;  %v7304_v5 = vld [vmem:[#allocation5 + $0xc8] sm:$0xff]   ;;  %v7307_v8 = vld [vmem:[#allocation5 + $0x50] sm:$0xff]   ;;  %vm7684_vm2 = vmmov 0   ;;  %vm2275_vm3 = vsmask.f32 7424 }
  0x38   :  { %v7301_v2 = vld [vmem:[#allocation5] sm:$0xff]   ;;  %6194 = vmatprep.subr.bf16.mxu1 %v7300_v1  ;;  %v7305_v6 = vld [vmem:[#allocation5 + $0x8] sm:$0xff]   ;;  %v7308_v9 = vld [vmem:[#allocation5 + $0xd0] sm:$0xff]   ;;  %vm5080_vm4 = vcmask 523264  }
  0x39   :  { %v7302_v3 = vld [vmem:[#allocation5 + $0x80] sm:$0xff]   ;;  %6131 = vmatpush3.bf16.msra.mxu0 %v7301_v2  ;;  %v7306_v7 = vld [vmem:[#allocation5 + $0x88] sm:$0xff]   ;;  %v7309_v10 = vld [vmem:[#allocation5 + $0x10] sm:$0xff]  }
  0x3a   :  { %6195 = vmatpush3.bf16.msra.mxu1 %v7302_v3  ;;  %6132 = vmatprep.subr.bf16.mxu0 %v7303_v4  ;;  %v7310_v11 = vld [vmem:[#allocation5 + $0x90] sm:$0xff]   ;;  %v7311_v12 = vld [vmem:[#allocation5 + $0x58] sm:$0xff]   ;;  %v7315_v16 = vld [vmem:[#allocation5 + $0x60] sm:$0xff]  }
  0x3b   :  { %6196 = vmatprep.subr.bf16.mxu1 %v7304_v5  ;;  %v7312_v13 = vld [vmem:[#allocation5 + $0xd8] sm:$0xff]   ;;  %v7316_v17 = vld [vmem:[#allocation5 + $0xe0] sm:$0xff]   ;;  %v7319_v20 = vld [vmem:[#allocation5 + $0x68] sm:$0xff]  }
  0x3c   :  { %v7313_v14 = vld [vmem:[#allocation5 + $0x18] sm:$0xff]   ;;  %v7317_v18 = vld [vmem:[#allocation5 + $0x20] sm:$0xff]   ;;  %v7320_v21 = vld [vmem:[#allocation5 + $0xe8] sm:$0xff]  }
  0x3d   :  { %6133 = vmatpush3.bf16.msra.mxu0 %v7305_v6  ;;  %v7314_v15 = vld [vmem:[#allocation5 + $0x98] sm:$0xff]   ;;  %v7318_v19 = vld [vmem:[#allocation5 + $0xa0] sm:$0xff]   ;;  %v7321_v22 = vld [vmem:[#allocation5 + $0x28] sm:$0xff]  }
  0x3e   :  { %6197 = vmatpush3.bf16.msra.mxu1 %v7306_v7  ;;  %6134 = vmatprep.subr.bf16.mxu0 %v7307_v8  ;;  %v7322_v23 = vld [vmem:[#allocation5 + $0xa8] sm:$0xff]   ;;  %v7323_v24 = vld [vmem:[#allocation5 + $0x70] sm:$0xff]   ;;  %v7327_v28 = vld [vmem:[#allocation5 + $0x78] sm:$0xff]  }
  0x3f   :  { %6198 = vmatprep.subr.bf16.mxu1 %v7308_v9  ;;  %v7324_v25 = vld [vmem:[#allocation5 + $0xf0] sm:$0xff]   ;;  %v7328_v29 = vld [vmem:[#allocation5 + $0xf8] sm:$0xff]   ;;  %v7801_v36 = vld [vmem:[%s10457_s0 + $0x10] sm:$0xf] }
  0x40   :  { %v7325_v26 = vld [vmem:[#allocation5 + $0x30] sm:$0xff]   ;;  %v7329_v30 = vld [vmem:[#allocation5 + $0x38] sm:$0xff]   ;;  %v74_v37 = vld [vmem:[%s10457_s0 + $0x14] sm:$0xf]  ;;  %v1709_v43 = vunpack.c.l.bf16 %v7801_v36 }
  0x41   :  { %6135 = vmatpush3.bf16.msra.mxu0 %v7309_v10  ;;  %v7326_v27 = vld [vmem:[#allocation5 + $0xb0] sm:$0xff]   ;;  %v7330_v31 = vld [vmem:[#allocation5 + $0xb8] sm:$0xff]   ;;  %v7812_v41 = vcombine.low %v7801_v36, %v74_v37  ;;  %v7336_v44 = vld [vmem:[#allocation5 + $0x140] sm:$0xff]   ;;  %v1710_v47 = vunpack.c.l.bf16 %v74_v37 }
  0x42   :  { %6199 = vmatpush3.bf16.msra.mxu1 %v7310_v11  ;;  %6136 = vmatprep.subr.bf16.mxu0 %v7311_v12  ;;  %v7785_v32 = vld [vmem:[%s10457_s0] sm:$0xf]  ;;  %v70_v33 = vld [vmem:[%s10457_s0 + $0x4] sm:$0xf]  ;;  %v7793_v34 = vld [vmem:[%s10457_s0 + $0x8] sm:$0xf] }
  0x43   :  { %6200 = vmatprep.subr.bf16.mxu1 %v7312_v13  ;;  %v72_v35 = vld [vmem:[%s10457_s0 + $0xc] sm:$0xf]  ;;  %v5773_v38 = vcombine.low %v7785_v32, %v70_v33  ;;  %v1707_v39 = vunpack.c.l.bf16 %v7793_v34  ;;  %v312_v51 = vshrl.u32 %v7812_v41, 16  ;;  %v314_v52 = vshll.u32 %v7812_v41, 16  ;;  %v7338_v61 = vld [vmem:[#allocation5 + $0x1c0] sm:$0xff]  }
  0x44   :  { %v7809_v40 = vcombine.low %v7793_v34, %v72_v35  ;;  %v1708_v42 = vunpack.c.l.bf16 %v72_v35  ;;  %v1743_v55 = vrot.slane %v1709_v43, 1  ;;  %v1744_v56 = vrot.slane %v1710_v47, 1  ;;  %v7339_v2 = vld [vmem:[#allocation5 + $0x180] sm:$0xff]   ;;  %v75_v6 = vld [vmem:[%s10457_s0 + $0x18] sm:$0xf]  ;;  %v7352_v47 = vld [vmem:[#allocation5 + $0x150] sm:$0xff]  }
  0x45   :  { %6137 = vmatpush3.bf16.msra.mxu0 %v7313_v14  ;;  %v298_v45 = vshrl.u32 %v5773_v38, 16  ;;  %v300_v46 = vshll.u32 %v5773_v38, 16  ;;  %v1740_v48 = vrot.slane %v1707_v39, 1  ;;  %v316_v58 = vrot.slane %v314_v52, 1  ;;  %v76_v7 = vld [vmem:[%s10457_s0 + $0x1c] sm:$0xf] }
  0x46   :  { %6201 = vmatpush3.bf16.msra.mxu1 %v7314_v15  ;;  %6138 = vmatprep.subr.bf16.mxu0 %v7315_v16  ;;  %v305_v49 = vshrl.u32 %v7809_v40, 16  ;;  %v307_v50 = vshll.u32 %v7809_v40, 16  ;;  %v1741_v54 = vrot.slane %v1708_v42, 1  ;;  %v5797_v59 = vcombine.low %v7793_v34, %v7801_v36  ;;  %v7843_v8 = vld [vmem:[%s10457_s0 + $0x20] sm:$0xf]  ;;  %v7337_v15 = vld [vmem:[#allocation5 + $0x100] sm:$0xff]  }
  0x47   :  { %6202 = vmatprep.subr.bf16.mxu1 %v7316_v17  ;;  %v302_v53 = vrot.slane %v300_v46, 1  ;;  %v409_v60 = vrot.slane %v5773_v38, 1  ;;  %v7825_v0 = vsel %vm1739_vm0, %v1743_v55, %v1744_v56  ;;  %v10471_v1 = vrot.slane %v7809_v40, 1  ;;  %v78_v13 = vld [vmem:[%s10457_s0 + $0x24] sm:$0xf] }
  0x48   :  { %v309_v57 = vrot.slane %v307_v50, 1  ;;  %v7822_v63 = vsel %vm1739_vm0, %v1740_v48, %v1741_v54  ;;  %1335 = vmatprep.mubr.bf16.mxu1 %v5797_v59  ;;  %v5794_v5 = vcombine.low %v7785_v32, %v7793_v34  ;;  %v7847_v10 = vcombine.low %v75_v6, %v76_v7  ;;  %v79_v38 = vld [vmem:[%s10457_s0 + $0x28] sm:$0xf]  ;;  %v80_v39 = vld [vmem:[%s10457_s0 + $0x2c] sm:$0xf]  ;;  %v7353_v52 = vld [vmem:[#allocation5 + $0x110] sm:$0xff]  }
  0x49   :  { %6139 = vmatpush3.bf16.msra.mxu0 %v7317_v18  ;;  %v303_v62 = vor.u32 %v302_v53, %v298_v45  ;;  %v1772_v4 = vadd.f32 %v7825_v0, %v7822_v63  ;;  %v5796_v9 = vcombine.low %v409_v60, %v10471_v1  ;;  %v1711_v11 = vunpack.c.l.bf16 %v75_v6  ;;  %v7891_v45 = vld [vmem:[%s10457_s0 + $0x30] sm:$0xf]  ;;  %v82_v46 = vld [vmem:[%s10457_s0 + $0x34] sm:$0xf]  ;;  %v7386_v1 = vld [vmem:[#allocation5 + $0x1f0] sm:$0xff]  }
  0x4a   :  { %6203 = vmatpush3.bf16.msra.mxu1 %v7318_v19  ;;  %6140 = vmatprep.subr.bf16.mxu0 %v7319_v20  ;;  %v7828_v3 = vor.u32 %v309_v57, %v305_v49  ;;  %v1712_v12 = vunpack.c.l.bf16 %v76_v7  ;;  %v5803_v16 = vcombine.low %v75_v6, %v7843_v8  ;;  %v319_v17 = vshrl.u32 %v7847_v10, 16 }
  0x4b   :  { %6204 = vmatprep.subr.bf16.mxu1 %v7320_v21  ;;  %v321_v18 = vshll.u32 %v7847_v10, 16  ;;  %v1746_v19 = vrot.slane %v1711_v11, 1  ;;  %v7344_v21 = vld [vmem:[#allocation5 + $0x148] sm:$0xff]   ;;  %v10468_v32 = vrot.slane %v7847_v10, 1  ;;  %v7869_v37 = vcombine.low %v7801_v36, %v75_v6  ;;  %v7355_v6 = vld [vmem:[#allocation5 + $0x190] sm:$0xff]  }
  0x4c   :  { %v5795_v14 = vcombine.low %v303_v62, %v7828_v3  ;;  %v1747_v20 = vrot.slane %v1712_v12, 1  ;;  %v7885_v36 = vcombine.low %v79_v38, %v80_v39  ;;  %v1715_v50 = vunpack.c.l.bf16 %v79_v38 }
  0x4d   :  { %6141 = vmatpush3.bf16.msra.mxu0 %v7321_v22  ;;  %v7346_v22 = vld [vmem:[#allocation5 + $0x1c8] sm:$0xff]   ;;  %v7908_v60 = vcombine.low %v7891_v45, %v82_v46  ;;  %v7918_v11 = vcombine.low %v7843_v8, %v79_v38 }
  0x4e   :  { %6205 = vmatpush3.bf16.msra.mxu1 %v7322_v23  ;;  %6142 = vmatprep.subr.bf16.mxu0 %v7323_v24  ;;  %v7857_v23 = vcombine.low %v7843_v8, %v78_v13  ;;  %v1713_v24 = vunpack.c.l.bf16 %v7843_v8  ;;  %v333_v55 = vshrl.u32 %v7885_v36, 16  ;;  %v335_v56 = vshll.u32 %v7885_v36, 16 }
  0x4f   :  { %6206 = vmatprep.subr.bf16.mxu1 %v7324_v25  ;;  %1238 = vmatprep.mubr.bf16.mxu0 %v5795_v14  ;;  %v1714_v25 = vunpack.c.l.bf16 %v78_v13  ;;  %v7924_v13 = vld [vmem:[%s10457_s0 + $0x38] sm:$0xf]  ;;  %v7359_v14 = vld [vmem:[#allocation5 + $0x158] sm:$0xff]  }
  0x50   :  { %v1749_v33 = vrot.slane %v1713_v24, 1  ;;  %v328_v49 = vshll.u32 %v7857_v23, 16  ;;  %v337_v62 = vrot.slane %v335_v56, 1  ;;  %v10469_v12 = vrot.slane %v7857_v23, 1 }
  0x51   :  { %6143 = vmatpush3.bf16.msra.mxu0 %v7325_v26  ;;  %v10472_v26 = vrot.slane %v7812_v41, 1  ;;  %v1750_v34 = vrot.slane %v1714_v25, 1 }
  0x52   :  { %6207 = vmatpush3.bf16.msra.mxu1 %v7326_v27  ;;  %6144 = vmatprep.subr.bf16.mxu0 %v7327_v28  ;;  %v7345_v27 = vld [vmem:[#allocation5 + $0x108] sm:$0xff]   ;;  %v330_v57 = vrot.slane %v328_v49, 1 }
  0x53   :  { %6208 = vmatprep.subr.bf16.mxu1 %v7328_v29  ;;  %v7347_v28 = vld [vmem:[#allocation5 + $0x188] sm:$0xff]   ;;  %v7861_v29 = vor.u32 %v316_v58, %v312_v51  ;;  %v7883_v43 = vcombine.low %v10472_v26, %v10468_v32  ;;  %v7897_v48 = vsel %vm1739_vm0, %v1749_v33, %v1750_v34  ;;  %v1716_v51 = vunpack.c.l.bf16 %v80_v39  ;;  %v7361_v39 = vld [vmem:[#allocation5 + $0x1d8] sm:$0xff]  }
  0x54   :  { %v1752_v58 = vrot.slane %v1715_v50, 1  ;;  %v7362_v50 = vld [vmem:[#allocation5 + $0x198] sm:$0xff]   ;;  %v7379_v32 = vld [vmem:[#allocation5 + $0x1a8] sm:$0xff]  }
  0x55   :  { %6145 = vmatpush3.bf16.msra.mxu0 %v7329_v30  ;;  %v323_v30 = vrot.slane %v321_v18, 1  ;;  %10546 = vst [vmem:[#allocation12_spill] sm:$0xff] %v7883_v43  ;;  %v1753_v59 = vrot.slane %v1716_v51, 1  ;;  %v84_v18 = vld [vmem:[%s10457_s0 + $0x3c] sm:$0xf] }
  0x56   :  { %6209 = vmatpush3.bf16.msra.mxu1 %v7330_v31  ;;  %6258 = vmatprep.subr.bf16.mxu0 %v7336_v44  ;;  %v7864_v31 = vsel %vm1739_vm0, %v1746_v19, %v1747_v20  ;;  %v326_v44 = vshrl.u32 %v7857_v23, 16  ;;  %v7936_v19 = vld [vmem:[%s10457_s0 + $0x40] sm:$0xf] }
  0x57   :  { %6322 = vmatprep.subr.bf16.mxu1 %v7338_v61  ;;  %v1773_v35 = vadd.f32 %v1772_v4, %v7864_v31  ;;  %v7877_v42 = vor.u32 %v323_v30, %v319_v17  ;;  %v7354_v61 = vld [vmem:[#allocation5 + $0x1d0] sm:$0xff]   ;;  %v1717_v4 = vunpack.c.l.bf16 %v7891_v45  ;;  %v7360_v30 = vld [vmem:[#allocation5 + $0x118] sm:$0xff]  }
  0x58   :  { %1239 = vmatmul.mubr.bf16.vlgmr.msra.gmra.mrb[0].mxu0 %v5794_v5  ;;  %v1718_v5 = vunpack.c.l.bf16 %v82_v46  ;;  %v7914_v7 = vor.u32 %v330_v57, %v326_v44 }
  0x59   :  { %1336 = vmatmul.mubr.bf16.vlgmr.msra.gmra.mrb[0].mxu1 %v5796_v9  ;;  %6259 = vmatpush3.bf16.msra.mxu0 %v7337_v15  ;;  %v7902_v53 = vcombine.low %v7861_v29, %v7877_v42  ;;  %v1774_v54 = vadd.f32 %v1773_v35, %v7897_v48  ;;  %v1754_v9 = vsel %vm1739_vm0, %v1752_v58, %v1753_v59  ;;  %v1755_v17 = vrot.slane %v1717_v4, 1  ;;  %v7981_v59 = vld [vmem:[%s10457_s0 + $0x58] sm:$0xf] }
  0x5a   :  { %6323 = vmatpush3.bf16.msra.mxu1 %v7339_v2  ;;  %1343 = vmatprep.mubr.bf16.mxu1 %v5803_v16  ;;  %v5809_v2 = vcombine.low %v79_v38, %v7891_v45  ;;  %v7927_v15 = vor.u32 %v337_v62, %v333_v55  ;;  %v1787_v16 = vmax.f32 %v7822_v63, %v1754_v9  ;;  %v1756_v8 = vrot.slane %v1718_v5, 1 }
  0x5b   :  { %6324 = vmatprep.subr.bf16.mxu1 %v7346_v22  ;;  %6260 = vmatprep.subr.bf16.mxu0 %v7344_v21  ;;  %v1775_v20 = vadd.f32 %v1774_v54, %v1754_v9  ;;  %v10466_v21 = vrot.slane %v7885_v36, 1  ;;  %v7940_v22 = vcombine.low %v7924_v13, %v84_v18  ;;  %v340_v63 = vshrl.u32 %v7908_v60, 16  ;;  %v90_v54 = vld [vmem:[%s10457_s0 + $0x54] sm:$0xf] }
  0x5c   :  { %1246 = vmatprep.mubr.bf16.mxu0 %v7902_v53  ;;  %v7945_v24 = vcombine.low %v7914_v7, %v7927_v15  ;;  %v1757_v25 = vsel %vm1739_vm0, %v1755_v17, %v1756_v8  ;;  %v10467_v58 = vrot.slane %v7908_v60, 1  ;;  %v1801_v5 = vunpack.c.l.bf16 %v7981_v59  ;;  %v94_v8 = vld [vmem:[%s10457_s0 + $0x64] sm:$0xf] }
  0x5d   :  { %6261 = vmatpush3.bf16.msra.mxu0 %v7345_v27  ;;  %v342_v27 = vshll.u32 %v7908_v60, 16  ;;  %v7950_v33 = vadd.f32 %v1775_v20, %v1757_v25  ;;  %v1788_v34 = vmax.f32 %v7825_v0, %v1757_v25  ;;  %v7957_v35 = vcombine.low %v10469_v12, %v10466_v21  ;;  %v7378_v21 = vld [vmem:[#allocation5 + $0x1e8] sm:$0xff]  }
  0x5e   :  { %6325 = vmatpush3.bf16.msra.mxu1 %v7347_v28  ;;  %6262 = vmatprep.subr.bf16.mxu0 %v7352_v47  ;;  %v1719_v28 = vunpack.c.l.bf16 %v7924_v13  ;;  %v347_v38 = vshrl.u32 %v7940_v22, 16  ;;  %v349_v46 = vshll.u32 %v7940_v22, 16  ;;  %v1720_v47 = vunpack.c.l.bf16 %v84_v18 }
  0x5f   :  { %6326 = vmatprep.subr.bf16.mxu1 %v7354_v61  ;;  %10547 = vst [vmem:[#allocation13_spill] sm:$0xff] %v7957_v35  ;;  %v344_v44 = vrot.slane %v342_v27, 1  ;;  %v7962_v51 = vmax.f32 %v1787_v16, %v1788_v34  ;;  %v5815_v0 = vcombine.low %v7924_v13, %v7936_v19  ;;  %v7368_v61 = vld [vmem:[#allocation5 + $0x160] sm:$0xff]   ;;  %v10465_v62 = vrot.slane %v7940_v22, 1 }
  0x60   :  { %1247 = vmatmul.mubr.bf16.gmra.mrb[4].mxu0 %v7869_v37  ;;  %v1758_v49 = vrot.slane %v1719_v28, 1  ;;  %v351_v56 = vrot.slane %v349_v46, 1  ;;  %v1759_v57 = vrot.slane %v1720_v47, 1  ;;  %v1833_v34 = vrot.slane %v1801_v5, 1 }
  0x61   :  { %1344 = vmatmul.mubr.bf16.gmra.mrb[4].mxu1 %v7883_v43  ;;  %6263 = vmatpush3.bf16.msra.mxu0 %v7353_v52  ;;  %v7969_v52 = vld [vmem:[%s10457_s0 + $0x50] sm:$0xf]  ;;  %v7975_v55 = vor.u32 %v344_v44, %v340_v63  ;;  %v8014_v20 = vcombine.low %v10467_v58, %v10465_v62  ;;  %v7377_v62 = vld [vmem:[#allocation5 + $0x128] sm:$0xff]  }
  0x62   :  { %1351 = vmatprep.mubr.bf16.mxu1 %v5809_v2  ;;  %6327 = vmatpush3.bf16.msra.mxu1 %v7355_v6  ;;  %v92_v2 = vld [vmem:[%s10457_s0 + $0x5c] sm:$0xf]  ;;  %v7988_v4 = vcombine.low %v7969_v52, %v90_v54  ;;  %v7994_v6 = vld [vmem:[%s10457_s0 + $0x60] sm:$0xf]  ;;  %v7997_v9 = vor.u32 %v351_v56, %v347_v38  ;;  %v7369_v38 = vld [vmem:[#allocation5 + $0x120] sm:$0xff]  }
  0x63   :  { %6264 = vmatprep.subr.bf16.mxu0 %v7359_v14  ;;  %1254 = vmatprep.mubr.bf16.mxu0 %v7945_v24  ;;  %v8000_v14 = vsel %vm1739_vm0, %v1758_v49, %v1759_v57  ;;  %v8003_v16 = vcombine.low %v7981_v59, %v92_v2  ;;  %v1802_v17 = vunpack.c.l.bf16 %v92_v2  ;;  %10549 = vst [vmem:[#allocation15_spill] sm:$0xff] %v8014_v20  ;;  %v7370_v49 = vld [vmem:[#allocation5 + $0x1e0] sm:$0xff]   ;;  %v1803_v56 = vunpack.c.l.bf16 %v7994_v6 }
  0x64   :  { %6328 = vmatprep.subr.bf16.mxu1 %v7361_v39  ;;  %v354_v63 = vshrl.u32 %v7988_v4, 16  ;;  %v356_v25 = vshll.u32 %v7988_v4, 16  ;;  %v8020_v27 = vcombine.low %v7975_v55, %v7997_v9  ;;  %v8025_v46 = vcombine.low %v7994_v6, %v94_v8 }
  0x65   :  { %6265 = vmatpush3.bf16.msra.mxu0 %v7360_v30  ;;  %10548 = vst [vmem:[#allocation14_spill] sm:$0xff] %v8003_v16  ;;  %v361_v28 = vshrl.u32 %v8003_v16, 16  ;;  %v363_v30 = vshll.u32 %v8003_v16, 16  ;;  %v1834_v44 = vrot.slane %v1802_v17, 1  ;;  %v5824_v47 = vcombine.low %v7981_v59, %v7994_v6 }
  0x66   :  { %6329 = vmatpush3.bf16.msra.mxu1 %v7362_v50  ;;  %6266 = vmatprep.subr.bf16.mxu0 %v7368_v61  ;;  %v358_v39 = vrot.slane %v356_v25, 1  ;;  %10550 = vst [vmem:[#allocation16_spill] sm:$0xff] %v8025_v46  ;;  %v7371_v50 = vld [vmem:[#allocation5 + $0x1a0] sm:$0xff]   ;;  %v1804_v57 = vunpack.c.l.bf16 %v94_v8  ;;  %v7376_v61 = vld [vmem:[#allocation5 + $0x168] sm:$0xff]   ;;  %v417_v17 = vrot.slane %v7988_v4, 1  ;;  %v10470_v25 = vrot.slane %v8003_v16, 1 }
  0x67   :  { %v365_v54 = vrot.slane %v363_v30, 1  ;;  %v8036_v5 = vsel %vm1739_vm0, %v1833_v34, %v1834_v44  ;;  %6330 = vmatprep.subr.bf16.mxu1 %v7370_v49  ;;  %v8054_v4 = vld [vmem:[%s10457_s0 + $0x70] sm:$0xf]  ;;  %v370_v44 = vshll.u32 %v8025_v46, 16 }
  0x68   :  { %1255 = vmatmul.mubr.bf16.gmra.mrb[8].mxu0 %v7918_v11  ;;  %v359_v2 = vor.u32 %v358_v39, %v354_v63  ;;  %v1836_v63 = vrot.slane %v1803_v56, 1  ;;  %v1837_v30 = vrot.slane %v1804_v57, 1  ;;  %v5821_v39 = vcombine.low %v7969_v52, %v7981_v59 }
  0x69   :  { %1352 = vmatmul.mubr.bf16.gmra.mrb[8].mxu1 %v7957_v35  ;;  %1262 = vmatprep.mubr.bf16.mxu0 %v8020_v27  ;;  %v8047_v8 = vor.u32 %v365_v54, %v361_v28  ;;  %v368_v28 = vshrl.u32 %v8025_v46, 16  ;;  %v372_v59 = vrot.slane %v370_v44, 1  ;;  %v5823_v58 = vcombine.low %v417_v17, %v10470_v25  ;;  %v7384_v17 = vld [vmem:[#allocation5 + $0x170] sm:$0xff]  }
  0x6a   :  { %1359 = vmatprep.mubr.bf16.mxu1 %v5815_v0  ;;  %v8032_v0 = vcombine.low %v7891_v45, %v7924_v13  ;;  %6267 = vmatpush3.bf16.msra.mxu0 %v7369_v38  ;;  %v95_v45 = vld [vmem:[%s10457_s0 + $0x68] sm:$0xf]  ;;  %v96_v13 = vld [vmem:[%s10457_s0 + $0x6c] sm:$0xf]  ;;  %v98_v38 = vld [vmem:[%s10457_s0 + $0x74] sm:$0xf]  ;;  %v8066_v56 = vsel %vm1739_vm0, %v1836_v63, %v1837_v30  ;;  %v1807_v30 = vunpack.c.l.bf16 %v8054_v4 }
  0x6b   :  { %v8049_v34 = vcombine.low %v95_v45, %v96_v13  ;;  %6268 = vmatprep.subr.bf16.mxu0 %v7376_v61  ;;  %6331 = vmatpush3.bf16.msra.mxu1 %v7371_v50  ;;  %v1805_v49 = vunpack.c.l.bf16 %v95_v45  ;;  %v5822_v54 = vcombine.low %v359_v2, %v8047_v8  ;;  %v1865_v52 = vadd.f32 %v8066_v56, %v8036_v5 }
  0x6c   :  { %v1806_v50 = vunpack.c.l.bf16 %v96_v13  ;;  %v8075_v63 = vcombine.low %v8054_v4, %v98_v38  ;;  %v8078_v12 = vor.u32 %v372_v59, %v368_v28  ;;  %v5830_v44 = vcombine.low %v95_v45, %v8054_v4  ;;  %6332 = vmatprep.subr.bf16.mxu1 %v7378_v21 }
  0x6d   :  { %10551 = vst [vmem:[#allocation17_spill] sm:$0xff] %v8049_v34  ;;  %v375_v57 = vshrl.u32 %v8049_v34, 16  ;;  %v1839_v61 = vrot.slane %v1805_v49, 1  ;;  %v1808_v13 = vunpack.c.l.bf16 %v98_v38  ;;  %v8084_v49 = vld [vmem:[%s10457_s0 + $0x78] sm:$0xf]  ;;  %v10476_v28 = vrot.slane %v8049_v34, 1 }
  0x6e   :  { %v1840_v18 = vrot.slane %v1806_v50, 1  ;;  %6269 = vmatpush3.bf16.msra.mxu0 %v7377_v62  ;;  %v100_v38 = vld [vmem:[%s10457_s0 + $0x7c] sm:$0xf]  ;;  %v7385_v62 = vld [vmem:[#allocation5 + $0x130] sm:$0xff]  }
  0x6f   :  { %6333 = vmatpush3.bf16.msra.mxu1 %v7379_v32  ;;  %v1843_v59 = vrot.slane %v1808_v13, 1  ;;  %v8097_v50 = vcombine.low %v8084_v49, %v100_v38  ;;  %v102_v32 = vld [vmem:[%s10457_s0 + $0x84] sm:$0xf]  ;;  %6270 = vmatprep.subr.bf16.mxu0 %v7384_v17  ;;  %v384_v13 = vshll.u32 %v8075_v63, 16  ;;  %v1809_v17 = vunpack.c.l.bf16 %v8084_v49 }
  0x70   :  { %1263 = vmatmul.mubr.bf16.gmra.mrb[12].mxu0 %v8032_v0  ;;  %v8094_v21 = vsel %vm1739_vm0, %v1839_v61, %v1840_v18  ;;  %6334 = vmatprep.subr.bf16.mxu1 %v7386_v1  ;;  %v8142_v1 = vld [vmem:[%s10457_s0 + $0x88] sm:$0xf] }
  0x71   :  { %1360 = vmatmul.mubr.bf16.gmra.mrb[12].mxu1 %v8014_v20  ;;  %1270 = vmatprep.mubr.bf16.mxu0 %v5822_v54  ;;  %v1866_v61 = vadd.f32 %v1865_v52, %v8094_v21  ;;  %v389_v25 = vshrl.u32 %v8097_v50, 16  ;;  %v1810_v20 = vunpack.c.l.bf16 %v100_v38  ;;  %v1845_v35 = vrot.slane %v1809_v17, 1  ;;  %v104_v38 = vld [vmem:[%s10457_s0 + $0x8c] sm:$0xf] }
  0x72   :  { %1367 = vmatprep.mubr.bf16.mxu1 %v5824_v47  ;;  %v377_v47 = vshll.u32 %v8049_v34, 16  ;;  %6271 = vmatpush3.bf16.msra.mxu0 %v7385_v62  ;;  %v8153_v34 = vcombine.low %v8142_v1, %v104_v38  ;;  %v1721_v17 = vunpack.c.l.bf16 %v7936_v19 }
  0x74   :  { %v379_v2 = vrot.slane %v377_v47, 1  ;;  %v1842_v47 = vrot.slane %v1807_v30, 1  ;;  %v8114_v30 = vcombine.low %v7994_v6, %v95_v45  ;;  %v10553_v6 = vrot.slane %v8025_v46, 1  ;;  %10556 = vst [vmem:[#allocation21_spill] sm:$0xff] %v8153_v34 }
  0x76   :  { %v8086_v54 = vor.u32 %v379_v2, %v375_v57  ;;  %v382_v57 = vshrl.u32 %v8075_v63, 16  ;;  %v8103_v2 = vld [vmem:[%s10457_s0 + $0x80] sm:$0xf]  ;;  %v8118_v26 = vsel %vm1739_vm0, %v1842_v47, %v1843_v59  ;;  %v8128_v45 = vcombine.low %v10553_v6, %v10476_v28 }
  0x77   :  { %v1867_v52 = vadd.f32 %v1866_v61, %v8118_v26  ;;  %v7387_v47 = vld [vmem:[#allocation5 + $0x1b0] sm:$0xff]   ;;  %v8132_v43 = vcombine.low %v8103_v2, %v102_v32  ;;  %v1846_v61 = vrot.slane %v1810_v20, 1  ;;  %v5836_v6 = vcombine.low %v8084_v49, %v8103_v2  ;;  %v7393_v20 = vld [vmem:[#allocation5 + $0x1f8] sm:$0xff]  }
  0x78   :  { %v8110_v18 = vcombine.low %v8078_v12, %v8086_v54  ;;  %1271 = vmatmul.mubr.bf16.gmra.mrb[16].mxu0 %v5821_v39  ;;  %10554 = vst [vmem:[#allocation19_spill] sm:$0xff] %v8128_v45  ;;  %v1811_v39 = vunpack.c.l.bf16 %v8103_v2  ;;  %v1812_v28 = vunpack.c.l.bf16 %v102_v32  ;;  %6335 = vmatpush3.bf16.msra.mxu1 %v7387_v47 }
  0x79   :  { %1368 = vmatmul.mubr.bf16.gmra.mrb[16].mxu1 %v5823_v58  ;;  %v391_v58 = vshll.u32 %v8097_v50, 16  ;;  %v1847_v32 = vsel %vm1739_vm0, %v1845_v35, %v1846_v61  ;;  %v398_v35 = vshll.u32 %v8132_v43, 16  ;;  %v405_v61 = vshll.u32 %v8153_v34, 16  ;;  %6336 = vmatprep.subr.bf16.mxu1 %v7393_v20 }
  0x7a   :  { %10552 = vst [vmem:[#allocation18_spill] sm:$0xff] %v8110_v18  ;;  %1375 = vmatprep.mubr.bf16.mxu1 %v5830_v44  ;;  %v386_v44 = vrot.slane %v384_v13, 1  ;;  %1278 = vmatprep.mubr.bf16.mxu0 %v8110_v18  ;;  %v7391_v13 = vld [vmem:[#allocation5 + $0x178] sm:$0xff]   ;;  %v1849_v47 = vrot.slane %v1812_v28, 1  ;;  %v396_v18 = vshrl.u32 %v8132_v43, 16  ;;  %v403_v28 = vshrl.u32 %v8153_v34, 16 }
  0x7b   :  { %v393_v59 = vrot.slane %v391_v58, 1  ;;  %6272 = vmatprep.subr.bf16.mxu0 %v7391_v13  ;;  %v8169_v13 = vld [vmem:[%s10457_s0 + $0x90] sm:$0xf]  ;;  %v10482_v20 = vmov 0.0|0.0  }
  0x7c   :  { %v8135_v62 = vor.u32 %v386_v44, %v382_v57  ;;  %v1848_v57 = vrot.slane %v1811_v39, 1  ;;  %v7392_v44 = vld [vmem:[#allocation5 + $0x138] sm:$0xff]  }
  0x7d   :  { %v8147_v58 = vor.u32 %v393_v59, %v389_v25  ;;  %v1879_v25 = vmax.f32 %v8036_v5, %v1847_v32  ;;  %v1868_v59 = vadd.f32 %v1867_v52, %v1847_v32  ;;  %6273 = vmatpush3.bf16.msra.mxu0 %v7392_v44  ;;  %v7394_v52 = vld [vmem:[#allocation5 + $0x1b8] sm:$0xff]   ;;  %v400_v44 = vrot.slane %v398_v35, 1 }
  0x7e   :  { %10555 = vst [vmem:[#allocation20_spill] sm:$0xff] %v8135_v62  ;;  %v1850_v39 = vsel %vm1739_vm0, %v1848_v57, %v1849_v47  ;;  %v407_v57 = vrot.slane %v405_v61, 1  ;;  %6337 = vmatpush3.bf16.msra.mxu1 %v7394_v52  ;;  %v8176_v47 = vld [vmem:[#allocation5 + $0x200] sm:$0xff]   ;;  %v8195_v61 = vcombine.low %v8054_v4, %v8084_v49  ;;  %v1777_v52 = vadd.f32 %v7950_v33, %v8000_v14 }
  0x7f   :  { %v8158_v16 = vcombine.low %v8135_v62, %v8147_v58  ;;  %v1880_v5 = vmax.f32 %v8066_v56, %v1850_v39  ;;  %v8185_v46 = vor.u32 %v400_v44, %v396_v18  ;;  %6814 = vmatprep.subr.bf16.mxu1 %v10482_v20  ;;  %6539 = vmatprep.subr.bf16.mxu0 %v8176_v47  ;;  %v1813_v18 = vunpack.c.l.bf16 %v8142_v1 }
  0x80   :  { %1279 = vmatmul.mubr.bf16.gmra.mrb[20].mxu0 %v8114_v30  ;;  %v8187_v35 = vor.u32 %v407_v57, %v403_v28  ;;  %10561 = vst [vmem:[#allocation24_spill] sm:$0xff] %v8195_v61  ;;  %v1814_v28 = vunpack.c.l.bf16 %v104_v38  ;;  %v1761_v44 = vrot.slane %v1721_v17, 1  ;;  %v10489_v4 = vrot.slane %v8132_v43, 1 }
  0x81   :  { %1376 = vmatmul.mubr.bf16.gmra.mrb[20].mxu1 %v8128_v45  ;;  %1286 = vmatprep.mubr.bf16.mxu0 %v8158_v16  ;;  %v8174_v32 = vmax.f32 %v1879_v25, %v1880_v5  ;;  %v10557_v45 = vrot.slane %v8097_v50, 1  ;;  %v5842_v25 = vcombine.low %v8142_v1, %v8169_v13  ;;  %v86_v5 = vld [vmem:[%s10457_s0 + $0x44] sm:$0xf]  ;;  %v10488_v49 = vrot.slane %v8153_v34, 1 }
  0x82   :  { %1383 = vmatprep.mubr.bf16.mxu1 %v5836_v6  ;;  %v10558_v6 = vrot.slane %v8075_v63, 1  ;;  %10560 = vst [vmem:[#allocation23_spill] sm:$0xff] %v8187_v35  ;;  %v1722_v57 = vunpack.c.l.bf16 %v86_v5  ;;  %v1851_v20 = vrot.slane %v1813_v18, 1  ;;  %v1815_v17 = vunpack.c.l.bf16 %v8169_v13 }
  0x83   :  { %v8227_v18 = vcombine.low %v8103_v2, %v8142_v1  ;;  %v10562_v34 = vrot.slane %v7812_v41, 1  ;;  %v8243_v2 = vld [vmem:[%s10457_s0 + $0x94] sm:$0xf]  ;;  %v10564_v1 = vmax.f32 %v7864_v31, %v8000_v14  ;;  %v88_v31 = vld [vmem:[%s10457_s0 + $0x4c] sm:$0xf] }
  0x84   :  { %v8183_v56 = vcombine.low %v10558_v6, %v10557_v45  ;;  %v8199_v45 = vcombine.low %v8185_v46, %v8187_v35  ;;  %v1762_v38 = vrot.slane %v1722_v57, 1  ;;  %v1852_v35 = vrot.slane %v1814_v28, 1 }
  0x85   :  { %v5837_v28 = vcombine.low %v8147_v58, %v8185_v46  ;;  %v1854_v62 = vrot.slane %v1815_v17, 1  ;;  %v1816_v41 = vunpack.c.l.bf16 %v8243_v2  ;;  %v10588_v58 = vld [vmem:[#allocation12_spill] sm:$0xff] }
  0x86   :  { %10559 = vst [vmem:[#allocation22_spill] sm:$0xff] %v8183_v56  ;;  %v1763_v6 = vsel %vm1739_vm0, %v1761_v44, %v1762_v38  ;;  %v1853_v33 = vsel %vm1739_vm0, %v1851_v20, %v1852_v35 }
  0x87   :  { %v1790_v57 = vmax.f32 %v7897_v48, %v1763_v6  ;;  %v1895_v48 = vld [vmem:[%s10461_s4] sm:$0xff]  ;;  %v1855_v35 = vrot.slane %v1816_v41, 1  ;;  %v1881_v20 = vmax.f32 %v8094_v21, %v1853_v33  ;;  %v1898_v21 = vld [vmem:[%s10461_s4 + $0x18] sm:$0xff] }
  0x88   :  { %1287 = vmatmul.mubr.bf16.gmra.mrb[24].mxu0 %v8195_v61  ;;  %v1869_v61 = vadd.f32 %v1868_v59, %v1850_v39 }
  0x89   :  { %1384 = vmatmul.mubr.bf16.gmra.mrb[24].mxu1 %v8183_v56  ;;  %1294 = vmatprep.mubr.bf16.mxu0 %v8199_v45  ;;  %v1778_v56 = vadd.f32 %v1777_v52, %v1763_v6  ;;  %v1792_v59 = vmax.f32 %v10564_v1, %v1790_v57  ;;  %v8265_v52 = vcombine.low %v7936_v19, %v86_v5  ;;  %v1899_v1 = vld [vmem:[%s10461_s4 + $0x20] sm:$0xff] }
  0x8a   :  { %1391 = vmatprep.mubr.bf16.mxu1 %v5842_v25  ;;  %v8221_v25 = vcombine.low %v10489_v4, %v10488_v49  ;;  %v10563_v49 = vrot.slane %v7809_v40, 1  ;;  %v8252_v40 = vld [vmem:[%s10457_s0 + $0x48] sm:$0xf]  ;;  %v1870_v14 = vadd.f32 %v1869_v61, %v1853_v33  ;;  %v1856_v38 = vsel %vm1739_vm0, %v1854_v62, %v1855_v35 }
  0x8b   :  { %v1779_v39 = vrot.slane %v1778_v56, 4  ;;  %v8268_v6 = vcombine.low %v8252_v40, %v88_v31  ;;  %v5798_v61 = vcombine.low %v7828_v3, %v7861_v29  ;;  %v10565_v33 = vrot.slane %v7857_v23, 1 }
  0x8c   :  { %v5799_v4 = vcombine.low %v10563_v49, %v10562_v34  ;;  %v1896_v34 = vld [vmem:[%s10461_s4 + $0x8] sm:$0xff]  ;;  %v1871_v5 = vadd.f32 %v1870_v14, %v1856_v38  ;;  %v10566_v62 = vrot.slane %v7847_v10, 1  ;;  %v436_v3 = vshrl.u32 %v8265_v52, 16 }
  0x8d   :  { %v1780_v44 = vadd.f32 %v1779_v39, %v1778_v56  ;;  %v6815_v49 = vpack.c.bf16 %v1896_v34, %v1895_v48  ;;  %v1882_v56 = vmax.f32 %v8118_v26, %v1856_v38  ;;  %v7396_v48 = vld [vmem:[#allocation5 + $0x208] sm:$0xff]   ;;  %v1900_v26 = vld [vmem:[%s10461_s4 + $0x28] sm:$0xff]  ;;  %v464_v31 = vshll.u32 %v8268_v6, 16  ;;  %v7397_v39 = vld [vmem:[#allocation5 + $0x210] sm:$0xff]  }
  0x8e   :  { %v5805_v57 = vcombine.low %v10566_v62, %v10565_v33  ;;  %v1872_v41 = vrot.slane %v1871_v5, 4  ;;  %v10567_v14 = vmov 0.0|0.0  }
  0x8f   :  { %v1884_v10 = vmax.f32 %v1881_v20, %v1882_v56 }
  0x90   :  { %1295 = vmatmul.mubr.bf16.gmra.mrb[28].mxu0 %v8227_v18  ;;  %v1873_v38 = vadd.f32 %v1872_v41, %v1871_v5  ;;  %v6821_v5 = vpack.c.bf16 %v1900_v26, %v1899_v1 }
  0x91   :  { %1392 = vmatmul.mubr.bf16.gmra.mrb[28].mxu1 %v8221_v25  ;;  %1432 = vmatprep.mubr.bf16.mxu0 %v5799_v4  ;;  %v1781_v4 = vrot.slane %v1780_v44, 2 }
  0x92   :  { %1529 = vmatprep.mubr.bf16.mxu1 %v7902_v53  ;;  %v1793_v53 = vmax.f32 %v7962_v51, %v1792_v59  ;;  %v1897_v51 = vld [vmem:[%s10461_s4 + $0x10] sm:$0xff]  ;;  %v438_v59 = vshll.u32 %v8265_v52, 16 }
  0x93   :  { %v1782_v23 = vadd.f32 %v1781_v4, %v1780_v44  ;;  %v6818_v34 = vpack.c.bf16 %v1898_v21, %v1897_v51  ;;  %v1874_v51 = vrot.slane %v1873_v38, 2 }
  0x94   :  { %v1794_v17 = vrot.slane %v1793_v53, 4  ;;  %v440_v44 = vrot.slane %v438_v59, 1 }
  0x95   :  { %v1783_v35 = vrot.slane %v1782_v23, 1  ;;  %v1875_v33 = vadd.f32 %v1874_v51, %v1873_v38  ;;  %v1905_v38 = vld [vmem:[%s10461_s4 + $0x50] sm:$0xff] }
  0x96   :  { %v1795_v29 = vmax.f32 %v1793_v53, %v1794_v17  ;;  %v462_v53 = vshrl.u32 %v8268_v6, 16  ;;  %v1885_v17 = vmax.f32 %v8174_v32, %v1884_v10  ;;  %v466_v32 = vrot.slane %v464_v31, 1 }
  0x97   :  { %v1876_v26 = vrot.slane %v1875_v33, 1 }
  0x98   :  { %1433 = vmatmul.mubr.bf16.vlgmr.msra.gmra.mrb[32].mxu0 %v5798_v61  ;;  %v1784_v61 = vadd.f32 %v1783_v35, %v1782_v23  ;;  %v1886_v21 = vrot.slane %v1885_v17, 4  ;;  %v7401_v23 = vld [vmem:[#allocation5 + $0x218] sm:$0xff]  }
  0x99   :  { %1530 = vmatmul.mubr.bf16.vlgmr.msra.gmra.mrb[32].mxu1 %v7869_v37  ;;  %v1796_v37 = vrot.slane %v1795_v29, 2  ;;  %6540 = vmatpush3.bf16.msra.mxu0 %v8176_v47  ;;  %v5804_v47 = vcombine.low %v7877_v42, %v7914_v7  ;;  %v441_v42 = vor.u32 %v440_v44, %v436_v3  ;;  %v467_v7 = vor.u32 %v466_v32, %v462_v53  ;;  %v7402_v3 = vld [vmem:[#allocation5 + $0x220] sm:$0xff]  }
  0x9a   :  { %6816 = vmatpush3.bf16.msra.mxu1 %v6815_v49  ;;  %1537 = vmatprep.mubr.bf16.mxu1 %v7945_v24  ;;  %v1901_v24 = vld [vmem:[%s10461_s4 + $0x30] sm:$0xff]  ;;  %v1902_v49 = vld [vmem:[%s10461_s4 + $0x38] sm:$0xff]  ;;  %v1786_v4 = vmul.f32 0.015625, %v1784_v61  ;;  %v1887_v62 = vmax.f32 %v1885_v17, %v1886_v21  ;;  %v5810_v17 = vcombine.low %v7927_v15, %v7975_v55  ;;  %v1907_v55 = vld [vmem:[%s10461_s4 + $0x60] sm:$0xff] }
  0x9b   :  { %6817 = vmatprep.subr.bf16.mxu1 %v10567_v14  ;;  %1440 = vmatprep.mubr.bf16.mxu0 %v5805_v57  ;;  %v1797_v20 = vmax.f32 %v1795_v29, %v1796_v37  ;;  %v10568_v57 = vrot.slane %v7908_v60, 1  ;;  %v10569_v29 = vrot.slane %v7885_v36, 1  ;;  %v6824_v1 = vpack.c.bf16 %v1902_v49, %v1901_v24  ;;  %v1903_v60 = vld [vmem:[%s10461_s4 + $0x40] sm:$0xff]  ;;  %v1904_v36 = vld [vmem:[%s10461_s4 + $0x48] sm:$0xff]  ;;  %v7403_v49 = vld [vmem:[#allocation5 + $0x228] sm:$0xff]  }
  0x9c   :  { %6541 = vmatprep.subr.bf16.mxu0 %v7396_v48  ;;  %v1888_v10 = vrot.slane %v1887_v62, 2  ;;  %v5819_v53 = vcombine.low %v441_v42, %v467_v7  ;;  %v6827_v35 = vpack.c.bf16 %v1904_v36, %v1903_v60  ;;  %v7404_v21 = vld [vmem:[#allocation5 + $0x230] sm:$0xff]   ;;  %v1909_v32 = vld [vmem:[%s10461_s4 + $0x70] sm:$0xff] }
  0x9d   :  { %v1798_v56 = vrot.slane %v1797_v20, 1  ;;  %6542 = vmatpush3.bf16.msra.mxu0 %v7396_v48  ;;  %v5811_v59 = vcombine.low %v10569_v29, %v10568_v57  ;;  %v7408_v57 = vld [vmem:[#allocation5 + $0x238] sm:$0xff]   ;;  %v10575_v29 = vld [vmem:[#allocation18_spill] sm:$0xff] }
  0x9e   :  { %6819 = vmatpush3.bf16.msra.mxu1 %v6818_v34  ;;  %6543 = vmatprep.subr.bf16.mxu0 %v7397_v39  ;;  %v1889_v34 = vmax.f32 %v1887_v62, %v1888_v10  ;;  %v10573_v62 = vld [vmem:[#allocation14_spill] sm:$0xff]  ;;  %v10576_v10 = vrot.slane %v8075_v63, 1 }
  0x9f   :  { %6820 = vmatprep.subr.bf16.mxu1 %v10567_v14  ;;  %v1799_v41 = vmax.f32 %v1797_v20, %v1798_v56  ;;  %v10570_v20 = vrot.slane %v7940_v22, 1  ;;  %v1908_v22 = vld [vmem:[%s10461_s4 + $0x68] sm:$0xff]  ;;  %v5816_v56 = vcombine.low %v7997_v9, %v441_v42  ;;  %v107_v9 = vld [vmem:[%s10457_s0 + $0x98] sm:$0xf] }
  0xa0   :  { %1441 = vmatmul.mubr.bf16.gmra.mrb[36].mxu0 %v5804_v47  ;;  %v1890_v37 = vrot.slane %v1889_v34, 1  ;;  %v1910_v47 = vld [vmem:[%s10461_s4 + $0x78] sm:$0xff] }
  0xa1   :  { %1538 = vmatmul.mubr.bf16.gmra.mrb[36].mxu1 %v7918_v11  ;;  %v1800_v48 = vadd.f32 %v1799_v41, %v1786_v4  ;;  %v1877_v11 = vadd.f32 %v1876_v26, %v1875_v33  ;;  %1448 = vmatprep.mubr.bf16.mxu0 %v5811_v59  ;;  %v10571_v4 = vld [vmem:[#allocation16_spill] sm:$0xff]  ;;  %v6836_v59 = vpack.c.bf16 %v1910_v47, %v1909_v32  ;;  %v10491_v26 = vmov 0   ;;  %v10577_v42 = vld [vmem:[#allocation17_spill] sm:$0xff]  ;;  %v7413_v47 = vld [vmem:[#allocation7 + $0x10] sm:$0xff]  }
  0xa2   :  { %1545 = vmatprep.mubr.bf16.mxu1 %v8020_v27  ;;  %6822 = vmatpush3.bf16.msra.mxu1 %v6821_v5  ;;  %v449_v27 = vrot.slane %v8265_v52, 1  ;;  %v1891_v24 = vmax.f32 %v1889_v34, %v1890_v37  ;;  %v6833_v5 = vpack.c.bf16 %v1908_v22, %v1907_v55  ;;  %v10572_v33 = vrot.slane %v10571_v4, 1  ;;  %v8417_v22 = vld [vmem:[#allocation7 + $0x80] sm:$0xff]   ;;  %v8424_v32 = vld [vmem:[#allocation7 + $0x88] sm:$0xff]   ;;  %v8432_v4 = vld [vmem:[#allocation7 + $0x90] sm:$0xff]  }
  0xa3   :  { %6823 = vmatprep.subr.bf16.mxu1 %v10567_v14  ;;  %6544 = vmatpush3.bf16.msra.mxu0 %v7397_v39  ;;  %v1878_v31 = vmul.f32 0.015625, %v1877_v11  ;;  %v1906_v39 = vld [vmem:[%s10461_s4 + $0x58] sm:$0xff]  ;;  %v8369_v41 = vcombine.low %v8169_v13, %v8243_v2  ;;  %v10578_v7 = vrot.slane %v10577_v42, 1  ;;  %v7417_v52 = vld [vmem:[#allocation7 + $0x20] sm:$0xff]  }
  0xa4   :  { %6545 = vmatprep.subr.bf16.mxu0 %v7401_v23  ;;  %v5817_v44 = vcombine.low %v10570_v20, %v449_v27  ;;  %v6830_v15 = vpack.c.bf16 %v1906_v39, %v1905_v38  ;;  %v10587_v20 = vld [vmem:[#allocation23_spill] sm:$0xff]  ;;  %v8471_v42 = vld [vmem:[#allocation7 + $0xc0] sm:$0xff]  }
  0xa5   :  { %v1892_v61 = vadd.f32 %v1891_v24, %v1878_v31  ;;  %v5832_v60 = vcombine.low %v10578_v7, %v10576_v10  ;;  %v445_v2 = vshll.u32 %v8369_v41, 16  ;;  %v443_v63 = vshrl.u32 %v8369_v41, 16  ;;  %v10582_v31 = vld [vmem:[#allocation24_spill] sm:$0xff]  ;;  %v7427_v7 = vld [vmem:[#allocation7 + $0x48] sm:$0xff]  }
  0xa6   :  { %6825 = vmatpush3.bf16.msra.mxu1 %v6824_v1  ;;  %v5845_v24 = vcombine.low %v8169_v13, %v107_v9  ;;  %v8460_v10 = vld [vmem:[#allocation2 + $0xc] sm:$0xff]  }
  0xa7   :  { %6826 = vmatprep.subr.bf16.mxu1 %v10567_v14  ;;  %6546 = vmatpush3.bf16.msra.mxu0 %v7401_v23  ;;  %v8343_v51 = vsel %vm1893_vm1, %v1800_v48, %v1892_v61  ;;  %v108_v23 = vld [vmem:[%s10457_s0 + $0x9c] sm:$0xf]  ;;  %v10579_v48 = vcombine.low %v8047_v8, %v8078_v12  ;;  %v447_v36 = vrot.slane %v445_v2, 1  ;;  %v10583_v12 = vld [vmem:[#allocation20_spill] sm:$0xff]  ;;  %v7429_v2 = vld [vmem:[#allocation7 + $0x50] sm:$0xff]  }
  0xa8   :  { %6547 = vmatprep.subr.bf16.mxu0 %v7402_v3  ;;  %1449 = vmatmul.mubr.bf16.gmra.mrb[40].mxu0 %v5810_v17  ;;  %v8371_v1 = vcombine.low %v107_v9, %v108_v23  ;;  %v10584_v8 = vcombine.low %v8086_v54, %v10583_v12  ;;  %v8398_v17 = vld [vmem:[#allocation2] sm:$0xff]  }
  0xa9   :  { %1546 = vmatmul.mubr.bf16.gmra.mrb[40].mxu1 %v8032_v0  ;;  %1456 = vmatprep.mubr.bf16.mxu0 %v5817_v44  ;;  %v5818_v0 = vcombine.low %v7936_v19, %v8252_v40  ;;  %v10574_v19 = vrot.slane %v10573_v62, 1  ;;  %v448_v37 = vor.u32 %v447_v36, %v443_v63  ;;  %v2279_v54 = vshll.u32 %v8398_v17, 16  ;;  %v10591_v62 = vld [vmem:[#allocation19_spill] sm:$0xff]  ;;  %v7421_v9 = vld [vmem:[#allocation7 + $0x30] sm:$0xff]   ;;  %v7433_v36 = vld [vmem:[#allocation7 + $0x60] sm:$0xff]  }
  0xaa   :  { %1553 = vmatprep.mubr.bf16.mxu1 %v5819_v53  ;;  %6828 = vmatpush3.bf16.msra.mxu1 %v6827_v35  ;;  %v469_v11 = vshrl.u32 %v8371_v1, 16  ;;  %v450_v35 = vrot.slane %v8369_v41, 1  ;;  %v8457_v23 = vld [vmem:[#allocation7 + $0xb0] sm:$0xff]   ;;  %v7425_v41 = vld [vmem:[#allocation7 + $0x40] sm:$0xff]   ;;  %v8486_v63 = vld [vmem:[#allocation7 + $0xd8] sm:$0xff]  }
  0xab   :  { %6829 = vmatprep.subr.bf16.mxu1 %v10567_v14  ;;  %6548 = vmatpush3.bf16.msra.mxu0 %v7402_v3  ;;  %v5826_v40 = vcombine.low %v10574_v19, %v10572_v33  ;;  %v10581_v3 = vrot.slane %v8097_v50, 1  ;;  %v5843_v44 = vcombine.low %v10587_v20, %v448_v37  ;;  %v2281_v61 = vrot.slane %v2279_v54, 1  ;;  %v8437_v33 = vld [vmem:[#allocation7 + $0x98] sm:$0xff]   ;;  %v7419_v19 = vld [vmem:[#allocation7 + $0x28] sm:$0xff]   ;;  %v8511_v54 = vld [vmem:[#allocation2 + $0x20] ss:$0 sps:$4 sm:$0xff]  }
  0xac   :  { %6549 = vmatprep.subr.bf16.mxu0 %v7403_v49  ;;  %v2693_v20 = vrot.slane %v8398_v17, 1 }
  0xae   :  { %6831 = vmatpush3.bf16.msra.mxu1 %v6830_v15 }
  0xaf   :  { %6832 = vmatprep.subr.bf16.mxu1 %v10567_v14  ;;  %6550 = vmatpush3.bf16.msra.mxu0 %v7403_v49  ;;  %v2277_v49 = vshrl.u32 %v8398_v17, 16 }
  0xb0   :  { %6551 = vmatprep.subr.bf16.mxu0 %v7404_v21  ;;  %1457 = vmatmul.mubr.bf16.gmra.mrb[44].mxu0 %v5816_v56  ;;  %v10590_v56 = vld [vmem:[#allocation15_spill] sm:$0xff] }
  0xb1   :  { %1554 = vmatmul.mubr.bf16.gmra.mrb[44].mxu1 %v5818_v0  ;;  %1464 = vmatprep.mubr.bf16.mxu0 %v5826_v40  ;;  %v2282_v55 = vor.u32 %v2281_v61, %v2277_v49  ;;  %v7411_v0 = vld [vmem:[#allocation7 + $0x8] sm:$0xff]   ;;  %v10592_v40 = vld [vmem:[#allocation22_spill] sm:$0xff] }
  0xb2   :  { %1561 = vmatprep.mubr.bf16.mxu1 %v10575_v29  ;;  %6834 = vmatpush3.bf16.msra.mxu1 %v6833_v5  ;;  %v475_v5 = vrot.slane %v8268_v6, 1  ;;  %v7415_v6 = vld [vmem:[#allocation7 + $0x18] sm:$0xff]   ;;  %v8450_v29 = vld [vmem:[#allocation7 + $0xa8] sm:$0xff]  }
  0xb3   :  { %6835 = vmatprep.subr.bf16.mxu1 %v10567_v14  ;;  %6552 = vmatpush3.bf16.msra.mxu0 %v7404_v21  ;;  %v471_v14 = vshll.u32 %v8371_v1, 16  ;;  %v10589_v21 = vld [vmem:[#allocation13_spill] sm:$0xff]  ;;  %v8519_v61 = vld [vmem:[#allocation2 + $0x24] sm:$0xff]  }
  0xb4   :  { %6553 = vmatprep.subr.bf16.mxu0 %v7408_v57 }
  0xb5   :  { %v473_v34 = vrot.slane %v471_v14, 1  ;;  %v8481_v14 = vld [vmem:[#allocation7 + $0xd0] sm:$0xff]  }
  0xb6   :  { %6837 = vmatpush3.bf16.msra.mxu1 %v6836_v59 }
  0xb7   :  { %3506 = vmatprep.subr.bf16.mxu1 %v10491_v26  ;;  %6554 = vmatpush3.bf16.msra.mxu0 %v7408_v57  ;;  %v474_v53 = vor.u32 %v473_v34, %v469_v11  ;;  %v476_v57 = vrot.slane %v8371_v1, 1  ;;  %v7423_v1 = vld [vmem:[#allocation7 + $0x38] sm:$0xff]   ;;  %v8491_v11 = vld [vmem:[#allocation7 + $0xe0] sm:$0xff]   ;;  %v7435_v34 = vld [vmem:[#allocation7 + $0x68] sm:$0xff]  }
  0xb8   :  { %3795 = vmatprep.subr.bf16.mxu0 %v10491_v26  ;;  %1465 = vmatmul.mubr.bf16.gmra.mrb[48].mxu0 %v10579_v48  ;;  %v7431_v48 = vld [vmem:[#allocation7 + $0x58] sm:$0xff]  }
  0xb9   :  { %1562 = vmatmul.mubr.bf16.gmra.mrb[48].mxu1 %v8114_v30  ;;  %1472 = vmatprep.mubr.bf16.mxu0 %v5832_v60  ;;  %v10580_v30 = vrot.slane %v8132_v43, 1  ;;  %v5846_v38 = vcombine.low %v448_v37, %v474_v53  ;;  %v10585_v43 = vld [vmem:[#allocation21_spill] sm:$0xff]  ;;  %v5847_v59 = vcombine.low %v450_v35, %v476_v57  ;;  %v2289_v37 = vshrl.u32 %v8460_v10, 16 }
  0xba   :  { %1569 = vmatprep.mubr.bf16.mxu1 %v8158_v16  ;;  %v10586_v50 = vrot.slane %v10585_v43, 1  ;;  %v8476_v60 = vld [vmem:[#allocation7 + $0xc8] sm:$0xff]   ;;  %v8508_v43 = vld [vmem:[#allocation7 + $0xf8] sm:$0xff]  }
  0xbb   :  { %v5838_v16 = vcombine.low %v10581_v3, %v10580_v30  ;;  %v7445_v30 = vld [vmem:[#allocation2 + $0x14] ss:$0 sps:$4 sm:$0xff]   ;;  %v2291_v3 = vshll.u32 %v8460_v10, 16  ;;  %v8501_v53 = vld [vmem:[#allocation2 + $0x18] sm:$0xff]  }
  0xbc   :  { %v5844_v39 = vcombine.low %v10586_v50, %v450_v35  ;;  %v8505_v35 = vld [vmem:[#allocation7 + $0xf0] sm:$0xff]   ;;  %v2301_v49 = vshrl.u32 %v8501_v53, 16 }
  0xbd   :  { %v2293_v12 = vrot.slane %v2291_v3, 1 }
  0xbf   :  { %v2294_v50 = vor.u32 %v2293_v12, %v2289_v37  ;;  %v2702_v37 = vrot.slane %v8519_v61, 1  ;;  %v7459_v12 = vld [vmem:[#allocation7 + $0x128] sm:$0xff]  }
  0xc0   :  { %1473 = vmatmul.mubr.bf16.gmra.mrb[52].mxu0 %v10584_v8  ;;  %v2296_v8 = vshll.u32 %v7445_v30, 16 }
  0xc1   :  { %1570 = vmatmul.mubr.bf16.gmra.mrb[52].mxu1 %v10582_v31  ;;  %1480 = vmatprep.mubr.bf16.mxu0 %v5838_v16  ;;  %v8497_v16 = vld [vmem:[#allocation7 + $0xe8] sm:$0xff]   ;;  %v7437_v31 = vld [vmem:[#allocation7 + $0x70] sm:$0xff]  }
  0xc2   :  { %1577 = vmatprep.mubr.bf16.mxu1 %v8199_v45  ;;  %v8405_v45 = vld [vmem:[#allocation2 + $0x8] ss:$0 sps:$4 sm:$0xff]  }
  0xc3   :  { %v2284_v15 = vshll.u32 %v8405_v45, 16 }
  0xc5   :  { %v2286_v46 = vrot.slane %v2284_v15, 1  ;;  %v7444_v15 = vld [vmem:[#allocation7 + $0x100] sm:$0xff]  }
  0xc7   :  { %v2287_v13 = vsel %vm2275_vm3, %v2282_v55, %v2286_v46  ;;  %v2308_v46 = vshll.u32 %v8511_v54, 16 }
  0xc8   :  { %1481 = vmatmul.mubr.bf16.gmra.mrb[56].mxu0 %v5837_v28  ;;  %v7409_v28 = vld [vmem:[#allocation7] sm:$0xff]  }
  0xc9   :  { %1578 = vmatmul.mubr.bf16.gmra.mrb[56].mxu1 %v8227_v18  ;;  %1488 = vmatprep.mubr.bf16.mxu0 %v5844_v39  ;;  %v7685_v18 = vmov 0.0   ;;  %v2298_v39 = vrot.slane %v2296_v8, 1 }
  0xca   :  { %1585 = vmatprep.mubr.bf16.mxu1 %v5846_v38  ;;  %v7439_v38 = vld [vmem:[#allocation7 + $0x78] sm:$0xff]  }
  0xd0   :  { %1489 = vmatmul.mubr.bf16.gmra.mrb[60].mxu0 %v5843_v44  ;;  %v2694_v44 = vrot.slane %v8405_v45, 1 }
  0xd1   :  { %1586 = vmatmul.mubr.bf16.gmra.mrb[60].mxu1 %v5845_v24  ;;  %6555 = vmatprep.mubr.bf16.mxu0 %v10588_v58  ;;  %v2303_v24 = vshll.u32 %v8501_v53, 16 }
  0xd2   :  { %6603 = vmatprep.mubr.msk.f32.mxu1 %vm7684_vm2, %v7685_v18  ;;  %v8523_v18 = vsel %vm2275_vm3, %v2294_v50, %v2298_v39  ;;  %v2695_v45 = vsel %vm1739_vm0, %v2693_v20, %v2694_v44 }
  0xd3   :  { %v2305_v55 = vrot.slane %v2303_v24, 1 }
  0xd5   :  { %v2306_v58 = vor.u32 %v2305_v55, %v2301_v49  ;;  %v8600_v55 = vld [vmem:[#allocation2 + $0x48] sm:$0xff]  }
  0xd8   :  { %6556 = vmatmul.mubr.bf16.vlgmr.msra.gmra.mrb[64].mxu0 %v10589_v21  ;;  %v2697_v21 = vrot.slane %v7445_v30, 1  ;;  %v8581_v30 = vld [vmem:[#allocation2 + $0x44] ss:$0 sps:$4 sm:$0xff]  }
  0xd9   :  { %6604 = vmatmul.mubr.f32.vlgmr.msra.gmra.mrb[64].mxu1 %v8343_v51  ;;  %3796 = vmatpush1.bf16.msra.mxu0 %v8417_v22  ;;  %v5820_v51 = vcombine.low %v449_v27, %v475_v5  ;;  %v8443_v27 = vld [vmem:[#allocation7 + $0xa0] sm:$0xff]   ;;  %v7447_v5 = vld [vmem:[#allocation7 + $0x108] sm:$0xff]  }
  0xda   :  { %3507 = vmatpush1.bf16.msra.mxu1 %v7409_v28  ;;  %3538 = vmatprep.mubr.bf16.mxu1 %v2287_v13  ;;  %v2310_v28 = vrot.slane %v2308_v46, 1  ;;  %v8533_v13 = vld [vmem:[#allocation2 + $0x2c] ss:$0 sps:$4 sm:$0xff]  }
  0xdb   :  { %3508 = vmatprep.subr.bf16.mxu1 %v10491_v26  ;;  %6559 = vmatprep.mubr.bf16.mxu0 %v10590_v56  ;;  %v2313_v56 = vshrl.u32 %v8519_v61, 16 }
  0xdc   :  { %3797 = vmatprep.subr.bf16.mxu0 %v10491_v26 }
  0xdd   :  { %3798 = vmatpush1.bf16.msra.mxu0 %v8424_v32 }
  0xde   :  { %3509 = vmatpush1.bf16.msra.mxu1 %v7411_v0  ;;  %3799 = vmatprep.subr.bf16.mxu0 %v10491_v26  ;;  %v2315_v0 = vshll.u32 %v8519_v61, 16 }
  0xdf   :  { %3510 = vmatprep.subr.bf16.mxu1 %v10491_v26 }
  0xe0   :  { %6560 = vmatmul.mubr.bf16.gmra.mrb[68].mxu0 %v5820_v51  ;;  %v2320_v51 = vshll.u32 %v8533_v13, 16 }
  0xe1   :  { %3800 = vmatpush1.bf16.msra.mxu0 %v8432_v4  ;;  %6563 = vmatprep.mubr.bf16.mxu0 %v10591_v62 }
  0xe2   :  { %3511 = vmatpush1.bf16.msra.mxu1 %v7413_v47  ;;  %3801 = vmatprep.subr.bf16.mxu0 %v10491_v26  ;;  %v2317_v47 = vrot.slane %v2315_v0, 1 }
  0xe3   :  { %3512 = vmatprep.subr.bf16.mxu1 %v10491_v26 }
  0xe5   :  { %3802 = vmatpush1.bf16.msra.mxu0 %v8437_v33 }
  0xe6   :  { %3513 = vmatpush1.bf16.msra.mxu1 %v7415_v6  ;;  %3803 = vmatprep.subr.bf16.mxu0 %v10491_v26  ;;  %v8545_v6 = vld [vmem:[#allocation2 + $0x30] sm:$0xff]  }
  0xe7   :  { %3514 = vmatprep.subr.bf16.mxu1 %v10491_v26  ;;  %v2327_v57 = vshll.u32 %v8545_v6, 16 }
  0xe8   :  { %6564 = vmatmul.mubr.bf16.gmra.mrb[72].mxu0 %v10592_v40  ;;  %v8556_v40 = vld [vmem:[#allocation2 + $0x38] ss:$0 sps:$4 sm:$0xff]  }
  0xe9   :  { %3804 = vmatpush1.bf16.msra.mxu0 %v8443_v27  ;;  %6567 = vmatprep.mubr.bf16.mxu0 %v8221_v25  ;;  %v8465_v25 = vld [vmem:[#allocation7 + $0xb8] sm:$0xff]  }
  0xea   :  { %3515 = vmatpush1.bf16.msra.mxu1 %v7417_v52  ;;  %3805 = vmatprep.subr.bf16.mxu0 %v10491_v26  ;;  %v7450_v52 = vld [vmem:[#allocation7 + $0x110] sm:$0xff]  }
  0xeb   :  { %3516 = vmatprep.subr.bf16.mxu1 %v10491_v26 }
  0xed   :  { %3806 = vmatpush1.bf16.msra.mxu0 %v8450_v29 }
  0xee   :  { %3517 = vmatpush1.bf16.msra.mxu1 %v7419_v19  ;;  %3807 = vmatprep.subr.bf16.mxu0 %v10491_v26  ;;  %v2322_v19 = vrot.slane %v2320_v51, 1 }
  0xef   :  { %3518 = vmatprep.subr.bf16.mxu1 %v10491_v26 }
  0xf0   :  { %6568 = vmatmul.mubr.bf16.gmra.mrb[76].mxu0 %v5847_v59  ;;  %v2700_v59 = vrot.slane %v8511_v54, 1 }
  0xf1   :  { %3808 = vmatpush1.bf16.msra.mxu0 %v8457_v23  ;;  %3827 = vmatprep.mubr.bf16.mxu0 %v8460_v10 }
  0xf2   :  { %3519 = vmatpush1.bf16.msra.mxu1 %v7421_v9  ;;  %3809 = vmatprep.subr.bf16.mxu0 %v10491_v26  ;;  %v2699_v9 = vrot.slane %v8501_v53, 1 }
  0xf3   :  { %3520 = vmatprep.subr.bf16.mxu1 %v10491_v26 }
  0xf5   :  { %3810 = vmatpush1.bf16.msra.mxu0 %v8465_v25 }
  0xf6   :  { %3521 = vmatpush1.bf16.msra.mxu1 %v7423_v1  ;;  %3811 = vmatprep.subr.bf16.mxu0 %v10491_v26  ;;  %v7453_v1 = vld [vmem:[#allocation7 + $0x118] sm:$0xff]  }
  0xf7   :  { %3522 = vmatprep.subr.bf16.mxu1 %v10491_v26 }
  0xf9   :  { %3812 = vmatpush1.bf16.msra.mxu0 %v8471_v42 }
  0xfa   :  { %3523 = vmatpush1.bf16.msra.mxu1 %v7425_v41  ;;  %3813 = vmatprep.subr.bf16.mxu0 %v10491_v26  ;;  %v2329_v41 = vrot.slane %v2327_v57, 1 }
  0xfb   :  { %3524 = vmatprep.subr.bf16.mxu1 %v10491_v26 }
  0xfd   :  { %3814 = vmatpush1.bf16.msra.mxu0 %v8476_v60 }
  0xfe   :  { %3525 = vmatpush1.bf16.msra.mxu1 %v7427_v7  ;;  %3815 = vmatprep.subr.bf16.mxu0 %v10491_v26  ;;  %v2332_v7 = vshll.u32 %v8556_v40, 16 }
  0xff   :  { %3526 = vmatprep.subr.bf16.mxu1 %v10491_v26 }
 0x101   :  { %3816 = vmatpush1.bf16.msra.mxu0 %v8481_v14 }
 0x102   :  { %3527 = vmatpush1.bf16.msra.mxu1 %v7429_v2  ;;  %3817 = vmatprep.subr.bf16.mxu0 %v10491_v26  ;;  %v8570_v2 = vld [vmem:[#allocation2 + $0x3c] sm:$0xff]  }
 0x103   :  { %3528 = vmatprep.subr.bf16.mxu1 %v10491_v26  ;;  %v2339_v3 = vshll.u32 %v8570_v2, 16  ;;  %v2337_v44 = vshrl.u32 %v8570_v2, 16 }
 0x105   :  { %3818 = vmatpush1.bf16.msra.mxu0 %v8486_v63  ;;  %v2341_v49 = vrot.slane %v2339_v3, 1  ;;  %v8631_v3 = vld [vmem:[#allocation2 + $0x54] sm:$0xff]  }
 0x106   :  { %3529 = vmatpush1.bf16.msra.mxu1 %v7431_v48  ;;  %3819 = vmatprep.subr.bf16.mxu0 %v10491_v26  ;;  %v8574_v48 = vsel %vm1739_vm0, %v2699_v9, %v2700_v59 }
 0x107   :  { %3530 = vmatprep.subr.bf16.mxu1 %v10491_v26  ;;  %10595 = vst [vmem:[#allocation18_spill] sm:$0xff] %v8574_v48 }
 0x109   :  { %3820 = vmatpush1.bf16.msra.mxu0 %v8491_v11 }
 0x10a   :  { %3531 = vmatpush1.bf16.msra.mxu1 %v7433_v36  ;;  %3821 = vmatprep.subr.bf16.mxu0 %v10491_v26  ;;  %v7456_v36 = vld [vmem:[#allocation7 + $0x120] sm:$0xff]  }
 0x10b   :  { %3532 = vmatprep.subr.bf16.mxu1 %v10491_v26 }
 0x10d   :  { %3822 = vmatpush1.bf16.msra.mxu0 %v8497_v16 }
 0x10e   :  { %3533 = vmatpush1.bf16.msra.mxu1 %v7435_v34  ;;  %3823 = vmatprep.subr.bf16.mxu0 %v10491_v26  ;;  %v2334_v34 = vrot.slane %v2332_v7, 1 }
 0x10f   :  { %3534 = vmatprep.subr.bf16.mxu1 %v10491_v26 }
 0x111   :  { %3824 = vmatpush1.bf16.msra.mxu0 %v8505_v35 }
 0x112   :  { %3535 = vmatpush1.bf16.msra.mxu1 %v7437_v31  ;;  %3825 = vmatprep.subr.bf16.mxu0 %v10491_v26 }
 0x113   :  { %3536 = vmatprep.subr.bf16.mxu1 %v10491_v26 }
 0x115   :  { %3826 = vmatpush1.bf16.msra.mxu0 %v8508_v43 }
 0x116   :  { %3537 = vmatpush1.bf16.msra.mxu1 %v7439_v38  ;;  %4084 = vmatprep.subr.bf16.mxu0 %v10491_v26  ;;  %v8592_v38 = vld [vmem:[%s10462_s5 + $0x2] ss:$0 sm:$0xff] }
 0x117   :  { %6870 = vmatprep.subr.bf16.mxu1 %v10491_v26 }
 0x118   :  { %3828 = vmatmul.mubr.bf16.vlgmr.msra.gmra.mrb[80].mxu0 %v2695_v45 }
 0x119   :  { %3539 = vmatmul.mubr.bf16.vlgmr.msra.gmra.mrb[68].mxu1 %v8398_v17  ;;  %4085 = vmatpush1.bf16.msra.mxu0 %v7444_v15  ;;  %v2696_v17 = vrot.slane %v8460_v10, 1  ;;  %v2344_v15 = vshll.u32 %v8581_v30, 16 }
 0x11a   :  { %6886 = vmatpush1.bf16.msra.mxu1 %v8417_v22  ;;  %3546 = vmatprep.mubr.bf16.mxu1 %v8523_v18  ;;  %v8541_v22 = vsel %vm2275_vm3, %v2306_v58, %v2310_v28 }
 0x11b   :  { %6871 = vmatprep.subr.bf16.mxu1 %v10491_v26  ;;  %3835 = vmatprep.mubr.bf16.mxu0 %v8501_v53  ;;  %10593 = vst [vmem:[#allocation16_spill] sm:$0xff] %v8541_v22  ;;  %v8549_v62 = vsel %vm1739_vm0, %v2696_v17, %v2697_v21  ;;  %v2342_v21 = vor.u32 %v2341_v49, %v2337_v44  ;;  %v2363_v44 = vshll.u32 %v8631_v3, 16 }
 0x11c   :  { %4086 = vmatprep.subr.bf16.mxu0 %v10491_v26 }
 0x11d   :  { %4087 = vmatpush1.bf16.msra.mxu0 %v7447_v5  ;;  %v2346_v5 = vrot.slane %v2344_v15, 1  ;;  %v2708_v15 = vrot.slane %v8570_v2, 1 }
 0x11e   :  { %6887 = vmatpush1.bf16.msra.mxu1 %v8424_v32  ;;  %4088 = vmatprep.subr.bf16.mxu0 %v10491_v26  ;;  %v2318_v32 = vor.u32 %v2317_v47, %v2313_v56  ;;  %v8612_v56 = vld [vmem:[#allocation2 + $0x50] ss:$0 sps:$4 sm:$0xff]   ;;  %v2351_v47 = vshll.u32 %v8600_v55, 16 }
 0x11f   :  { %6872 = vmatprep.subr.bf16.mxu1 %v10491_v26 }
 0x120   :  { %3836 = vmatmul.mubr.bf16.gmra.mrb[84].mxu0 %v8549_v62 }
 0x121   :  { %3547 = vmatmul.mubr.bf16.gmra.mrb[72].mxu1 %v8460_v10  ;;  %3843 = vmatprep.mubr.bf16.mxu0 %v8519_v61  ;;  %v2325_v10 = vshrl.u32 %v8545_v6, 16 }
 0x122   :  { %3554 = vmatprep.mubr.bf16.mxu1 %v8541_v22  ;;  %6888 = vmatpush1.bf16.msra.mxu1 %v8432_v4  ;;  %v8566_v4 = vsel %vm2275_vm3, %v2318_v32, %v2322_v19  ;;  %v2706_v32 = vrot.slane %v8556_v40, 1  ;;  %v2349_v40 = vshrl.u32 %v8600_v55, 16 }
 0x123   :  { %6873 = vmatprep.subr.bf16.mxu1 %v10491_v26  ;;  %4089 = vmatpush1.bf16.msra.mxu0 %v7450_v52  ;;  %10594 = vst [vmem:[#allocation14_spill] sm:$0xff] %v8566_v4  ;;  %v2705_v52 = vrot.slane %v8545_v6, 1 }
 0x124   :  { %4090 = vmatprep.subr.bf16.mxu0 %v10491_v26 }
 0x126   :  { %6889 = vmatpush1.bf16.msra.mxu1 %v8437_v33  ;;  %v2330_v33 = vor.u32 %v2329_v41, %v2325_v10 }
 0x127   :  { %6874 = vmatprep.subr.bf16.mxu1 %v10491_v26  ;;  %4091 = vmatpush1.bf16.msra.mxu0 %v7453_v1 }
 0x128   :  { %4092 = vmatprep.subr.bf16.mxu0 %v10491_v26  ;;  %3844 = vmatmul.mubr.bf16.gmra.mrb[88].mxu0 %v8574_v48  ;;  %v8596_v20 = vsel %vm2275_vm3, %v2330_v33, %v2334_v34  ;;  %v2353_v33 = vrot.slane %v2351_v47, 1  ;;  %v2356_v34 = vshll.u32 %v8612_v56, 16 }
 0x129   :  { %3555 = vmatmul.mubr.bf16.gmra.mrb[76].mxu1 %v8501_v53  ;;  %3851 = vmatprep.mubr.bf16.mxu0 %v8545_v6  ;;  %v2703_v53 = vrot.slane %v8533_v13, 1  ;;  %10596 = vst [vmem:[#allocation17_spill] sm:$0xff] %v8596_v20 }
 0x12a   :  { %3562 = vmatprep.mubr.bf16.mxu1 %v8566_v4  ;;  %6890 = vmatpush1.bf16.msra.mxu1 %v8443_v27 }
 0x12b   :  { %6875 = vmatprep.subr.bf16.mxu1 %v10491_v26  ;;  %4093 = vmatpush1.bf16.msra.mxu0 %v7456_v36  ;;  %v6146_v8 = vpop.f32.mrb[0].mxu0  ;;  %v8604_v28 = vsel %vm1739_vm0, %v2702_v37, %v2703_v53  ;;  %v8627_v36 = vsel %vm2275_vm3, %v2342_v21, %v2346_v5 }
 0x12c   :  { %v6210_v31 = vpop.f32.mrb[0].mxu1  ;;  %4094 = vmatprep.subr.bf16.mxu0 %v10491_v26  ;;  %v6147_v54 = vpop.f32.mrb[1].mxu0  ;;  %10597 = vst [vmem:[#allocation24_spill] sm:$0xff] %v8604_v28  ;;  %10598 = vst [vmem:[#allocation20_spill] sm:$0xff] %v8627_v36 }
 0x12d   :  { %v6211_v27 = vpop.f32.mrb[1].mxu1  ;;  %v6148_v46 = vadd.f32 %v6147_v54, %v6146_v8  ;;  %v6149_v45 = vpop.f32.mrb[2].mxu0  ;;  %v2358_v54 = vrot.slane %v2356_v34, 1 }
 0x12e   :  { %v6212_v50 = vadd.f32 %v6211_v27, %v6210_v31  ;;  %v6213_v39 = vpop.f32.mrb[2].mxu1  ;;  %6891 = vmatpush1.bf16.msra.mxu1 %v8450_v29  ;;  %v7462_v29 = vld [vmem:[#allocation7 + $0x130] sm:$0xff]   ;;  %v6150_v13 = vpop.f32.mrb[3].mxu0 }
 0x12f   :  { %v6214_v24 = vpop.f32.mrb[3].mxu1  ;;  %6876 = vmatprep.subr.bf16.mxu1 %v10491_v26  ;;  %4095 = vmatpush1.bf16.msra.mxu0 %v7459_v12  ;;  %v1241_v0 = vadd.f32 %v6148_v46, %v8592_v38  ;;  %v6151_v17 = vadd.f32 %v6150_v13, %v6149_v45  ;;  %v8635_v12 = vsel %vm1739_vm0, %v2705_v52, %v2706_v32  ;;  %v2709_v46 = vrot.slane %v8581_v30, 1  ;;  %v8662_v52 = vld [vmem:[#allocation2 + $0x60] sm:$0xff]  }
 0x130   :  { %v6215_v58 = vadd.f32 %v6214_v24, %v6213_v39  ;;  %4096 = vmatprep.subr.bf16.mxu0 %v10491_v26  ;;  %3852 = vmatmul.mubr.bf16.gmra.mrb[92].mxu0 %v8604_v28  ;;  %v2354_v39 = vor.u32 %v2353_v33, %v2349_v40  ;;  %v8643_v24 = vld [vmem:[#allocation2 + $0x5c] ss:$0 sps:$4 sm:$0xff]   ;;  %v2361_v30 = vshrl.u32 %v8631_v3, 16  ;;  %v8674_v33 = vld [vmem:[#allocation2 + $0x68] ss:$0 sps:$4 sm:$0xff]   ;;  %v2375_v34 = vshll.u32 %v8662_v52, 16 }
 0x131   :  { %3563 = vmatmul.mubr.bf16.gmra.mrb[80].mxu1 %v8519_v61  ;;  %v1244_v61 = vadd.f32 %v6151_v17, %v8592_v38  ;;  %3859 = vmatprep.mubr.bf16.mxu0 %v8570_v2  ;;  %v8620_v19 = vadd.f32 %v6212_v50, %v1241_v0 }
 0x132   :  { %3570 = vmatprep.mubr.bf16.mxu1 %v8596_v20  ;;  %6892 = vmatpush1.bf16.msra.mxu1 %v8457_v23  ;;  %v7465_v23 = vld [vmem:[#allocation7 + $0x138] sm:$0xff]   ;;  %v8658_v47 = vsel %vm2275_vm3, %v2354_v39, %v2358_v54 }
 0x133   :  { %6877 = vmatprep.subr.bf16.mxu1 %v10491_v26  ;;  %4097 = vmatpush1.bf16.msra.mxu0 %v7462_v29  ;;  %v6152_v9 = vpop.f32.mrb[4].mxu0  ;;  %v8623_v10 = vadd.f32 %v6215_v58, %v1244_v61  ;;  %10599 = vst [vmem:[#allocation21_spill] sm:$0xff] %v8658_v47  ;;  %v2365_v61 = vrot.slane %v2363_v44, 1 }
 0x134   :  { %v6216_v51 = vpop.f32.mrb[4].mxu1  ;;  %4098 = vmatprep.subr.bf16.mxu0 %v10491_v26  ;;  %v6153_v41 = vpop.f32.mrb[5].mxu0 }
 0x135   :  { %v6217_v57 = vpop.f32.mrb[5].mxu1  ;;  %v6154_v31 = vadd.f32 %v6153_v41, %v6152_v9  ;;  %v6155_v37 = vpop.f32.mrb[6].mxu0  ;;  %v8666_v9 = vsel %vm1739_vm0, %v2708_v15, %v2709_v46  ;;  %v2377_v15 = vrot.slane %v2375_v34, 1  ;;  %v2380_v46 = vshll.u32 %v8674_v33, 16 }
 0x136   :  { %v6218_v59 = vadd.f32 %v6217_v57, %v6216_v51  ;;  %v6219_v1 = vpop.f32.mrb[6].mxu1  ;;  %6893 = vmatpush1.bf16.msra.mxu1 %v8465_v25  ;;  %v7468_v25 = vld [vmem:[#allocation7 + $0x140] sm:$0xff]   ;;  %v6156_v27 = vpop.f32.mrb[7].mxu0  ;;  %v2368_v51 = vshll.u32 %v8643_v24, 16 }
 0x137   :  { %v6220_v7 = vpop.f32.mrb[7].mxu1  ;;  %6878 = vmatprep.subr.bf16.mxu1 %v10491_v26  ;;  %4099 = vmatpush1.bf16.msra.mxu0 %v7465_v23  ;;  %v1249_v8 = vadd.f32 %v6154_v31, %v8592_v38  ;;  %v6157_v50 = vadd.f32 %v6156_v27, %v6155_v37  ;;  %v2711_v37 = vrot.slane %v8600_v55, 1 }
 0x138   :  { %v6221_v53 = vadd.f32 %v6220_v7, %v6219_v1  ;;  %4100 = vmatprep.subr.bf16.mxu0 %v10491_v26  ;;  %3860 = vmatmul.mubr.bf16.gmra.mrb[96].mxu0 %v8635_v12  ;;  %v2366_v7 = vor.u32 %v2365_v61, %v2361_v30  ;;  %v2370_v40 = vrot.slane %v2368_v51, 1  ;;  %v2382_v51 = vrot.slane %v2380_v46, 1 }
 0x139   :  { %3571 = vmatmul.mubr.bf16.gmra.mrb[84].mxu1 %v8545_v6  ;;  %v1252_v6 = vadd.f32 %v6157_v50, %v8592_v38  ;;  %3867 = vmatprep.mubr.bf16.mxu0 %v8600_v55  ;;  %v8651_v45 = vadd.f32 %v6218_v59, %v1249_v8 }
 0x13a   :  { %3578 = vmatprep.mubr.bf16.mxu1 %v8627_v36  ;;  %6894 = vmatpush1.bf16.msra.mxu1 %v8471_v42  ;;  %v7471_v42 = vld [vmem:[#allocation7 + $0x148] sm:$0xff]  }
 0x13b   :  { %6879 = vmatprep.subr.bf16.mxu1 %v10491_v26  ;;  %4101 = vmatpush1.bf16.msra.mxu0 %v7468_v25  ;;  %v6158_v29 = vpop.f32.mrb[8].mxu0  ;;  %v8654_v17 = vadd.f32 %v6221_v53, %v1252_v6  ;;  %v2712_v53 = vrot.slane %v8612_v56, 1  ;;  %v2373_v56 = vshrl.u32 %v8662_v52, 16 }
 0x13c   :  { %v6222_v49 = vpop.f32.mrb[8].mxu1  ;;  %4102 = vmatprep.subr.bf16.mxu0 %v10491_v26  ;;  %v6159_v21 = vpop.f32.mrb[9].mxu0 }
 0x13d   :  { %v6223_v58 = vpop.f32.mrb[9].mxu1  ;;  %v6160_v32 = vadd.f32 %v6159_v21, %v6158_v29  ;;  %v6161_v23 = vpop.f32.mrb[10].mxu0  ;;  %v2378_v61 = vor.u32 %v2377_v15, %v2373_v56 }
 0x13e   :  { %v6224_v13 = vadd.f32 %v6223_v58, %v6222_v49  ;;  %v6225_v0 = vpop.f32.mrb[10].mxu1  ;;  %6895 = vmatpush1.bf16.msra.mxu1 %v8476_v60  ;;  %v7474_v60 = vld [vmem:[#allocation7 + $0x150] sm:$0xff]   ;;  %v6162_v59 = vpop.f32.mrb[11].mxu0  ;;  %v8689_v49 = vsel %vm2275_vm3, %v2366_v7, %v2370_v40 }
 0x13f   :  { %v6226_v5 = vpop.f32.mrb[11].mxu1  ;;  %6880 = vmatprep.subr.bf16.mxu1 %v10491_v26  ;;  %4103 = vmatpush1.bf16.msra.mxu0 %v7471_v42  ;;  %v1257_v1 = vadd.f32 %v6160_v32, %v8592_v38  ;;  %v6163_v41 = vadd.f32 %v6162_v59, %v6161_v23  ;;  %10600 = vst [vmem:[#allocation23_spill] sm:$0xff] %v8689_v49  ;;  %v8693_v42 = vld [vmem:[#allocation2 + $0x6c] sm:$0xff]   ;;  %v8705_v32 = vld [vmem:[#allocation2 + $0x74] ss:$0 sps:$4 sm:$0xff]   ;;  %v2715_v59 = vrot.slane %v8643_v24, 1 }
 0x140   :  { %v6227_v57 = vadd.f32 %v6226_v5, %v6225_v0  ;;  %4104 = vmatprep.subr.bf16.mxu0 %v10491_v26  ;;  %3868 = vmatmul.mubr.bf16.gmra.mrb[100].mxu0 %v8666_v9  ;;  %v8697_v0 = vsel %vm1739_vm0, %v2711_v37, %v2712_v53  ;;  %v2387_v23 = vshll.u32 %v8693_v42, 16  ;;  %v8720_v53 = vsel %vm2275_vm3, %v2378_v61, %v2382_v51  ;;  %v7489_v61 = vld [vmem:[#allocation7 + $0x178] sm:$0xff]  }
 0x141   :  { %3579 = vmatmul.mubr.bf16.gmra.mrb[88].mxu1 %v8570_v2  ;;  %v1260_v2 = vadd.f32 %v6163_v41, %v8592_v38  ;;  %3875 = vmatprep.mubr.bf16.mxu0 %v8631_v3  ;;  %v8682_v25 = vadd.f32 %v6224_v13, %v1257_v1  ;;  %10601 = vst [vmem:[#allocation12_spill] sm:$0xff] %v8720_v53  ;;  %v2385_v24 = vshrl.u32 %v8693_v42, 16 }
 0x142   :  { %3586 = vmatprep.mubr.bf16.mxu1 %v8658_v47  ;;  %6896 = vmatpush1.bf16.msra.mxu1 %v8481_v14  ;;  %v7477_v14 = vld [vmem:[#allocation7 + $0x158] sm:$0xff]  }
 0x143   :  { %6881 = vmatprep.subr.bf16.mxu1 %v10491_v26  ;;  %4105 = vmatpush1.bf16.msra.mxu0 %v7474_v60  ;;  %v6164_v8 = vpop.f32.mrb[12].mxu0  ;;  %v8685_v54 = vadd.f32 %v6227_v57, %v1260_v2  ;;  %v2714_v60 = vrot.slane %v8631_v3, 1 }
 0x144   :  { %v6228_v31 = vpop.f32.mrb[12].mxu1  ;;  %4106 = vmatprep.subr.bf16.mxu0 %v10491_v26  ;;  %v6165_v44 = vpop.f32.mrb[13].mxu0 }
 0x145   :  { %v6229_v27 = vpop.f32.mrb[13].mxu1  ;;  %v6166_v58 = vadd.f32 %v6165_v44, %v6164_v8  ;;  %v6167_v29 = vpop.f32.mrb[14].mxu0  ;;  %v8724_v8 = vld [vmem:[#allocation2 + $0x78] sm:$0xff]  }
 0x146   :  { %v6230_v50 = vadd.f32 %v6229_v27, %v6228_v31  ;;  %v6231_v39 = vpop.f32.mrb[14].mxu1  ;;  %6897 = vmatpush1.bf16.msra.mxu1 %v8486_v63  ;;  %v7480_v63 = vld [vmem:[#allocation7 + $0x160] sm:$0xff]   ;;  %v6168_v21 = vpop.f32.mrb[15].mxu0  ;;  %v2392_v27 = vshll.u32 %v8705_v32, 16 }
 0x147   :  { %v6232_v6 = vpop.f32.mrb[15].mxu1  ;;  %6882 = vmatprep.subr.bf16.mxu1 %v10491_v26  ;;  %4107 = vmatpush1.bf16.msra.mxu0 %v7477_v14  ;;  %v1265_v5 = vadd.f32 %v6166_v58, %v8592_v38  ;;  %v6169_v30 = vadd.f32 %v6168_v21, %v6167_v29  ;;  %v2389_v14 = vrot.slane %v2387_v23, 1 }
 0x148   :  { %v6233_v13 = vadd.f32 %v6232_v6, %v6231_v39  ;;  %4108 = vmatprep.subr.bf16.mxu0 %v10491_v26  ;;  %3876 = vmatmul.mubr.bf16.gmra.mrb[104].mxu0 %v8697_v0  ;;  %v8728_v6 = vsel %vm1739_vm0, %v2714_v60, %v2715_v59  ;;  %v2394_v29 = vrot.slane %v2392_v27, 1 }
 0x149   :  { %3587 = vmatmul.mubr.bf16.gmra.mrb[92].mxu1 %v8600_v55  ;;  %v1268_v55 = vadd.f32 %v6169_v30, %v8592_v38  ;;  %3883 = vmatprep.mubr.bf16.mxu0 %v8662_v52  ;;  %v8713_v1 = vadd.f32 %v6230_v50, %v1265_v5  ;;  %10602 = vst [vmem:[#allocation13_spill] sm:$0xff] %v8728_v6  ;;  %v2717_v5 = vrot.slane %v8662_v52, 1  ;;  %v2718_v30 = vrot.slane %v8674_v33, 1 }
 0x14a   :  { %3594 = vmatprep.mubr.bf16.mxu1 %v8689_v49  ;;  %6898 = vmatpush1.bf16.msra.mxu1 %v8491_v11  ;;  %v7483_v11 = vld [vmem:[#allocation7 + $0x168] sm:$0xff]   ;;  %v2390_v58 = vor.u32 %v2389_v14, %v2385_v24  ;;  %v2397_v33 = vshrl.u32 %v8724_v8, 16 }
 0x14b   :  { %6883 = vmatprep.subr.bf16.mxu1 %v10491_v26  ;;  %4109 = vmatpush1.bf16.msra.mxu0 %v7480_v63  ;;  %v6170_v7 = vpop.f32.mrb[16].mxu0  ;;  %v8716_v2 = vadd.f32 %v6233_v13, %v1268_v55  ;;  %v8736_v13 = vld [vmem:[#allocation2 + $0x80] ss:$0 sps:$4 sm:$0xff]   ;;  %v2399_v63 = vshll.u32 %v8724_v8, 16  ;;  %v8758_v14 = vsel %vm1739_vm0, %v2717_v5, %v2718_v30 }
 0x14c   :  { %v6234_v57 = vpop.f32.mrb[16].mxu1  ;;  %4110 = vmatprep.subr.bf16.mxu0 %v10491_v26  ;;  %v6171_v31 = vpop.f32.mrb[17].mxu0  ;;  %10604 = vst [vmem:[#allocation19_spill] sm:$0xff] %v8758_v14 }
 0x14d   :  { %v6235_v41 = vpop.f32.mrb[17].mxu1  ;;  %v6172_v50 = vadd.f32 %v6171_v31, %v6170_v7  ;;  %v6173_v39 = vpop.f32.mrb[18].mxu0  ;;  %v2401_v7 = vrot.slane %v2399_v63, 1 }
 0x14e   :  { %v6236_v40 = vadd.f32 %v6235_v41, %v6234_v57  ;;  %v6237_v34 = vpop.f32.mrb[18].mxu1  ;;  %6899 = vmatpush1.bf16.msra.mxu1 %v8497_v16  ;;  %v7486_v16 = vld [vmem:[#allocation7 + $0x170] sm:$0xff]   ;;  %v6174_v56 = vpop.f32.mrb[19].mxu0  ;;  %v8751_v41 = vsel %vm2275_vm3, %v2390_v58, %v2394_v29  ;;  %v2721_v58 = vrot.slane %v8705_v32, 1 }
 0x14f   :  { %v6238_v37 = vpop.f32.mrb[19].mxu1  ;;  %6884 = vmatprep.subr.bf16.mxu1 %v10491_v26  ;;  %4111 = vmatpush1.bf16.msra.mxu0 %v7483_v11  ;;  %v1273_v15 = vadd.f32 %v6172_v50, %v8592_v38  ;;  %v6175_v46 = vadd.f32 %v6174_v56, %v6173_v39  ;;  %10603 = vst [vmem:[#allocation15_spill] sm:$0xff] %v8751_v41 }
 0x150   :  { %v6239_v44 = vadd.f32 %v6238_v37, %v6237_v34  ;;  %4112 = vmatprep.subr.bf16.mxu0 %v10491_v26  ;;  %3884 = vmatmul.mubr.bf16.gmra.mrb[108].mxu0 %v8728_v6  ;;  %v8755_v34 = vld [vmem:[#allocation2 + $0x84] sm:$0xff]   ;;  %v2402_v39 = vor.u32 %v2401_v7, %v2397_v33  ;;  %v8781_v33 = vld [vmem:[#allocation2 + $0x90] sm:$0xff]  }
 0x151   :  { %3595 = vmatmul.mubr.bf16.gmra.mrb[96].mxu1 %v8631_v3  ;;  %v1276_v3 = vadd.f32 %v6175_v46, %v8592_v38  ;;  %3891 = vmatprep.mubr.bf16.mxu0 %v8693_v42  ;;  %v2411_v56 = vshll.u32 %v8755_v34, 16 }
 0x152   :  { %3602 = vmatprep.mubr.bf16.mxu1 %v8720_v53  ;;  %6900 = vmatpush1.bf16.msra.mxu1 %v8505_v35  ;;  %v8744_v35 = vadd.f32 %v6236_v40, %v1273_v15  ;;  %v2404_v40 = vshll.u32 %v8736_v13, 16 }
 0x153   :  { %6885 = vmatprep.subr.bf16.mxu1 %v10491_v26  ;;  %4113 = vmatpush1.bf16.msra.mxu0 %v7486_v16  ;;  %v6176_v23 = vpop.f32.mrb[20].mxu0  ;;  %v8747_v60 = vadd.f32 %v6239_v44, %v1276_v3  ;;  %v8765_v16 = vld [vmem:[#allocation2 + $0x8c] ss:$0 sps:$4 sm:$0xff]  }
 0x154   :  { %v6240_v21 = vpop.f32.mrb[20].mxu1  ;;  %4114 = vmatprep.subr.bf16.mxu0 %v10491_v26  ;;  %v6177_v59 = vpop.f32.mrb[21].mxu0  ;;  %v2406_v44 = vrot.slane %v2404_v40, 1 }
 0x155   :  { %v6241_v51 = vpop.f32.mrb[21].mxu1  ;;  %v6178_v31 = vadd.f32 %v6177_v59, %v6176_v23  ;;  %v6179_v37 = vpop.f32.mrb[22].mxu0  ;;  %v2413_v59 = vrot.slane %v2411_v56, 1 }
 0x156   :  { %v6242_v55 = vadd.f32 %v6241_v51, %v6240_v21  ;;  %v6243_v57 = vpop.f32.mrb[22].mxu1  ;;  %6901 = vmatpush1.bf16.msra.mxu1 %v8508_v43  ;;  %v6180_v43 = vpop.f32.mrb[23].mxu0  ;;  %v8777_v23 = vsel %vm2275_vm3, %v2402_v39, %v2406_v44  ;;  %v2423_v39 = vshll.u32 %v8781_v33, 16 }
 0x157   :  { %v6244_v11 = vpop.f32.mrb[23].mxu1  ;;  %4115 = vmatpush1.bf16.msra.mxu0 %v7489_v61  ;;  %v1281_v27 = vadd.f32 %v6178_v31, %v8592_v38  ;;  %v6181_v50 = vadd.f32 %v6180_v43, %v6179_v37  ;;  %10605 = vst [vmem:[#allocation22_spill] sm:$0xff] %v8777_v23 }
 0x158   :  { %v6245_v24 = vadd.f32 %v6244_v11, %v6243_v57  ;;  %4373 = vmatprep.subr.bf16.mxu0 %v10491_v26  ;;  %3892 = vmatmul.mubr.bf16.gmra.mrb[112].mxu0 %v8758_v14  ;;  %v2409_v57 = vshrl.u32 %v8755_v34, 16  ;;  %v2416_v11 = vshll.u32 %v8765_v16, 16  ;;  %v8831_v26 = vld [vmem:[#allocation2 + $0xa8] sm:$0xff]  }
 0x159   :  { %3603 = vmatmul.mubr.bf16.gmra.mrb[100].mxu1 %v8662_v52  ;;  %v1284_v15 = vadd.f32 %v6181_v50, %v8592_v38  ;;  %3899 = vmatprep.mubr.bf16.mxu0 %v8724_v8  ;;  %v2720_v52 = vrot.slane %v8693_v42, 1  ;;  %v8772_v29 = vadd.f32 %v6242_v55, %v1281_v27  ;;  %v8790_v50 = vld [vmem:[#allocation2 + $0x98] ss:$0 sps:$4 sm:$0xff]  }
 0x15a   :  { %3610 = vmatprep.mubr.bf16.mxu1 %v8751_v41  ;;  %v2414_v43 = vor.u32 %v2413_v59, %v2409_v57  ;;  %v2418_v27 = vrot.slane %v2416_v11, 1  ;;  %v2421_v59 = vshrl.u32 %v8781_v33, 16  ;;  %v2425_v11 = vrot.slane %v2423_v39, 1 }
 0x15b   :  { %v6182_v3 = vpop.f32.mrb[24].mxu0  ;;  %v8774_v30 = vadd.f32 %v6245_v24, %v1284_v15  ;;  %v8784_v40 = vsel %vm1739_vm0, %v2720_v52, %v2721_v58  ;;  %v2724_v15 = vrot.slane %v8736_v13, 1 }
 0x15c   :  { %v6246_v46 = vpop.f32.mrb[24].mxu1  ;;  %v6183_v61 = vpop.f32.mrb[25].mxu0  ;;  %10606 = vst [vmem:[#allocation25_spill] sm:$0xff] %v8784_v40  ;;  %v8802_v57 = vsel %vm2275_vm3, %v2414_v43, %v2418_v27  ;;  %v2426_v27 = vor.u32 %v2425_v11, %v2421_v59 }
 0x15d   :  { %v6247_v63 = vpop.f32.mrb[25].mxu1  ;;  %v6184_v32 = vadd.f32 %v6183_v61, %v6182_v3  ;;  %v6185_v55 = vpop.f32.mrb[26].mxu0  ;;  %10607 = vst [vmem:[#allocation26_spill] sm:$0xff] %v8802_v57 }
 0x15e   :  { %v6248_v21 = vadd.f32 %v6247_v63, %v6246_v46  ;;  %v6249_v5 = vpop.f32.mrb[26].mxu1  ;;  %v6186_v31 = vpop.f32.mrb[27].mxu0 }
 0x15f   :  { %v6250_v51 = vpop.f32.mrb[27].mxu1  ;;  %v1289_v37 = vadd.f32 %v6184_v32, %v8592_v38  ;;  %v6187_v24 = vadd.f32 %v6186_v31, %v6185_v55  ;;  %v2428_v32 = vshll.u32 %v8790_v50, 16  ;;  %v8806_v55 = vld [vmem:[#allocation2 + $0x9c] sm:$0xff]  }
 0x160   :  { %v6251_v7 = vadd.f32 %v6250_v51, %v6249_v5  ;;  %3900 = vmatmul.mubr.bf16.gmra.mrb[116].mxu0 %v8784_v40 }
 0x161   :  { %3611 = vmatmul.mubr.bf16.gmra.mrb[104].mxu1 %v8693_v42  ;;  %v1292_v44 = vadd.f32 %v6187_v24, %v8592_v38  ;;  %3907 = vmatprep.mubr.bf16.mxu0 %v8755_v34  ;;  %v2723_v42 = vrot.slane %v8724_v8, 1  ;;  %v8797_v46 = vadd.f32 %v6248_v21, %v1289_v37  ;;  %v2430_v39 = vrot.slane %v2428_v32, 1 }
 0x162   :  { %3618 = vmatprep.mubr.bf16.mxu1 %v8777_v23 }
 0x163   :  { %v6188_v58 = vpop.f32.mrb[28].mxu0  ;;  %v8799_v5 = vadd.f32 %v6251_v7, %v1292_v44  ;;  %v8809_v37 = vsel %vm1739_vm0, %v2723_v42, %v2724_v15  ;;  %v8815_v44 = vld [vmem:[#allocation2 + $0xa4] ss:$0 sps:$4 sm:$0xff]   ;;  %v2727_v15 = vrot.slane %v8765_v16, 1 }
 0x164   :  { %v6252_v56 = vpop.f32.mrb[28].mxu1  ;;  %v6189_v61 = vpop.f32.mrb[29].mxu0  ;;  %10608 = vst [vmem:[#allocation27_spill] sm:$0xff] %v8809_v37 }
 0x165   :  { %v6253_v52 = vpop.f32.mrb[29].mxu1  ;;  %v6190_v13 = vadd.f32 %v6189_v61, %v6188_v58  ;;  %v6191_v21 = vpop.f32.mrb[30].mxu0 }
 0x166   :  { %v6254_v63 = vadd.f32 %v6253_v52, %v6252_v56  ;;  %v6255_v3 = vpop.f32.mrb[30].mxu1  ;;  %v6192_v7 = vpop.f32.mrb[31].mxu0  ;;  %v2435_v56 = vshll.u32 %v8806_v55, 16 }
 0x167   :  { %v6256_v51 = vpop.f32.mrb[31].mxu1  ;;  %v1297_v24 = vadd.f32 %v6190_v13, %v8592_v38  ;;  %v6193_v43 = vadd.f32 %v6192_v7, %v6191_v21  ;;  %v8827_v21 = vsel %vm2275_vm3, %v2426_v27, %v2430_v39 }
 0x168   :  { %v6257_v31 = vadd.f32 %v6256_v51, %v6255_v3  ;;  %3908 = vmatmul.mubr.bf16.gmra.mrb[120].mxu0 %v8809_v37  ;;  %10609 = vst [vmem:[#allocation28_spill] sm:$0xff] %v8827_v21  ;;  %v2437_v7 = vrot.slane %v2435_v56, 1 }
 0x169   :  { %3619 = vmatmul.mubr.bf16.gmra.mrb[108].mxu1 %v8724_v8  ;;  %v1300_v52 = vadd.f32 %v6193_v43, %v8592_v38  ;;  %3915 = vmatprep.mubr.bf16.mxu0 %v8781_v33  ;;  %v2726_v8 = vrot.slane %v8755_v34, 1  ;;  %v8822_v58 = vadd.f32 %v6254_v63, %v1297_v24  ;;  %v2433_v38 = vshrl.u32 %v8806_v55, 16 }
 0x16a   :  { %3626 = vmatprep.mubr.bf16.mxu1 %v8802_v57  ;;  %v2440_v43 = vshll.u32 %v8815_v44, 16  ;;  %v8856_v57 = vld [vmem:[#allocation2 + $0xb4] sm:$0xff]  }
 0x16b   :  { %v6274_v61 = vpop.f32.mrb[32].mxu0  ;;  %v8824_v11 = vadd.f32 %v6257_v31, %v1300_v52  ;;  %v2438_v39 = vor.u32 %v2437_v7, %v2433_v38 }
 0x16c   :  { %v6338_v42 = vpop.f32.mrb[32].mxu1  ;;  %v6275_v32 = vpop.f32.mrb[33].mxu0  ;;  %v2442_v56 = vrot.slane %v2440_v43, 1 }
 0x16d   :  { %v6339_v3 = vpop.f32.mrb[33].mxu1  ;;  %v6276_v16 = vadd.f32 %v6275_v32, %v6274_v61  ;;  %v6277_v63 = vpop.f32.mrb[34].mxu0  ;;  %v2447_v61 = vshll.u32 %v8831_v26, 16 }
 0x16e   :  { %v6340_v51 = vadd.f32 %v6339_v3, %v6338_v42  ;;  %v6341_v59 = vpop.f32.mrb[34].mxu1  ;;  %v8834_v42 = vsel %vm1739_vm0, %v2726_v8, %v2727_v15  ;;  %v6278_v31 = vpop.f32.mrb[35].mxu0  ;;  %v8840_v3 = vld [vmem:[#allocation2 + $0xb0] ss:$0 sps:$4 sm:$0xff]  }
 0x16f   :  { %v6342_v13 = vpop.f32.mrb[35].mxu1  ;;  %10610 = vst [vmem:[#allocation29_spill] sm:$0xff] %v8834_v42  ;;  %v1435_v52 = vadd.f32 %v6276_v16, %v8620_v19  ;;  %v6279_v27 = vadd.f32 %v6278_v31, %v6277_v63  ;;  %v2730_v19 = vrot.slane %v8790_v50, 1  ;;  %v8852_v31 = vsel %vm2275_vm3, %v2438_v39, %v2442_v56 }
 0x170   :  { %v6343_v24 = vadd.f32 %v6342_v13, %v6341_v59  ;;  %3916 = vmatmul.mubr.bf16.gmra.mrb[124].mxu0 %v8834_v42  ;;  %10611 = vst [vmem:[#allocation30_spill] sm:$0xff] %v8852_v31 }
 0x171   :  { %3627 = vmatmul.mubr.bf16.gmra.mrb[112].mxu1 %v8755_v34  ;;  %v1438_v59 = vadd.f32 %v6279_v27, %v8623_v10  ;;  %3923 = vmatprep.mubr.bf16.mxu0 %v8806_v55  ;;  %v2729_v34 = vrot.slane %v8781_v33, 1  ;;  %v8847_v15 = vadd.f32 %v6340_v51, %v1435_v52  ;;  %v2445_v10 = vshrl.u32 %v8831_v26, 16 }
 0x172   :  { %3634 = vmatprep.mubr.bf16.mxu1 %v8827_v21  ;;  %v2449_v27 = vrot.slane %v2447_v61, 1  ;;  %v2452_v21 = vshll.u32 %v8840_v3, 16 }
 0x173   :  { %v6280_v13 = vpop.f32.mrb[36].mxu0  ;;  %v8849_v7 = vadd.f32 %v6343_v24, %v1438_v59 }
 0x174   :  { %v6344_v8 = vpop.f32.mrb[36].mxu1  ;;  %v6281_v43 = vpop.f32.mrb[37].mxu0  ;;  %v2450_v56 = vor.u32 %v2449_v27, %v2445_v10  ;;  %v2454_v61 = vrot.slane %v2452_v21, 1 }
 0x175   :  { %v6345_v32 = vpop.f32.mrb[37].mxu1  ;;  %v6282_v50 = vadd.f32 %v6281_v43, %v6280_v13  ;;  %v6283_v51 = vpop.f32.mrb[38].mxu0  ;;  %v2459_v13 = vshll.u32 %v8856_v57, 16 }
 0x176   :  { %v6346_v16 = vadd.f32 %v6345_v32, %v6344_v8  ;;  %v6347_v38 = vpop.f32.mrb[38].mxu1  ;;  %v8859_v8 = vsel %vm1739_vm0, %v2729_v34, %v2730_v19  ;;  %v6284_v24 = vpop.f32.mrb[39].mxu0  ;;  %v8865_v32 = vld [vmem:[#allocation2 + $0xbc] ss:$0 sps:$4 sm:$0xff]  }
 0x177   :  { %v6348_v63 = vpop.f32.mrb[39].mxu1  ;;  %10612 = vst [vmem:[#allocation31_spill] sm:$0xff] %v8859_v8  ;;  %v1443_v59 = vadd.f32 %v6282_v50, %v8651_v45  ;;  %v6285_v39 = vadd.f32 %v6284_v24, %v6283_v51  ;;  %v2733_v45 = vrot.slane %v8815_v44, 1  ;;  %v8877_v24 = vsel %vm2275_vm3, %v2450_v56, %v2454_v61 }
 0x178   :  { %v6349_v52 = vadd.f32 %v6348_v63, %v6347_v38  ;;  %3924 = vmatmul.mubr.bf16.gmra.mrb[128].mxu0 %v8859_v8  ;;  %10613 = vst [vmem:[#allocation32_spill] sm:$0xff] %v8877_v24  ;;  %v8881_v8 = vld [vmem:[#allocation2 + $0xd8] sm:$0xff]  }
 0x179   :  { %3635 = vmatmul.mubr.bf16.gmra.mrb[116].mxu1 %v8781_v33  ;;  %v1446_v38 = vadd.f32 %v6285_v39, %v8654_v17  ;;  %3931 = vmatprep.mubr.bf16.mxu0 %v8831_v26  ;;  %v2732_v33 = vrot.slane %v8806_v55, 1  ;;  %v8872_v19 = vadd.f32 %v6346_v16, %v1443_v59  ;;  %v2457_v17 = vshrl.u32 %v8856_v57, 16 }
 0x17a   :  { %3642 = vmatprep.mubr.bf16.mxu1 %v8852_v31  ;;  %v2461_v39 = vrot.slane %v2459_v13, 1  ;;  %v2464_v31 = vshll.u32 %v8865_v32, 16 }
 0x17b   :  { %v6286_v63 = vpop.f32.mrb[40].mxu0  ;;  %v8874_v21 = vadd.f32 %v6349_v52, %v1446_v38 }
 0x17c   :  { %v6350_v34 = vpop.f32.mrb[40].mxu1  ;;  %v6287_v27 = vpop.f32.mrb[41].mxu0  ;;  %v2462_v61 = vor.u32 %v2461_v39, %v2457_v17  ;;  %v2466_v13 = vrot.slane %v2464_v31, 1 }
 0x17d   :  { %v6351_v43 = vpop.f32.mrb[41].mxu1  ;;  %v6288_v44 = vadd.f32 %v6287_v27, %v6286_v63  ;;  %v6289_v16 = vpop.f32.mrb[42].mxu0  ;;  %v2471_v63 = vshll.u32 %v8881_v8, 16 }
 0x17e   :  { %v6352_v50 = vadd.f32 %v6351_v43, %v6350_v34  ;;  %v6353_v10 = vpop.f32.mrb[42].mxu1  ;;  %v8884_v34 = vsel %vm1739_vm0, %v2732_v33, %v2733_v45  ;;  %v6290_v52 = vpop.f32.mrb[43].mxu0  ;;  %v8890_v43 = vld [vmem:[#allocation2 + $0xe0] ss:$0 sps:$4 sm:$0xff]  }
 0x17f   :  { %v6354_v51 = vpop.f32.mrb[43].mxu1  ;;  %10614 = vst [vmem:[#allocation33_spill] sm:$0xff] %v8884_v34  ;;  %v1451_v38 = vadd.f32 %v6288_v44, %v8682_v25  ;;  %v6291_v56 = vadd.f32 %v6290_v52, %v6289_v16  ;;  %10615 = vst [vmem:[#allocation34_spill] sm:$0xff] %v8890_v43  ;;  %v2736_v25 = vrot.slane %v8840_v3, 1  ;;  %v8902_v52 = vsel %vm2275_vm3, %v2462_v61, %v2466_v13 }
 0x180   :  { %v6355_v59 = vadd.f32 %v6354_v51, %v6353_v10  ;;  %3932 = vmatmul.mubr.bf16.gmra.mrb[132].mxu0 %v8884_v34  ;;  %10616 = vst [vmem:[#allocation35_spill] sm:$0xff] %v8902_v52  ;;  %v8906_v34 = vld [vmem:[#allocation2 + $0xe4] sm:$0xff]  }
 0x181   :  { %3643 = vmatmul.mubr.bf16.gmra.mrb[120].mxu1 %v8806_v55  ;;  %v1454_v10 = vadd.f32 %v6291_v56, %v8685_v54  ;;  %3939 = vmatprep.mubr.bf16.mxu0 %v8856_v57  ;;  %v2735_v55 = vrot.slane %v8831_v26, 1  ;;  %v8897_v45 = vadd.f32 %v6352_v50, %v1451_v38  ;;  %v2469_v54 = vshrl.u32 %v8881_v8, 16 }
 0x182   :  { %3650 = vmatprep.mubr.bf16.mxu1 %v8877_v24  ;;  %v2473_v56 = vrot.slane %v2471_v63, 1  ;;  %v2476_v24 = vshll.u32 %v8890_v43, 16 }
 0x183   :  { %v6292_v51 = vpop.f32.mrb[44].mxu0  ;;  %v8899_v31 = vadd.f32 %v6355_v59, %v1454_v10  ;;  %v8911_v59 = vld [vmem:[#allocation2 + $0xc0] sm:$0xff]  }
 0x184   :  { %v6356_v33 = vpop.f32.mrb[44].mxu1  ;;  %v6293_v39 = vpop.f32.mrb[45].mxu0  ;;  %10618 = vst [vmem:[#allocation37_spill] sm:$0xff] %v8911_v59  ;;  %v2474_v63 = vor.u32 %v2473_v56, %v2469_v54 }
 0x185   :  { %v6357_v27 = vpop.f32.mrb[45].mxu1  ;;  %v6294_v3 = vadd.f32 %v6293_v39, %v6292_v51  ;;  %v6295_v50 = vpop.f32.mrb[46].mxu0  ;;  %v8917_v51 = vld [vmem:[#allocation2 + $0xec] ss:$0 sps:$4 sm:$0xff]  }
 0x186   :  { %v6358_v44 = vadd.f32 %v6357_v27, %v6356_v33  ;;  %v6359_v17 = vpop.f32.mrb[46].mxu1  ;;  %v8909_v33 = vsel %vm1739_vm0, %v2735_v55, %v2736_v25  ;;  %v6296_v10 = vpop.f32.mrb[47].mxu0  ;;  %v2478_v27 = vrot.slane %v2476_v24, 1 }
 0x187   :  { %v6360_v16 = vpop.f32.mrb[47].mxu1  ;;  %10617 = vst [vmem:[#allocation36_spill] sm:$0xff] %v8909_v33  ;;  %v1459_v61 = vadd.f32 %v6294_v3, %v8713_v1  ;;  %v6297_v13 = vadd.f32 %v6296_v10, %v6295_v50  ;;  %v2739_v1 = vrot.slane %v8865_v32, 1 }
 0x188   :  { %v6361_v38 = vadd.f32 %v6360_v16, %v6359_v17  ;;  %3940 = vmatmul.mubr.bf16.gmra.mrb[136].mxu0 %v8909_v33  ;;  %v2483_v17 = vshll.u32 %v8906_v34, 16  ;;  %v2479_v43 = vsel %vm2275_vm3, %v2474_v63, %v2478_v27 }
 0x189   :  { %3651 = vmatmul.mubr.bf16.gmra.mrb[124].mxu1 %v8831_v26  ;;  %v1462_v55 = vadd.f32 %v6297_v13, %v8716_v2  ;;  %3947 = vmatprep.mubr.bf16.mxu0 %v8911_v59  ;;  %v2738_v26 = vrot.slane %v8856_v57, 1  ;;  %v8924_v39 = vadd.f32 %v6358_v44, %v1459_v61  ;;  %v2481_v2 = vshrl.u32 %v8906_v34, 16  ;;  %v8931_v59 = vld [vmem:[#allocation2 + $0xf0] sm:$0xff]  }
 0x18a   :  { %3658 = vmatprep.mubr.bf16.mxu1 %v8902_v52  ;;  %v2485_v13 = vrot.slane %v2483_v17, 1  ;;  %v2488_v52 = vshll.u32 %v8917_v51, 16  ;;  %v8939_v17 = vld [vmem:[#allocation2 + $0xf8] ss:$0 sps:$4 sm:$0xff]  }
 0x18b   :  { %v6298_v3 = vpop.f32.mrb[48].mxu0  ;;  %v8926_v24 = vadd.f32 %v6361_v38, %v1462_v55  ;;  %v8934_v33 = vsel %vm1739_vm0, %v2738_v26, %v2739_v1  ;;  %10620 = vst [vmem:[#allocation39_spill] sm:$0xff] %v8939_v17 }
 0x18c   :  { %v6362_v25 = vpop.f32.mrb[48].mxu1  ;;  %v6299_v56 = vpop.f32.mrb[49].mxu0  ;;  %10619 = vst [vmem:[#allocation38_spill] sm:$0xff] %v8934_v33  ;;  %v2486_v63 = vor.u32 %v2485_v13, %v2481_v2  ;;  %v2490_v27 = vrot.slane %v2488_v52, 1 }
 0x18d   :  { %v6363_v16 = vpop.f32.mrb[49].mxu1  ;;  %v6300_v32 = vadd.f32 %v6299_v56, %v6298_v3  ;;  %v6301_v44 = vpop.f32.mrb[50].mxu0 }
 0x18e   :  { %v6364_v50 = vadd.f32 %v6363_v16, %v6362_v25  ;;  %v6365_v54 = vpop.f32.mrb[50].mxu1  ;;  %v6302_v25 = vpop.f32.mrb[51].mxu0  ;;  %v2495_v16 = vshll.u32 %v8931_v59, 16  ;;  %v8950_v13 = vsel %vm2275_vm3, %v2486_v63, %v2490_v27 }
 0x18f   :  { %v6366_v10 = vpop.f32.mrb[51].mxu1  ;;  %v1467_v38 = vadd.f32 %v6300_v32, %v8744_v35  ;;  %v6303_v55 = vadd.f32 %v6302_v25, %v6301_v44  ;;  %10621 = vst [vmem:[#allocation40_spill] sm:$0xff] %v8950_v13  ;;  %v8953_v44 = vld [vmem:[#allocation2 + $0xfc] sm:$0xff]  }
 0x190   :  { %v6367_v61 = vadd.f32 %v6366_v10, %v6365_v54  ;;  %3948 = vmatmul.mubr.bf16.gmra.mrb[140].mxu0 %v8934_v33  ;;  %v2497_v32 = vrot.slane %v2495_v16, 1 }
 0x191   :  { %3659 = vmatmul.mubr.bf16.gmra.mrb[128].mxu1 %v8856_v57  ;;  %v1470_v3 = vadd.f32 %v6303_v55, %v8747_v60  ;;  %4116 = vmatprep.mubr.bf16.mxu0 %v8549_v62  ;;  %v8944_v26 = vadd.f32 %v6364_v50, %v1467_v38  ;;  %v2500_v60 = vshll.u32 %v8939_v17, 16  ;;  %v8955_v62 = vld [vmem:[#allocation7 + $0x200] sm:$0xff]  }
 0x192   :  { %3666 = vmatprep.mubr.bf16.mxu1 %v2479_v43  ;;  %v2493_v43 = vshrl.u32 %v8931_v59, 16  ;;  %10622 = vst [vmem:[#allocation41_spill] sm:$0xff] %v8955_v62  ;;  %v7492_v55 = vld [vmem:[#allocation7 + $0x180] sm:$0xff]   ;;  %6606 = vmatprep.subr.bf16.mxu1 %v8955_v62 }
 0x193   :  { %v6304_v1 = vpop.f32.mrb[52].mxu0  ;;  %v8947_v10 = vadd.f32 %v6367_v61, %v1470_v3  ;;  %v2502_v16 = vrot.slane %v2500_v60, 1  ;;  %v8962_v3 = vld [vmem:[#allocation2 + $0x104] ss:$0 sps:$4 sm:$0xff]  }
 0x194   :  { %v6368_v54 = vpop.f32.mrb[52].mxu1  ;;  %v6305_v52 = vpop.f32.mrb[53].mxu0  ;;  %v2498_v27 = vor.u32 %v2497_v32, %v2493_v43  ;;  %10623 = vst [vmem:[#allocation42_spill] sm:$0xff] %v8962_v3 }
 0x195   :  { %v6369_v57 = vpop.f32.mrb[53].mxu1  ;;  %v6306_v50 = vadd.f32 %v6305_v52, %v6304_v1  ;;  %v6307_v25 = vpop.f32.mrb[54].mxu0  ;;  %v7497_v52 = vld [vmem:[#allocation7 + $0x188] sm:$0xff]  }
 0x196   :  { %v6370_v35 = vadd.f32 %v6369_v57, %v6368_v54  ;;  %v6371_v56 = vpop.f32.mrb[54].mxu1  ;;  %v6308_v54 = vpop.f32.mrb[55].mxu0  ;;  %v2507_v57 = vshll.u32 %v8953_v44, 16 }
 0x197   :  { %v6372_v2 = vpop.f32.mrb[55].mxu1  ;;  %v1475_v61 = vadd.f32 %v6306_v50, %v8772_v29  ;;  %v6309_v63 = vadd.f32 %v6308_v54, %v6307_v25  ;;  %v10624_v50 = vmov 0  }
 0x198   :  { %v6373_v38 = vadd.f32 %v6372_v2, %v6371_v56  ;;  %4117 = vmatmul.mubr.bf16.vlgmr.msra.gmra.mrb[80].mxu0 %v8523_v18 }
 0x199   :  { %3667 = vmatmul.mubr.bf16.gmra.mrb[132].mxu1 %v8881_v8  ;;  %v1478_v1 = vadd.f32 %v6309_v63, %v8774_v30  ;;  %4374 = vmatpush1.bf16.msra.mxu0 %v7492_v55  ;;  %v8967_v2 = vadd.f32 %v6370_v35, %v1475_v61  ;;  %v2505_v30 = vshrl.u32 %v8953_v44, 16  ;;  %v2509_v55 = vrot.slane %v2507_v57, 1  ;;  %v8977_v35 = vld [vmem:[#allocation2 + $0x108] sm:$0xff]  }
 0x19a   :  { %3674 = vmatprep.mubr.bf16.mxu1 %v8950_v13  ;;  %4124 = vmatprep.mubr.bf16.mxu0 %v8574_v48  ;;  %v8973_v13 = vsel %vm2275_vm3, %v2498_v27, %v2502_v16  ;;  %v2512_v63 = vshll.u32 %v8962_v3, 16 }
 0x19b   :  { %4375 = vmatprep.subr.bf16.mxu0 %v10624_v50  ;;  %v6310_v25 = vpop.f32.mrb[56].mxu0  ;;  %v8970_v32 = vadd.f32 %v6373_v38, %v1478_v1  ;;  %10625 = vst [vmem:[#allocation43_spill] sm:$0xff] %v8973_v13  ;;  %v2510_v16 = vor.u32 %v2509_v55, %v2505_v30  ;;  %v8984_v1 = vld [vmem:[#allocation2 + $0x110] ss:$0 sps:$4 sm:$0xff]  }
 0x19c   :  { %v6374_v56 = vpop.f32.mrb[56].mxu1  ;;  %v6311_v60 = vpop.f32.mrb[57].mxu0  ;;  %v2514_v57 = vrot.slane %v2512_v63, 1 }
 0x19d   :  { %v6375_v29 = vpop.f32.mrb[57].mxu1  ;;  %v6312_v61 = vadd.f32 %v6311_v60, %v6310_v25  ;;  %v6313_v48 = vpop.f32.mrb[58].mxu0  ;;  %4376 = vmatpush1.bf16.msra.mxu0 %v7497_v52  ;;  %v2519_v25 = vshll.u32 %v8977_v35, 16 }
 0x19e   :  { %v6376_v18 = vadd.f32 %v6375_v29, %v6374_v56  ;;  %v6377_v43 = vpop.f32.mrb[58].mxu1  ;;  %v7502_v56 = vld [vmem:[#allocation7 + $0x190] sm:$0xff]   ;;  %v6314_v29 = vpop.f32.mrb[59].mxu0  ;;  %4377 = vmatprep.subr.bf16.mxu0 %v10624_v50 }
 0x19f   :  { %v6378_v54 = vpop.f32.mrb[59].mxu1  ;;  %v1483_v38 = vadd.f32 %v6312_v61, %v8797_v46  ;;  %v6315_v27 = vadd.f32 %v6314_v29, %v6313_v48  ;;  %v7507_v46 = vld [vmem:[#allocation7 + $0x198] sm:$0xff]   ;;  %v4955_v29 = vlaneseq }
 0x1a0   :  { %v6379_v62 = vadd.f32 %v6378_v54, %v6377_v43  ;;  %4125 = vmatmul.mubr.bf16.gmra.mrb[84].mxu0 %v8541_v22  ;;  %v7686_v54 = vmov 1966171168   ;;  %v8992_v22 = vld [vmem:[#allocation2 + $0x114] sm:$0xff]  }
 0x1a1   :  { %3675 = vmatmul.mubr.bf16.gmra.mrb[136].mxu1 %v8906_v34  ;;  %v1486_v52 = vadd.f32 %v6315_v27, %v8799_v5  ;;  %4132 = vmatprep.mubr.bf16.mxu0 %v8604_v28  ;;  %v8989_v60 = vadd.f32 %v6376_v18, %v1483_v38  ;;  %v4953_v61 = vunpack.c.l.s4 %v7686_v54  ;;  %v2517_v18 = vshrl.u32 %v8977_v35, 16 }
 0x1a2   :  { %3682 = vmatprep.mubr.bf16.mxu1 %v8973_v13  ;;  %4378 = vmatpush1.bf16.msra.mxu0 %v7502_v56  ;;  %v8997_v56 = vsel %vm2275_vm3, %v2510_v16, %v2514_v57  ;;  %v2521_v38 = vrot.slane %v2519_v25, 1  ;;  %v2524_v54 = vshll.u32 %v8984_v1, 16  ;;  %v5920_v25 = vld [vmem:[%s10462_s5] ss:$0 sm:$0xff] }
 0x1a3   :  { %4379 = vmatprep.subr.bf16.mxu0 %v10624_v50  ;;  %v6316_v30 = vpop.f32.mrb[60].mxu0  ;;  %v8994_v13 = vadd.f32 %v6379_v62, %v1486_v52  ;;  %10626 = vst [vmem:[#allocation44_spill] sm:$0xff] %v8997_v56  ;;  %v4954_v62 = vunpack.c.0.s8 %v4953_v61  ;;  %v9002_v52 = vshrl.u32 %v4955_v29, 7 }
 0x1a4   :  { %v6380_v43 = vpop.f32.mrb[60].mxu1  ;;  %v6317_v5 = vpop.f32.mrb[61].mxu0  ;;  %v2522_v61 = vor.u32 %v2521_v38, %v2517_v18  ;;  %v2526_v29 = vrot.slane %v2524_v54, 1  ;;  %v2529_v18 = vshrl.u32 %v8992_v22, 16 }
 0x1a5   :  { %v6381_v48 = vpop.f32.mrb[61].mxu1  ;;  %v6318_v28 = vadd.f32 %v6317_v5, %v6316_v30  ;;  %v6319_v3 = vpop.f32.mrb[62].mxu0  ;;  %10627 = vst [vmem:[#allocation45_spill] sm:$0xff] %v9002_v52  ;;  %v9010_v30 = vld [vmem:[#allocation2 + $0x11c] ss:$0 sps:$4 sm:$0xff]  }
 0x1a6   :  { %v6382_v55 = vadd.f32 %v6381_v48, %v6380_v43  ;;  %v6383_v63 = vpop.f32.mrb[62].mxu1  ;;  %4380 = vmatpush1.bf16.msra.mxu0 %v7507_v46  ;;  %v7512_v43 = vld [vmem:[#allocation7 + $0x1a0] sm:$0xff]   ;;  %v6320_v48 = vpop.f32.mrb[63].mxu0  ;;  %v2531_v46 = vshll.u32 %v8992_v22, 16 }
 0x1a7   :  { %v6384_v27 = vpop.f32.mrb[63].mxu1  ;;  %4381 = vmatprep.subr.bf16.mxu0 %v10624_v50  ;;  %v1491_v16 = vadd.f32 %v6318_v28, %v8822_v58  ;;  %v6321_v57 = vadd.f32 %v6320_v48, %v6319_v3  ;;  %v7517_v58 = vld [vmem:[#allocation7 + $0x1a8] sm:$0xff]  }
 0x1a8   :  { %v6385_v17 = vadd.f32 %v6384_v27, %v6383_v63  ;;  %4133 = vmatmul.mubr.bf16.gmra.mrb[88].mxu0 %v8566_v4  ;;  %v9019_v27 = vsub.s32 %v4954_v62, %v9002_v52  ;;  %v2533_v38 = vrot.slane %v2531_v46, 1  ;;  %v9030_v62 = vld [vmem:[#allocation2 + $0x120] sm:$0xff]  }
 0x1a9   :  { %3683 = vmatmul.mubr.bf16.gmra.mrb[140].mxu1 %v8931_v59  ;;  %v1494_v63 = vadd.f32 %v6321_v57, %v8824_v11  ;;  %4140 = vmatprep.mubr.bf16.mxu0 %v8635_v12  ;;  %v9016_v28 = vadd.f32 %v6382_v55, %v1491_v16  ;;  %v2536_v11 = vshll.u32 %v9010_v30, 16  ;;  %v9028_v57 = vsel %vm2275_vm3, %v2522_v61, %v2526_v29 }
 0x1aa   :  { %3690 = vmatprep.mubr.bf16.mxu1 %v8997_v56  ;;  %4382 = vmatpush1.bf16.msra.mxu0 %v7512_v43  ;;  %10628 = vst [vmem:[#allocation46_spill] sm:$0xff] %v9019_v27 }
 0x1ab   :  { %4383 = vmatprep.subr.bf16.mxu0 %v10624_v50  ;;  %v6557_v56 = vpop.f32.mrb[64].mxu0  ;;  %v9024_v54 = vadd.f32 %v6385_v17, %v1494_v63  ;;  %v2538_v61 = vrot.slane %v2536_v11, 1 }
 0x1ac   :  { %v1982_v5 = vpop.f32.mrb[64].mxu1  ;;  %v1637_v55 = vadd.f32 %v6557_v56, %v8872_v19  ;;  %v1628_v16 = vpop.f32.mrb[65].mxu0  ;;  %v2534_v56 = vor.u32 %v2533_v38, %v2529_v18  ;;  %v10524_v38 = vsub.s32 0, %v9002_v52 }
 0x1ad   :  { %v1983_v3 = vadd.f32 %v5920_v25, %v1982_v5  ;;  %v6605_v48 = vpop.f32.mrb[65].mxu1  ;;  %v1629_v25 = vadd.f32 %v1628_v16, %v8847_v15  ;;  %v6558_v5 = vpop.f32.mrb[66].mxu0 }
 0x1ae   :  { %4384 = vmatpush1.bf16.msra.mxu0 %v7517_v58  ;;  %v7522_v48 = vld [vmem:[#allocation7 + $0x1b0] sm:$0xff]   ;;  %v1640_v46 = vadd.f32 %v6558_v5, %v8874_v21  ;;  %v1631_v17 = vpop.f32.mrb[67].mxu0  ;;  %v1693_v15 = vmax.f32 %v1637_v55, 0.0  ;;  %v9044_v21 = vld [vmem:[#allocation2 + $0x128] ss:$0 sps:$4 sm:$0xff]   ;;  %v2543_v58 = vshll.u32 %v9030_v62, 16  ;;  %v9056_v5 = vsel %vm2275_vm3, %v2534_v56, %v2538_v61 }
 0x1af   :  { %v1986_v43 = vmax.f32 %v1983_v3, 0.0  ;;  %4385 = vmatprep.subr.bf16.mxu0 %v10624_v50  ;;  %v1632_v19 = vadd.f32 %v1631_v17, %v8849_v7  ;;  %v1691_v3 = vmax.f32 %v1629_v25, 0.0  ;;  %v7527_v7 = vld [vmem:[#allocation7 + $0x1b8] sm:$0xff]   ;;  %v2541_v25 = vshrl.u32 %v9030_v62, 16  ;;  %v7532_v56 = vld [vmem:[#allocation7 + $0x1c0] sm:$0xff]  }
 0x1b0   :  { %v1694_v29 = vmax.f32 %v1640_v46, 0.0  ;;  %4141 = vmatmul.mubr.bf16.gmra.mrb[92].mxu0 %v8596_v20  ;;  %v9059_v46 = vld [vmem:[#allocation2 + $0x12c] sm:$0xff]  }
 0x1b1   :  { %v9035_v4 = vrot.slane %v1986_v43, %v9019_v27  ;;  %3691 = vmatmul.mubr.bf16.gmra.mrb[144].mxu1 %v8953_v44  ;;  %v1692_v16 = vmax.f32 %v1632_v19, 0.0  ;;  %4148 = vmatprep.mubr.bf16.mxu0 %v8666_v9 }
 0x1b2   :  { %3698 = vmatprep.mubr.bf16.mxu1 %v9028_v57  ;;  %4386 = vmatpush1.bf16.msra.mxu0 %v7522_v48  ;;  %v9048_v43 = vpack.c.bf16 %v1694_v29, %v1693_v15  ;;  %v2545_v15 = vrot.slane %v2543_v58, 1  ;;  %v2548_v29 = vshll.u32 %v9044_v21, 16 }
 0x1b3   :  { %10629 = vst [vmem:[#allocation47_spill] sm:$0xff] %v9035_v4  ;;  %v4959_v63 = vcombine.high %v9035_v4, %v9035_v4  ;;  %4387 = vmatprep.subr.bf16.mxu0 %v10624_v50  ;;  %v9053_v11 = vpack.c.bf16 %v1692_v16, %v1691_v3  ;;  %v6561_v55 = vpop.f32.mrb[68].mxu0 }
 0x1b4   :  { %v1653_v17 = vadd.f32 %v6561_v55, %v8924_v39  ;;  %v1644_v19 = vpop.f32.mrb[69].mxu0  ;;  %v2555_v39 = vshll.u32 %v9059_v46, 16 }
 0x1b5   :  { %v4973_v18 = vrot.slane %v4959_v63, %v9019_v27  ;;  %v1645_v63 = vadd.f32 %v1644_v19, %v8897_v45  ;;  %v6562_v3 = vpop.f32.mrb[70].mxu0  ;;  %v2546_v45 = vor.u32 %v2545_v15, %v2541_v25  ;;  %v9075_v19 = vld [vmem:[#allocation2 + $0x134] ss:$0 sps:$4 sm:$0xff]  }
 0x1b6   :  { %4388 = vmatpush1.bf16.msra.mxu0 %v7527_v7  ;;  %v1656_v61 = vadd.f32 %v6562_v3, %v8926_v24  ;;  %v1647_v16 = vpop.f32.mrb[71].mxu0  ;;  %v1697_v58 = vmax.f32 %v1653_v17, 0.0  ;;  %v2550_v7 = vrot.slane %v2548_v29, 1 }
 0x1b7   :  { %v9063_v48 = vrot.slane %v4973_v18, %v10524_v38  ;;  %4389 = vmatprep.subr.bf16.mxu0 %v10624_v50  ;;  %v1648_v18 = vadd.f32 %v1647_v16, %v8899_v31  ;;  %v1695_v24 = vmax.f32 %v1645_v63, 0.0  ;;  %v7537_v38 = vld [vmem:[#allocation7 + $0x1c8] sm:$0xff]   ;;  %v2557_v16 = vrot.slane %v2555_v39, 1 }
 0x1b8   :  { %v1698_v55 = vmax.f32 %v1656_v61, 0.0  ;;  %4149 = vmatmul.mubr.bf16.gmra.mrb[96].mxu0 %v8627_v36  ;;  %v2553_v61 = vshrl.u32 %v9059_v46, 16  ;;  %v9086_v29 = vsel %vm2275_vm3, %v2546_v45, %v2550_v7  ;;  %v2560_v63 = vshll.u32 %v9075_v19, 16  ;;  %v9097_v45 = vld [vmem:[#allocation2 + $0x140] ss:$0 sps:$4 sm:$0xff]  }
 0x1b9   :  { %10630 = vst [vmem:[#allocation48_spill] sm:$0xff] %v9063_v48  ;;  %3699 = vmatmul.mubr.bf16.gmra.mrb[148].mxu1 %v8977_v35  ;;  %v1696_v3 = vmax.f32 %v1648_v18, 0.0  ;;  %4156 = vmatprep.mubr.bf16.mxu0 %v8697_v0 }
 0x1ba   :  { %3706 = vmatprep.mubr.bf16.mxu1 %v9056_v5  ;;  %4390 = vmatpush1.bf16.msra.mxu0 %v7532_v56  ;;  %v9078_v48 = vpack.c.bf16 %v1698_v55, %v1697_v58  ;;  %v9089_v56 = vld [vmem:[#allocation2 + $0x138] sm:$0xff]   ;;  %v7541_v55 = vld [vmem:[#allocation7 + $0x1d0] sm:$0xff]   ;;  %v2558_v39 = vor.u32 %v2557_v16, %v2553_v61  ;;  %v2572_v16 = vshll.u32 %v9097_v45, 16 }
 0x1bb   :  { %4391 = vmatprep.subr.bf16.mxu0 %v10624_v50  ;;  %v9081_v31 = vpack.c.bf16 %v1696_v3, %v1695_v24  ;;  %v6565_v17 = vpop.f32.mrb[72].mxu0 }
 0x1bc   :  { %v1669_v25 = vadd.f32 %v6565_v17, %v8967_v2  ;;  %v1660_v15 = vpop.f32.mrb[73].mxu0 }
 0x1bd   :  { %v1661_v18 = vadd.f32 %v1660_v15, %v8944_v26  ;;  %v6566_v58 = vpop.f32.mrb[74].mxu0  ;;  %v2562_v26 = vrot.slane %v2560_v63, 1 }
 0x1be   :  { %4392 = vmatpush1.bf16.msra.mxu0 %v7537_v38  ;;  %v1672_v24 = vadd.f32 %v6566_v58, %v8970_v32  ;;  %v1663_v3 = vpop.f32.mrb[75].mxu0  ;;  %v1701_v7 = vmax.f32 %v1669_v25, 0.0  ;;  %v2567_v38 = vshll.u32 %v9089_v56, 16 }
 0x1bf   :  { %4393 = vmatprep.subr.bf16.mxu0 %v10624_v50  ;;  %v1664_v2 = vadd.f32 %v1663_v3, %v8947_v10  ;;  %v1699_v32 = vmax.f32 %v1661_v18, 0.0  ;;  %v9110_v63 = vsel %vm2275_vm3, %v2558_v39, %v2562_v26  ;;  %v2565_v18 = vshrl.u32 %v9089_v56, 16 }
 0x1c0   :  { %v1702_v17 = vmax.f32 %v1672_v24, 0.0  ;;  %4157 = vmatmul.mubr.bf16.gmra.mrb[100].mxu0 %v8658_v47  ;;  %v2569_v3 = vrot.slane %v2567_v38, 1 }
 0x1c1   :  { %3707 = vmatmul.mubr.bf16.gmra.mrb[152].mxu1 %v8992_v22  ;;  %v1700_v15 = vmax.f32 %v1664_v2, 0.0  ;;  %4164 = vmatprep.mubr.bf16.mxu0 %v8728_v6  ;;  %v9113_v2 = vld [vmem:[#allocation2 + $0x144] sm:$0xff]  }
 0x1c2   :  { %3714 = vmatprep.mubr.bf16.mxu1 %v9086_v29  ;;  %4394 = vmatpush1.bf16.msra.mxu0 %v7541_v55  ;;  %v9102_v58 = vpack.c.bf16 %v1702_v17, %v1701_v7  ;;  %v2570_v38 = vor.u32 %v2569_v3, %v2565_v18 }
 0x1c3   :  { %4395 = vmatprep.subr.bf16.mxu0 %v10624_v50  ;;  %v9105_v10 = vpack.c.bf16 %v1700_v15, %v1699_v32  ;;  %v6569_v61 = vpop.f32.mrb[76].mxu0 }
 0x1c4   :  { %10631 = vst [vmem:[#allocation49_spill] sm:$0xff] %v9102_v58  ;;  %v1685_v25 = vadd.f32 %v6569_v61, %v9016_v28  ;;  %v1676_v24 = vpop.f32.mrb[77].mxu0  ;;  %v2574_v28 = vrot.slane %v2572_v16, 1  ;;  %v9121_v61 = vld [vmem:[#allocation2 + $0x14c] ss:$0 sps:$4 sm:$0xff]  }
 0x1c5   :  { %10632 = vst [vmem:[#allocation50_spill] sm:$0xff] %v9105_v10  ;;  %v1677_v55 = vadd.f32 %v1676_v24, %v8989_v60  ;;  %v6570_v7 = vpop.f32.mrb[78].mxu0  ;;  %v2579_v60 = vshll.u32 %v9113_v2, 16  ;;  %v7542_v24 = vld [vmem:[#allocation7 + $0x1d8] sm:$0xff]   ;;  %v2584_v3 = vshll.u32 %v9121_v61, 16 }
 0x1c6   :  { %v1688_v17 = vadd.f32 %v6570_v7, %v9024_v54  ;;  %v1679_v32 = vpop.f32.mrb[79].mxu0  ;;  %v1705_v39 = vmax.f32 %v1685_v25, 0.0  ;;  %4396 = vmatpush1.bf16.msra.mxu0 %v7542_v24  ;;  %v9131_v16 = vsel %vm2275_vm3, %v2570_v38, %v2574_v28  ;;  %v2577_v25 = vshrl.u32 %v9113_v2, 16  ;;  %v9183_v58 = vld [vmem:[#allocation2 + $0x17c] ss:$0 sps:$4 sm:$0xff]  }
 0x1c7   :  { %v1680_v15 = vadd.f32 %v1679_v32, %v8994_v13  ;;  %v1703_v52 = vmax.f32 %v1677_v55, 0.0  ;;  %4397 = vmatprep.subr.bf16.mxu0 %v10624_v50  ;;  %v2581_v18 = vrot.slane %v2579_v60, 1  ;;  %v2586_v55 = vrot.slane %v2584_v3, 1  ;;  %v9140_v32 = vld [vmem:[#allocation2 + $0x158] ss:$0 sps:$4 sm:$0xff]   ;;  %v9149_v60 = vld [vmem:[#allocation2 + $0x15c] sm:$0xff]  }
 0x1c8   :  { %v1706_v26 = vmax.f32 %v1688_v17, 0.0  ;;  %4165 = vmatmul.mubr.bf16.gmra.mrb[104].mxu0 %v8689_v49  ;;  %v9135_v17 = vld [vmem:[#allocation2 + $0x150] sm:$0xff]   ;;  %v2596_v38 = vshll.u32 %v9140_v32, 16 }
 0x1c9   :  { %3715 = vmatmul.mubr.bf16.gmra.mrb[156].mxu1 %v9030_v62  ;;  %v1704_v54 = vmax.f32 %v1680_v15, 0.0  ;;  %4172 = vmatprep.mubr.bf16.mxu0 %v8758_v14  ;;  %v2591_v15 = vshll.u32 %v9135_v17, 16  ;;  %v7543_v3 = vld [vmem:[#allocation7 + $0x1e0] sm:$0xff]  }
 0x1ca   :  { %3722 = vmatprep.mubr.bf16.mxu1 %v9110_v63  ;;  %v9125_v7 = vpack.c.bf16 %v1706_v26, %v1705_v39  ;;  %v2589_v39 = vshrl.u32 %v9135_v17, 16  ;;  %4398 = vmatpush1.bf16.msra.mxu0 %v7543_v3  ;;  %v9169_v3 = vld [vmem:[#allocation2 + $0x170] ss:$0 sps:$4 sm:$0xff]  }
 0x1cb   :  { %v9127_v13 = vpack.c.bf16 %v1704_v54, %v1703_v52  ;;  %v2582_v52 = vor.u32 %v2581_v18, %v2577_v25  ;;  %v2593_v26 = vrot.slane %v2591_v15, 1  ;;  %v2598_v54 = vrot.slane %v2596_v38, 1  ;;  %v9154_v25 = vld [vmem:[#allocation2 + $0x164] ss:$0 sps:$4 sm:$0xff]   ;;  %4399 = vmatprep.subr.bf16.mxu0 %v10624_v50 }
 0x1cc   :  { %10633 = vst [vmem:[#allocation51_spill] sm:$0xff] %v9125_v7  ;;  %v2603_v18 = vshll.u32 %v9149_v60, 16  ;;  %v2608_v4 = vshll.u32 %v9154_v25, 16  ;;  %v2620_v7 = vshll.u32 %v9169_v3, 16 }
 0x1cd   :  { %10634 = vst [vmem:[#allocation52_spill] sm:$0xff] %v9127_v13  ;;  %v9145_v28 = vsel %vm2275_vm3, %v2582_v52, %v2586_v55  ;;  %v2594_v24 = vor.u32 %v2593_v26, %v2589_v39  ;;  %v2601_v55 = vshrl.u32 %v9149_v60, 16  ;;  %v9164_v39 = vld [vmem:[#allocation2 + $0x168] sm:$0xff]   ;;  %v9178_v13 = vld [vmem:[#allocation2 + $0x174] sm:$0xff]  }
 0x1ce   :  { %v2605_v15 = vrot.slane %v2603_v18, 1  ;;  %v2610_v38 = vrot.slane %v2608_v4, 1  ;;  %v2613_v18 = vshrl.u32 %v9164_v39, 16  ;;  %v10635_v4 = vld [vmem:[#allocation26_spill] sm:$0xff] }
 0x1cf   :  { %v9160_v52 = vsel %vm2275_vm3, %v2594_v24, %v2598_v54  ;;  %v2615_v24 = vshll.u32 %v9164_v39, 16 }
 0x1d0   :  { %4173 = vmatmul.mubr.bf16.gmra.mrb[108].mxu0 %v8720_v53  ;;  %v2606_v26 = vor.u32 %v2605_v15, %v2601_v55  ;;  %v2622_v15 = vrot.slane %v2620_v7, 1 }
 0x1d1   :  { %3723 = vmatmul.mubr.bf16.gmra.mrb[160].mxu1 %v9059_v46  ;;  %4180 = vmatprep.mubr.bf16.mxu0 %v8784_v40  ;;  %v2617_v27 = vrot.slane %v2615_v24, 1  ;;  %v10637_v24 = vld [vmem:[#allocation31_spill] sm:$0xff] }
 0x1d2   :  { %3730 = vmatprep.mubr.bf16.mxu1 %v9131_v16  ;;  %v9174_v54 = vsel %vm2275_vm3, %v2606_v26, %v2610_v38  ;;  %v2627_v26 = vshll.u32 %v9178_v13, 16  ;;  %v7544_v38 = vld [vmem:[#allocation7 + $0x1e8] sm:$0xff]  }
 0x1d3   :  { %v2618_v55 = vor.u32 %v2617_v27, %v2613_v18  ;;  %4400 = vmatpush1.bf16.msra.mxu0 %v7544_v38  ;;  %v2625_v27 = vshrl.u32 %v9178_v13, 16  ;;  %v2632_v18 = vshll.u32 %v9183_v58, 16 }
 0x1d4   :  { %4401 = vmatprep.subr.bf16.mxu0 %v10624_v50  ;;  %v2629_v7 = vrot.slane %v2627_v26, 1 }
 0x1d6   :  { %v2630_v38 = vor.u32 %v2629_v7, %v2625_v27  ;;  %v9215_v7 = vld [vmem:[#allocation2 + $0x18c] sm:$0xff]  }
 0x1d8   :  { %4181 = vmatmul.mubr.bf16.gmra.mrb[112].mxu0 %v8751_v41 }
 0x1d9   :  { %3731 = vmatmul.mubr.bf16.gmra.mrb[164].mxu1 %v9089_v56  ;;  %4188 = vmatprep.mubr.bf16.mxu0 %v8809_v37 }
 0x1da   :  { %3738 = vmatprep.mubr.bf16.mxu1 %v9145_v28 }
 0x1e0   :  { %4189 = vmatmul.mubr.bf16.gmra.mrb[116].mxu0 %v8777_v23 }
 0x1e1   :  { %3739 = vmatmul.mubr.bf16.gmra.mrb[168].mxu1 %v9113_v2  ;;  %4196 = vmatprep.mubr.bf16.mxu0 %v8834_v42  ;;  %v9197_v42 = vld [vmem:[#allocation2 + $0x180] sm:$0xff]  }
 0x1e2   :  { %3746 = vmatprep.mubr.bf16.mxu1 %v9160_v52  ;;  %v2637_v40 = vshrl.u32 %v9197_v42, 16 }
 0x1e8   :  { %4197 = vmatmul.mubr.bf16.gmra.mrb[120].mxu0 %v10635_v4  ;;  %v9193_v4 = vsel %vm2275_vm3, %v2618_v55, %v2622_v15  ;;  %v10641_v15 = vld [vmem:[#allocation33_spill] sm:$0xff] }
 0x1e9   :  { %3747 = vmatmul.mubr.bf16.gmra.mrb[172].mxu1 %v9135_v17  ;;  %4204 = vmatprep.mubr.bf16.mxu0 %v10637_v24 }
 0x1ea   :  { %3754 = vmatprep.mubr.bf16.mxu1 %v9174_v54 }
 0x1ec   :  { %v9186_v23 = vpop.f32.mrb[68].mxu1 }
 0x1ed   :  { %10636 = vst [vmem:[#allocation53_spill] sm:$0xff] %v9186_v23  ;;  %v3542_v41 = vpop.f32.mrb[69].mxu1  ;;  %v9202_v23 = vld [vmem:[#allocation2 + $0x188] ss:$0 sps:$4 sm:$0xff]  }
 0x1ee   :  { %v9189_v53 = vpop.f32.mrb[70].mxu1  ;;  %v10639_v41 = vld [vmem:[#allocation28_spill] sm:$0xff]  ;;  %v2644_v27 = vshll.u32 %v9202_v23, 16 }
 0x1ef   :  { %10638 = vst [vmem:[#allocation54_spill] sm:$0xff] %v9189_v53  ;;  %v3545_v49 = vpop.f32.mrb[71].mxu1  ;;  %v2634_v53 = vrot.slane %v2632_v18, 1  ;;  %v10643_v18 = vld [vmem:[#allocation30_spill] sm:$0xff] }
 0x1f0   :  { %4205 = vmatmul.mubr.bf16.gmra.mrb[124].mxu0 %v10639_v41  ;;  %v2639_v49 = vshll.u32 %v9197_v42, 16 }
 0x1f1   :  { %3755 = vmatmul.mubr.bf16.gmra.mrb[176].mxu1 %v9149_v60  ;;  %4212 = vmatprep.mubr.bf16.mxu0 %v10641_v15  ;;  %v9211_v37 = vsel %vm2275_vm3, %v2630_v38, %v2634_v53  ;;  %v7545_v53 = vld [vmem:[#allocation7 + $0x1f0] sm:$0xff]  }
 0x1f2   :  { %3762 = vmatprep.mubr.bf16.mxu1 %v9193_v4  ;;  %v2641_v41 = vrot.slane %v2639_v49, 1  ;;  %v10645_v49 = vld [vmem:[#allocation36_spill] sm:$0xff]  ;;  %4402 = vmatpush1.bf16.msra.mxu0 %v7545_v53 }
 0x1f3   :  { %4403 = vmatprep.subr.bf16.mxu0 %v10624_v50 }
 0x1f4   :  { %v9205_v55 = vpop.f32.mrb[72].mxu1 }
 0x1f5   :  { %10640 = vst [vmem:[#allocation55_spill] sm:$0xff] %v9205_v55  ;;  %v3550_v26 = vpop.f32.mrb[73].mxu1  ;;  %v2646_v55 = vrot.slane %v2644_v27, 1 }
 0x1f6   :  { %v9208_v24 = vpop.f32.mrb[74].mxu1  ;;  %v2642_v26 = vor.u32 %v2641_v41, %v2637_v40  ;;  %v2649_v40 = vshrl.u32 %v9215_v7, 16 }
 0x1f7   :  { %10642 = vst [vmem:[#allocation56_spill] sm:$0xff] %v9208_v24  ;;  %v3553_v47 = vpop.f32.mrb[75].mxu1  ;;  %v9220_v24 = vld [vmem:[#allocation2 + $0x194] ss:$0 sps:$4 sm:$0xff]  }
 0x1f8   :  { %4213 = vmatmul.mubr.bf16.gmra.mrb[128].mxu0 %v10643_v18  ;;  %v2651_v47 = vshll.u32 %v9215_v7, 16  ;;  %v9230_v18 = vsel %vm2275_vm3, %v2642_v26, %v2646_v55  ;;  %v2656_v27 = vshll.u32 %v9220_v24, 16 }
 0x1f9   :  { %3763 = vmatmul.mubr.bf16.gmra.mrb[180].mxu1 %v9164_v39  ;;  %4220 = vmatprep.mubr.bf16.mxu0 %v10645_v49 }
 0x1fa   :  { %3770 = vmatprep.mubr.bf16.mxu1 %v9211_v37  ;;  %v2653_v41 = vrot.slane %v2651_v47, 1 }
 0x1fc   :  { %v9223_v38 = vpop.f32.mrb[76].mxu1  ;;  %v2654_v53 = vor.u32 %v2653_v41, %v2649_v40 }
 0x1fd   :  { %10644 = vst [vmem:[#allocation57_spill] sm:$0xff] %v9223_v38  ;;  %v3558_v15 = vpop.f32.mrb[77].mxu1  ;;  %v7530_v38 = vld [vmem:[#allocation2 + $0xc8] ss:$0 sps:$4 sm:$0xff]  }
 0x1fe   :  { %v9226_v36 = vpop.f32.mrb[78].mxu1  ;;  %v10647_v15 = vld [vmem:[#allocation32_spill] sm:$0xff]  ;;  %v2866_v47 = vrot.slane %v7530_v38, 1  ;;  %v2847_v41 = vshll.u32 %v7530_v38, 16  ;;  %v2745_v38 = vrot.slane %v8917_v51, 1 }
 0x1ff   :  { %10646 = vst [vmem:[#allocation58_spill] sm:$0xff] %v9226_v36  ;;  %v3561_v14 = vpop.f32.mrb[79].mxu1  ;;  %v2658_v36 = vrot.slane %v2656_v27, 1 }
 0x200   :  { %4221 = vmatmul.mubr.bf16.gmra.mrb[132].mxu0 %v10647_v15  ;;  %v10649_v14 = vld [vmem:[#allocation37_spill] sm:$0xff] }
 0x201   :  { %3771 = vmatmul.mubr.bf16.gmra.mrb[184].mxu1 %v9178_v13  ;;  %4228 = vmatprep.mubr.bf16.mxu0 %v8934_v33  ;;  %v2842_v50 = vshll.u32 %v10649_v14, 16  ;;  %v2865_v26 = vrot.slane %v10649_v14, 1  ;;  %v9245_v20 = vsel %vm2275_vm3, %v2654_v53, %v2658_v36  ;;  %v2840_v15 = vshrl.u32 %v10649_v14, 16 }
 0x202   :  { %3778 = vmatprep.mubr.bf16.mxu1 %v9230_v18  ;;  %v2744_v14 = vrot.slane %v8906_v34, 1 }
 0x203   :  { %v2844_v40 = vrot.slane %v2842_v50, 1  ;;  %v9250_v27 = vsel %vm1739_vm0, %v2865_v26, %v2866_v47 }
 0x204   :  { %v9237_v49 = vpop.f32.mrb[80].mxu1 }
 0x205   :  { %10648 = vst [vmem:[#allocation59_spill] sm:$0xff] %v9237_v49  ;;  %v3566_v55 = vpop.f32.mrb[81].mxu1  ;;  %v7546_v49 = vld [vmem:[#allocation7 + $0x1f8] sm:$0xff]   ;;  %v2845_v36 = vor.u32 %v2844_v40, %v2840_v15  ;;  %v2741_v15 = vrot.slane %v8881_v8, 1  ;;  %v10653_v40 = vld [vmem:[#allocation34_spill] sm:$0xff] }
 0x206   :  { %v9242_v6 = vpop.f32.mrb[82].mxu1  ;;  %v10650_v55 = vld [vmem:[#allocation35_spill] sm:$0xff]  ;;  %4404 = vmatpush1.bf16.msra.mxu0 %v7546_v49 }
 0x207   :  { %v3569_v10 = vpop.f32.mrb[83].mxu1 }
 0x208   :  { %4229 = vmatmul.mubr.bf16.gmra.mrb[136].mxu0 %v10650_v55  ;;  %v2849_v10 = vrot.slane %v2847_v41, 1  ;;  %v2742_v41 = vrot.slane %v10653_v40, 1  ;;  %v10656_v40 = vld [vmem:[#allocation41_spill] sm:$0xff] }
 0x209   :  { %3779 = vmatmul.mubr.bf16.gmra.mrb[188].mxu1 %v9197_v42  ;;  %4236 = vmatprep.mubr.bf16.mxu0 %v9250_v27 }
 0x20a   :  { %3786 = vmatprep.mubr.bf16.mxu1 %v9245_v20  ;;  %v9262_v47 = vsel %vm2275_vm3, %v2845_v36, %v2849_v10  ;;  %v10655_v36 = vld [vmem:[#allocation39_spill] sm:$0xff] }
 0x20b   :  { %v2748_v10 = vrot.slane %v10655_v36, 1 }
 0x20c   :  { %v9254_v33 = vpop.f32.mrb[84].mxu1 }
 0x20d   :  { %10651 = vst [vmem:[#allocation37_spill] sm:$0xff] %v9254_v33  ;;  %v3574_v53 = vpop.f32.mrb[85].mxu1  ;;  %v2746_v33 = vsel %vm1739_vm0, %v2744_v14, %v2745_v38  ;;  %v2743_v14 = vsel %vm1739_vm0, %v2741_v15, %v2742_v41  ;;  %v2750_v15 = vrot.slane %v8953_v44, 1  ;;  %v10658_v41 = vld [vmem:[#allocation42_spill] sm:$0xff] }
 0x20e   :  { %v9259_v50 = vpop.f32.mrb[86].mxu1  ;;  %v2747_v53 = vrot.slane %v8931_v59, 1 }
 0x20f   :  { %10652 = vst [vmem:[#allocation35_spill] sm:$0xff] %v9259_v50  ;;  %v3577_v26 = vpop.f32.mrb[87].mxu1 }
 0x210   :  { %4237 = vmatmul.mubr.bf16.gmra.mrb[140].mxu0 %v9262_v47  ;;  %v9278_v8 = vsel %vm1739_vm0, %v2747_v53, %v2748_v10 }
 0x211   :  { %3787 = vmatmul.mubr.bf16.gmra.mrb[192].mxu1 %v9215_v7  ;;  %4244 = vmatprep.mubr.bf16.mxu0 %v2746_v33 }
 0x212   :  { %3955 = vmatprep.mubr.bf16.mxu1 %v8906_v34  ;;  %v7533_v34 = vld [vmem:[#allocation7 + $0x208] sm:$0xff]  }
 0x214   :  { %v9270_v51 = vpop.f32.mrb[88].mxu1 }
 0x215   :  { %10654 = vst [vmem:[#allocation34_spill] sm:$0xff] %v9270_v51  ;;  %v3582_v49 = vpop.f32.mrb[89].mxu1  ;;  %v10657_v51 = vld [vmem:[#allocation40_spill] sm:$0xff] }
 0x216   :  { %v9274_v26 = vpop.f32.mrb[90].mxu1  ;;  %v7534_v49 = vld [vmem:[#allocation7 + $0x210] sm:$0xff]  }
 0x217   :  { %v3585_v38 = vpop.f32.mrb[91].mxu1 }
 0x218   :  { %4245 = vmatmul.mubr.bf16.gmra.mrb[144].mxu0 %v10657_v51  ;;  %v7535_v38 = vld [vmem:[#allocation7 + $0x218] sm:$0xff]  }
 0x219   :  { %3956 = vmatmul.mubr.bf16.vlgmr.msra.gmra.mrb[132].mxu1 %v2743_v14  ;;  %4252 = vmatprep.mubr.bf16.mxu0 %v9278_v8  ;;  %v2751_v14 = vrot.slane %v10658_v41, 1  ;;  %v10659_v51 = vld [vmem:[#allocation43_spill] sm:$0xff]  ;;  %v2753_v41 = vrot.slane %v8977_v35, 1 }
 0x21a   :  { %6607 = vmatpush3.bf16.msra.mxu1 %v10656_v40  ;;  %3963 = vmatprep.mubr.bf16.mxu1 %v8931_v59  ;;  %v7536_v40 = vld [vmem:[#allocation7 + $0x220] sm:$0xff]  }
 0x21b   :  { %6608 = vmatprep.subr.bf16.mxu1 %v7533_v34  ;;  %v9291_v59 = vsel %vm1739_vm0, %v2750_v15, %v2751_v14  ;;  %v10662_v14 = vld [vmem:[#allocation44_spill] sm:$0xff] }
 0x21c   :  { %v9283_v50 = vpop.f32.mrb[92].mxu1 }
 0x21d   :  { %v3590_v36 = vpop.f32.mrb[93].mxu1 }
 0x21e   :  { %6609 = vmatpush3.bf16.msra.mxu1 %v7533_v34  ;;  %v9288_v53 = vpop.f32.mrb[94].mxu1 }
 0x21f   :  { %v3593_v10 = vpop.f32.mrb[95].mxu1  ;;  %6610 = vmatprep.subr.bf16.mxu1 %v7534_v49 }
 0x220   :  { %4253 = vmatmul.mubr.bf16.gmra.mrb[148].mxu0 %v10659_v51  ;;  %v2754_v10 = vrot.slane %v8984_v1, 1 }
 0x221   :  { %3964 = vmatmul.mubr.bf16.gmra.mrb[136].mxu1 %v2746_v33  ;;  %4260 = vmatprep.mubr.bf16.mxu0 %v9291_v59 }
 0x222   :  { %6611 = vmatpush3.bf16.msra.mxu1 %v7534_v49  ;;  %3971 = vmatprep.mubr.bf16.mxu1 %v8953_v44  ;;  %v7538_v49 = vld [vmem:[#allocation7 + $0x228] sm:$0xff]   ;;  %v9304_v44 = vsel %vm1739_vm0, %v2753_v41, %v2754_v10 }
 0x223   :  { %6612 = vmatprep.subr.bf16.mxu1 %v7535_v38 }
 0x224   :  { %v9295_v36 = vpop.f32.mrb[96].mxu1 }
 0x225   :  { %10660 = vst [vmem:[#allocation39_spill] sm:$0xff] %v9295_v36  ;;  %v3598_v34 = vpop.f32.mrb[97].mxu1 }
 0x226   :  { %6613 = vmatpush3.bf16.msra.mxu1 %v7535_v38  ;;  %v9300_v33 = vpop.f32.mrb[98].mxu1  ;;  %v7539_v34 = vld [vmem:[#allocation7 + $0x230] sm:$0xff]   ;;  %v2756_v38 = vrot.slane %v8992_v22, 1 }
 0x227   :  { %10661 = vst [vmem:[#allocation41_spill] sm:$0xff] %v9300_v33  ;;  %v3601_v15 = vpop.f32.mrb[99].mxu1  ;;  %6614 = vmatprep.subr.bf16.mxu1 %v7536_v40 }
 0x228   :  { %4261 = vmatmul.mubr.bf16.gmra.mrb[152].mxu0 %v10662_v14  ;;  %v2757_v15 = vrot.slane %v9010_v30, 1 }
 0x229   :  { %3972 = vmatmul.mubr.bf16.gmra.mrb[140].mxu1 %v9278_v8  ;;  %4268 = vmatprep.mubr.bf16.mxu0 %v9304_v44 }
 0x22a   :  { %6615 = vmatpush3.bf16.msra.mxu1 %v7536_v40  ;;  %3979 = vmatprep.mubr.bf16.mxu1 %v8977_v35  ;;  %v7540_v40 = vld [vmem:[#allocation7 + $0x238] sm:$0xff]   ;;  %v9317_v35 = vsel %vm1739_vm0, %v2756_v38, %v2757_v15  ;;  %v2762_v15 = vrot.slane %v9059_v46, 1 }
 0x22b   :  { %6616 = vmatprep.subr.bf16.mxu1 %v7538_v49 }
 0x22c   :  { %v9308_v36 = vpop.f32.mrb[100].mxu1 }
 0x22d   :  { %v3606_v1 = vpop.f32.mrb[101].mxu1 }
 0x22e   :  { %6617 = vmatpush3.bf16.msra.mxu1 %v7538_v49  ;;  %v9313_v33 = vpop.f32.mrb[102].mxu1  ;;  %v2759_v49 = vrot.slane %v9030_v62, 1  ;;  %v2760_v1 = vrot.slane %v9044_v21, 1 }
 0x22f   :  { %v3609_v41 = vpop.f32.mrb[103].mxu1  ;;  %6618 = vmatprep.subr.bf16.mxu1 %v7539_v34 }
 0x230   :  { %4269 = vmatmul.mubr.bf16.gmra.mrb[156].mxu0 %v9028_v57 }
 0x231   :  { %3980 = vmatmul.mubr.bf16.gmra.mrb[144].mxu1 %v9291_v59  ;;  %4276 = vmatprep.mubr.bf16.mxu0 %v9317_v35 }
 0x232   :  { %6619 = vmatpush3.bf16.msra.mxu1 %v7539_v34  ;;  %3987 = vmatprep.mubr.bf16.mxu1 %v8992_v22  ;;  %v9331_v22 = vsel %vm1739_vm0, %v2759_v49, %v2760_v1 }
 0x233   :  { %6620 = vmatprep.subr.bf16.mxu1 %v7540_v40 }
 0x234   :  { %v9321_v10 = vpop.f32.mrb[104].mxu1 }
 0x235   :  { %v3614_v30 = vpop.f32.mrb[105].mxu1 }
 0x236   :  { %6621 = vmatpush3.bf16.msra.mxu1 %v7540_v40  ;;  %v9326_v41 = vpop.f32.mrb[106].mxu1  ;;  %v2763_v40 = vrot.slane %v9075_v19, 1  ;;  %v2766_v19 = vrot.slane %v9097_v45, 1  ;;  %v2769_v45 = vrot.slane %v9121_v61, 1  ;;  %v2772_v61 = vrot.slane %v9140_v32, 1 }
 0x237   :  { %6839 = vmatprep.subr.bf16.mxu1 %v9053_v11  ;;  %v3617_v34 = vpop.f32.mrb[107].mxu1  ;;  %v2775_v32 = vrot.slane %v9154_v25, 1  ;;  %v2778_v25 = vrot.slane %v9169_v3, 1 }
 0x238   :  { %4277 = vmatmul.mubr.bf16.gmra.mrb[160].mxu0 %v9056_v5  ;;  %v9344_v49 = vsel %vm1739_vm0, %v2762_v15, %v2763_v40 }
 0x239   :  { %3988 = vmatmul.mubr.bf16.gmra.mrb[148].mxu1 %v9304_v44  ;;  %4284 = vmatprep.mubr.bf16.mxu0 %v9331_v22 }
 0x23a   :  { %3995 = vmatprep.mubr.bf16.mxu1 %v9030_v62 }
 0x23c   :  { %v9335_v38 = vpop.f32.mrb[108].mxu1 }
 0x23d   :  { %v3622_v21 = vpop.f32.mrb[109].mxu1 }
 0x23e   :  { %v9340_v30 = vpop.f32.mrb[110].mxu1  ;;  %v2765_v21 = vrot.slane %v9089_v56, 1 }
 0x23f   :  { %10663 = vst [vmem:[#allocation40_spill] sm:$0xff] %v9340_v30  ;;  %v3625_v34 = vpop.f32.mrb[111].mxu1 }
 0x240   :  { %4285 = vmatmul.mubr.bf16.gmra.mrb[164].mxu0 %v9086_v29  ;;  %v9357_v15 = vsel %vm1739_vm0, %v2765_v21, %v2766_v19 }
 0x241   :  { %3996 = vmatmul.mubr.bf16.gmra.mrb[152].mxu1 %v9317_v35  ;;  %4292 = vmatprep.mubr.bf16.mxu0 %v9344_v49 }
 0x242   :  { %4003 = vmatprep.mubr.bf16.mxu1 %v9059_v46 }
 0x244   :  { %v9348_v62 = vpop.f32.mrb[112].mxu1 }
 0x245   :  { %v3630_v1 = vpop.f32.mrb[113].mxu1 }
 0x246   :  { %v9353_v30 = vpop.f32.mrb[114].mxu1  ;;  %v2768_v1 = vrot.slane %v9113_v2, 1 }
 0x247   :  { %10664 = vst [vmem:[#allocation42_spill] sm:$0xff] %v9353_v30  ;;  %v3633_v34 = vpop.f32.mrb[115].mxu1 }
 0x248   :  { %4293 = vmatmul.mubr.bf16.gmra.mrb[168].mxu0 %v9110_v63  ;;  %v9370_v21 = vsel %vm1739_vm0, %v2768_v1, %v2769_v45 }
 0x249   :  { %4004 = vmatmul.mubr.bf16.gmra.mrb[156].mxu1 %v9331_v22  ;;  %4300 = vmatprep.mubr.bf16.mxu0 %v9357_v15 }
 0x24a   :  { %4011 = vmatprep.mubr.bf16.mxu1 %v9089_v56 }
 0x24c   :  { %v9361_v46 = vpop.f32.mrb[116].mxu1 }
 0x24d   :  { %v3638_v40 = vpop.f32.mrb[117].mxu1 }
 0x24e   :  { %v9366_v30 = vpop.f32.mrb[118].mxu1  ;;  %v2771_v40 = vrot.slane %v9135_v17, 1 }
 0x24f   :  { %10665 = vst [vmem:[#allocation43_spill] sm:$0xff] %v9366_v30  ;;  %v3641_v34 = vpop.f32.mrb[119].mxu1 }
 0x250   :  { %4301 = vmatmul.mubr.bf16.gmra.mrb[172].mxu0 %v9131_v16  ;;  %v9383_v1 = vsel %vm1739_vm0, %v2771_v40, %v2772_v61 }
 0x251   :  { %4012 = vmatmul.mubr.bf16.gmra.mrb[160].mxu1 %v9344_v49  ;;  %4308 = vmatprep.mubr.bf16.mxu0 %v9370_v21 }
 0x252   :  { %4019 = vmatprep.mubr.bf16.mxu1 %v9113_v2 }
 0x254   :  { %v9374_v56 = vpop.f32.mrb[120].mxu1 }
 0x255   :  { %v3646_v19 = vpop.f32.mrb[121].mxu1 }
 0x256   :  { %v9379_v30 = vpop.f32.mrb[122].mxu1  ;;  %v2774_v19 = vrot.slane %v9149_v60, 1 }
 0x257   :  { %10666 = vst [vmem:[#allocation44_spill] sm:$0xff] %v9379_v30  ;;  %v3649_v34 = vpop.f32.mrb[123].mxu1 }
 0x258   :  { %4309 = vmatmul.mubr.bf16.gmra.mrb[176].mxu0 %v9145_v28  ;;  %v9396_v40 = vsel %vm1739_vm0, %v2774_v19, %v2775_v32  ;;  %v2781_v32 = vrot.slane %v9183_v58, 1  ;;  %v2786_v58 = vrot.slane %v9215_v7, 1 }
 0x259   :  { %4020 = vmatmul.mubr.bf16.gmra.mrb[164].mxu1 %v9357_v15  ;;  %4316 = vmatprep.mubr.bf16.mxu0 %v9383_v1 }
 0x25a   :  { %4027 = vmatprep.mubr.bf16.mxu1 %v9135_v17 }
 0x25c   :  { %v9387_v2 = vpop.f32.mrb[124].mxu1 }
 0x25d   :  { %v3654_v45 = vpop.f32.mrb[125].mxu1 }
 0x25e   :  { %v9392_v30 = vpop.f32.mrb[126].mxu1  ;;  %v2777_v45 = vrot.slane %v9164_v39, 1 }
 0x25f   :  { %10667 = vst [vmem:[#allocation60_spill] sm:$0xff] %v9392_v30  ;;  %v3657_v34 = vpop.f32.mrb[127].mxu1 }
 0x260   :  { %4317 = vmatmul.mubr.bf16.gmra.mrb[180].mxu0 %v9160_v52  ;;  %v9409_v19 = vsel %vm1739_vm0, %v2777_v45, %v2778_v25  ;;  %v9434_v25 = vld [vmem:[#allocation2 + $0x198] sm:$0xff]  }
 0x261   :  { %4028 = vmatmul.mubr.bf16.gmra.mrb[168].mxu1 %v9370_v21  ;;  %4324 = vmatprep.mubr.bf16.mxu0 %v9396_v40 }
 0x262   :  { %4035 = vmatprep.mubr.bf16.mxu1 %v9149_v60  ;;  %v2780_v60 = vrot.slane %v9178_v13, 1 }
 0x264   :  { %v9400_v17 = vpop.f32.mrb[128].mxu1  ;;  %v9418_v3 = vsel %vm1739_vm0, %v2780_v60, %v2781_v32  ;;  %v2868_v60 = vrot.slane %v9434_v25, 1 }
 0x265   :  { %v3662_v61 = vpop.f32.mrb[129].mxu1 }
 0x266   :  { %v9405_v30 = vpop.f32.mrb[130].mxu1  ;;  %v2784_v61 = vrot.slane %v9202_v23, 1 }
 0x267   :  { %10668 = vst [vmem:[#allocation61_spill] sm:$0xff] %v9405_v30  ;;  %v3665_v34 = vpop.f32.mrb[131].mxu1 }
 0x268   :  { %4325 = vmatmul.mubr.bf16.gmra.mrb[184].mxu0 %v9174_v54  ;;  %v7548_v34 = vld [vmem:[#allocation2 + $0x1a0] ss:$0 sps:$4 sm:$0xff]  }
 0x269   :  { %4036 = vmatmul.mubr.bf16.gmra.mrb[172].mxu1 %v9383_v1  ;;  %4332 = vmatprep.mubr.bf16.mxu0 %v9409_v19  ;;  %v2869_v32 = vrot.slane %v7548_v34, 1 }
 0x26a   :  { %4043 = vmatprep.mubr.bf16.mxu1 %v9164_v39  ;;  %v2783_v39 = vrot.slane %v9197_v42, 1 }
 0x26c   :  { %v9427_v45 = vsel %vm1739_vm0, %v2783_v39, %v2784_v61  ;;  %v2859_v61 = vshll.u32 %v7548_v34, 16  ;;  %v10670_v34 = vld [vmem:[#allocation16_spill] sm:$0xff] }
 0x270   :  { %4333 = vmatmul.mubr.bf16.gmra.mrb[188].mxu0 %v9193_v4 }
 0x271   :  { %4044 = vmatmul.mubr.bf16.gmra.mrb[176].mxu1 %v9396_v40  ;;  %4340 = vmatprep.mubr.bf16.mxu0 %v9418_v3 }
 0x272   :  { %4051 = vmatprep.mubr.bf16.mxu1 %v9178_v13  ;;  %v2787_v13 = vrot.slane %v9220_v24, 1  ;;  %v2852_v24 = vshrl.u32 %v9434_v25, 16 }
 0x274   :  { %v9438_v23 = vsel %vm1739_vm0, %v2786_v58, %v2787_v13  ;;  %v9448_v58 = vsel %vm1739_vm0, %v2868_v60, %v2869_v32  ;;  %v2861_v13 = vrot.slane %v2859_v61, 1  ;;  %v10671_v60 = vld [vmem:[#allocation24_spill] sm:$0xff]  ;;  %v7553_v32 = vld [vmem:[#allocation2 + $0x18] sm:$0xff]  }
 0x275   :  { %v10675_v61 = vld [vmem:[#allocation13_spill] sm:$0xff] }
 0x278   :  { %4341 = vmatmul.mubr.bf16.gmra.mrb[192].mxu0 %v9211_v37 }
 0x279   :  { %4052 = vmatmul.mubr.bf16.gmra.mrb[180].mxu1 %v9409_v19  ;;  %4348 = vmatprep.mubr.bf16.mxu0 %v9427_v45 }
 0x27a   :  { %4059 = vmatprep.mubr.bf16.mxu1 %v9197_v42  ;;  %v2854_v42 = vshll.u32 %v9434_v25, 16 }
 0x27c   :  { %v2856_v39 = vrot.slane %v2854_v42, 1  ;;  %v10669_v42 = vld [vmem:[#allocation18_spill] sm:$0xff] }
 0x280   :  { %4349 = vmatmul.mubr.bf16.gmra.mrb[196].mxu0 %v9230_v18 }
 0x281   :  { %4060 = vmatmul.mubr.bf16.gmra.mrb[184].mxu1 %v9418_v3  ;;  %4356 = vmatprep.mubr.bf16.mxu0 %v9438_v23 }
 0x282   :  { %4067 = vmatprep.mubr.bf16.mxu1 %v9215_v7  ;;  %v2857_v7 = vor.u32 %v2856_v39, %v2852_v24  ;;  %v10672_v24 = vld [vmem:[#allocation14_spill] sm:$0xff] }
 0x283   :  { %v7554_v39 = vld [vmem:[#allocation2 + $0x24] sm:$0xff]  }
 0x284   :  { %v9454_v30 = vsel %vm2275_vm3, %v2857_v7, %v2861_v13  ;;  %v7555_v7 = vld [vmem:[#allocation2 + $0x30] sm:$0xff]   ;;  %v7556_v13 = vld [vmem:[#allocation2 + $0x3c] sm:$0xff]  }
 0x288   :  { %4357 = vmatmul.mubr.bf16.gmra.mrb[200].mxu0 %v9245_v20 }
 0x289   :  { %4068 = vmatmul.mubr.bf16.gmra.mrb[188].mxu1 %v9427_v45  ;;  %4364 = vmatprep.mubr.bf16.mxu0 %v9448_v58 }
 0x28a   :  { %4075 = vmatprep.mubr.bf16.mxu1 %v9434_v25 }
 0x290   :  { %4365 = vmatmul.mubr.bf16.gmra.mrb[204].mxu0 %v9454_v30 }
 0x291   :  { %4076 = vmatmul.mubr.bf16.gmra.mrb[192].mxu1 %v9438_v23  ;;  %4405 = vmatprep.mubr.bf16.mxu0 %v10670_v34  ;;  %v10681_v34 = vld [vmem:[#allocation29_spill] sm:$0xff] }
 0x292   :  { %6622 = vmatprep.mubr.bf16.mxu1 %v10669_v42  ;;  %v10680_v42 = vld [vmem:[#allocation21_spill] sm:$0xff] }
 0x298   :  { %4406 = vmatmul.mubr.bf16.vlgmr.msra.gmra.mrb[80].mxu0 %v7553_v32  ;;  %v10683_v32 = vld [vmem:[#allocation23_spill] sm:$0xff] }
 0x299   :  { %6623 = vmatmul.mubr.bf16.vlgmr.msra.gmra.mrb[196].mxu1 %v10671_v60  ;;  %4413 = vmatprep.mubr.bf16.mxu0 %v10672_v24  ;;  %v7557_v60 = vld [vmem:[#allocation2 + $0x48] sm:$0xff]   ;;  %v10684_v24 = vld [vmem:[#allocation33_spill] sm:$0xff] }
 0x29a   :  { %6841 = vmatpush3.bf16.msra.mxu1 %v9053_v11  ;;  %6626 = vmatprep.mubr.bf16.mxu1 %v8635_v12  ;;  %v10673_v12 = vld [vmem:[#allocation17_spill] sm:$0xff]  ;;  %v10674_v11 = vld [vmem:[#allocation50_spill] sm:$0xff] }
 0x29b   :  { %6843 = vmatprep.subr.bf16.mxu1 %v9048_v43 }
 0x29e   :  { %6845 = vmatpush3.bf16.msra.mxu1 %v9048_v43  ;;  %v10676_v43 = vld [vmem:[#allocation19_spill] sm:$0xff] }
 0x29f   :  { %6847 = vmatprep.subr.bf16.mxu1 %v9081_v31 }
 0x2a0   :  { %4414 = vmatmul.mubr.bf16.gmra.mrb[84].mxu0 %v7554_v39  ;;  %v10685_v39 = vld [vmem:[#allocation36_spill] sm:$0xff] }
 0x2a1   :  { %6627 = vmatmul.mubr.bf16.gmra.mrb[200].mxu1 %v8666_v9  ;;  %4421 = vmatprep.mubr.bf16.mxu0 %v10673_v12  ;;  %v10677_v9 = vld [vmem:[#allocation20_spill] sm:$0xff] }
 0x2a2   :  { %6849 = vmatpush3.bf16.msra.mxu1 %v9081_v31  ;;  %6630 = vmatprep.mubr.bf16.mxu1 %v8697_v0  ;;  %v10678_v31 = vld [vmem:[#allocation25_spill] sm:$0xff]  ;;  %v10679_v0 = vld [vmem:[#allocation27_spill] sm:$0xff] }
 0x2a3   :  { %6851 = vmatprep.subr.bf16.mxu1 %v9078_v48  ;;  %v7558_v12 = vld [vmem:[#allocation2 + $0x54] sm:$0xff]  }
 0x2a6   :  { %6853 = vmatpush3.bf16.msra.mxu1 %v9078_v48  ;;  %v10682_v48 = vld [vmem:[#allocation31_spill] sm:$0xff] }
 0x2a7   :  { %6855 = vmatprep.subr.bf16.mxu1 %v10674_v11 }
 0x2a8   :  { %4422 = vmatmul.mubr.bf16.gmra.mrb[88].mxu0 %v7555_v7  ;;  %v9488_v7 = vld [vmem:[#allocation2 + $0xd4] ss:$0 sps:$4 sm:$0xff]  }
 0x2a9   :  { %6631 = vmatmul.mubr.bf16.gmra.mrb[204].mxu1 %v10675_v61  ;;  %4429 = vmatprep.mubr.bf16.mxu0 %v10677_v9  ;;  %v10686_v61 = vld [vmem:[#allocation12_spill] sm:$0xff]  ;;  %v10687_v9 = vld [vmem:[#allocation38_spill] sm:$0xff] }
 0x2aa   :  { %6634 = vmatprep.mubr.bf16.mxu1 %v10676_v43  ;;  %v9486_v43 = vld [vmem:[#allocation2 + $0xcc] sm:$0xff]  }
 0x2b0   :  { %4430 = vmatmul.mubr.bf16.gmra.mrb[92].mxu0 %v7556_v13  ;;  %v7559_v13 = vld [vmem:[#allocation2 + $0x60] sm:$0xff]  }
 0x2b1   :  { %6635 = vmatmul.mubr.bf16.gmra.mrb[208].mxu1 %v10678_v31  ;;  %4437 = vmatprep.mubr.bf16.mxu0 %v10680_v42  ;;  %v2917_v31 = vrot.slane %v9486_v43, 1  ;;  %v10688_v42 = vld [vmem:[#allocation15_spill] sm:$0xff] }
 0x2b2   :  { %6638 = vmatprep.mubr.bf16.mxu1 %v10679_v0  ;;  %v2918_v0 = vrot.slane %v9488_v7, 1 }
 0x2b8   :  { %4438 = vmatmul.mubr.bf16.gmra.mrb[96].mxu0 %v7557_v60  ;;  %v10689_v60 = vld [vmem:[#allocation22_spill] sm:$0xff] }
 0x2b9   :  { %6639 = vmatmul.mubr.bf16.gmra.mrb[212].mxu1 %v10681_v34  ;;  %4445 = vmatprep.mubr.bf16.mxu0 %v10683_v32  ;;  %v2919_v34 = vsel %vm1739_vm0, %v2917_v31, %v2918_v0  ;;  %v10690_v32 = vld [vmem:[#allocation26_spill] sm:$0xff] }
 0x2ba   :  { %6642 = vmatprep.mubr.bf16.mxu1 %v10682_v48  ;;  %v7560_v48 = vld [vmem:[#allocation2 + $0x6c] sm:$0xff]  }
 0x2c0   :  { %4446 = vmatmul.mubr.bf16.gmra.mrb[100].mxu0 %v7558_v12 }
 0x2c1   :  { %6643 = vmatmul.mubr.bf16.gmra.mrb[216].mxu1 %v10684_v24  ;;  %4453 = vmatprep.mubr.bf16.mxu0 %v10686_v61  ;;  %v7562_v24 = vld [vmem:[#allocation2 + $0x84] sm:$0xff]  }
 0x2c2   :  { %6646 = vmatprep.mubr.bf16.mxu1 %v10685_v39  ;;  %v10691_v39 = vld [vmem:[#allocation28_spill] sm:$0xff] }
 0x2c8   :  { %4454 = vmatmul.mubr.bf16.gmra.mrb[104].mxu0 %v7559_v13  ;;  %v7565_v13 = vld [vmem:[#allocation2 + $0xa8] sm:$0xff]  }
 0x2c9   :  { %6647 = vmatmul.mubr.bf16.gmra.mrb[220].mxu1 %v10687_v9  ;;  %4461 = vmatprep.mubr.bf16.mxu0 %v10688_v42 }
 0x2ca   :  { %6650 = vmatprep.mubr.bf16.mxu1 %v9250_v27  ;;  %v7561_v27 = vld [vmem:[#allocation2 + $0x78] sm:$0xff]  }
 0x2d0   :  { %4462 = vmatmul.mubr.bf16.gmra.mrb[108].mxu0 %v7560_v48 }
 0x2d1   :  { %6651 = vmatmul.mubr.bf16.gmra.mrb[224].mxu1 %v2919_v34  ;;  %4469 = vmatprep.mubr.bf16.mxu0 %v10689_v60  ;;  %v2892_v60 = vshrl.u32 %v9486_v43, 16 }
 0x2d2   :  { %6654 = vmatprep.mubr.bf16.mxu1 %v9278_v8  ;;  %v7563_v8 = vld [vmem:[#allocation2 + $0x90] sm:$0xff]  }
 0x2d8   :  { %4470 = vmatmul.mubr.bf16.gmra.mrb[112].mxu0 %v7561_v27 }
 0x2d9   :  { %6655 = vmatmul.mubr.bf16.gmra.mrb[228].mxu1 %v9291_v59  ;;  %4477 = vmatprep.mubr.bf16.mxu0 %v10690_v32 }
 0x2da   :  { %6658 = vmatprep.mubr.bf16.mxu1 %v9304_v44  ;;  %v10692_v44 = vld [vmem:[#allocation30_spill] sm:$0xff] }
 0x2e0   :  { %4478 = vmatmul.mubr.bf16.gmra.mrb[116].mxu0 %v7562_v24 }
 0x2e1   :  { %6659 = vmatmul.mubr.bf16.gmra.mrb[232].mxu1 %v9317_v35  ;;  %4485 = vmatprep.mubr.bf16.mxu0 %v10691_v39 }
 0x2e2   :  { %6662 = vmatprep.mubr.bf16.mxu1 %v9331_v22  ;;  %v7564_v22 = vld [vmem:[#allocation2 + $0x9c] sm:$0xff]  }
 0x2e8   :  { %4486 = vmatmul.mubr.bf16.gmra.mrb[120].mxu0 %v7563_v8 }
 0x2e9   :  { %6663 = vmatmul.mubr.bf16.gmra.mrb[236].mxu1 %v9344_v49  ;;  %4493 = vmatprep.mubr.bf16.mxu0 %v10692_v44  ;;  %v10693_v49 = vld [vmem:[#allocation32_spill] sm:$0xff]  ;;  %v9535_v44 = vld [vmem:[#allocation2 + $0x1a4] sm:$0xff]  }
 0x2ea   :  { %6666 = vmatprep.mubr.bf16.mxu1 %v9357_v15 }
 0x2ec   :  { %v9506_v59 = vpop.f32.mrb[132].mxu1 }
 0x2ed   :  { %v3959_v12 = vpop.f32.mrb[133].mxu1 }
 0x2ee   :  { %v9509_v61 = vpop.f32.mrb[134].mxu1 }
 0x2ef   :  { %v3962_v35 = vpop.f32.mrb[135].mxu1 }
 0x2f0   :  { %4494 = vmatmul.mubr.bf16.gmra.mrb[124].mxu0 %v7564_v22  ;;  %v7567_v35 = vld [vmem:[#allocation2 + $0xc0] sm:$0xff]  }
 0x2f1   :  { %6667 = vmatmul.mubr.bf16.gmra.mrb[240].mxu1 %v9370_v21  ;;  %4501 = vmatprep.mubr.bf16.mxu0 %v10693_v49 }
 0x2f2   :  { %6670 = vmatprep.mubr.bf16.mxu1 %v9383_v1  ;;  %v2894_v1 = vshll.u32 %v9486_v43, 16 }
 0x2f4   :  { %v9513_v9 = vpop.f32.mrb[136].mxu1  ;;  %v2896_v27 = vrot.slane %v2894_v1, 1 }
 0x2f5   :  { %v3967_v15 = vpop.f32.mrb[137].mxu1 }
 0x2f6   :  { %v9516_v31 = vpop.f32.mrb[138].mxu1  ;;  %v2897_v24 = vor.u32 %v2896_v27, %v2892_v60  ;;  %v9570_v27 = vld [vmem:[%s10463_s6 + $0x10] sm:$0xff] }
 0x2f7   :  { %10694 = vst [vmem:[#allocation18_spill] sm:$0xff] %v9516_v31  ;;  %v3970_v0 = vpop.f32.mrb[139].mxu1 }
 0x2f8   :  { %4502 = vmatmul.mubr.bf16.gmra.mrb[128].mxu0 %v7565_v13 }
 0x2f9   :  { %6671 = vmatmul.mubr.bf16.gmra.mrb[244].mxu1 %v9396_v40  ;;  %4509 = vmatprep.mubr.bf16.mxu0 %v10650_v55  ;;  %v2899_v40 = vshll.u32 %v9488_v7, 16  ;;  %v2920_v7 = vrot.slane %v9535_v44, 1 }
 0x2fa   :  { %6674 = vmatprep.mubr.bf16.mxu1 %v9409_v19  ;;  %v7566_v19 = vld [vmem:[#allocation2 + $0xb4] sm:$0xff]  }
 0x2fb   :  { %v2901_v39 = vrot.slane %v2899_v40, 1  ;;  %v10703_v40 = vld [vmem:[#allocation49_spill] sm:$0xff] }
 0x2fc   :  { %v9520_v42 = vpop.f32.mrb[140].mxu1 }
 0x2fd   :  { %10695 = vst [vmem:[#allocation16_spill] sm:$0xff] %v9520_v42  ;;  %v3975_v21 = vpop.f32.mrb[141].mxu1 }
 0x2fe   :  { %v9524_v34 = vpop.f32.mrb[142].mxu1 }
 0x2ff   :  { %10696 = vst [vmem:[#allocation24_spill] sm:$0xff] %v9524_v34  ;;  %v3978_v48 = vpop.f32.mrb[143].mxu1 }
 0x300   :  { %4510 = vmatmul.mubr.bf16.gmra.mrb[132].mxu0 %v7566_v19  ;;  %v9565_v48 = vld [vmem:[%s10463_s6 + $0x8] sm:$0xff]  ;;  %v9586_v19 = vld [vmem:[%s10463_s6 + $0x20] sm:$0xff] }
 0x301   :  { %6675 = vmatmul.mubr.bf16.gmra.mrb[248].mxu1 %v9418_v3  ;;  %4517 = vmatprep.mubr.bf16.mxu0 %v9262_v47  ;;  %v9537_v3 = vld [vmem:[#allocation2 + $0x1ac] ss:$0 sps:$4 sm:$0xff]  }
 0x302   :  { %6678 = vmatprep.mubr.bf16.mxu1 %v9427_v45  ;;  %v2902_v45 = vsel %vm2275_vm3, %v2897_v24, %v2901_v39  ;;  %v2921_v47 = vrot.slane %v9537_v3, 1  ;;  %v9601_v39 = vld [vmem:[%s10463_s6 + $0x28] sm:$0xff] }
 0x304   :  { %v9530_v32 = vpop.f32.mrb[144].mxu1  ;;  %v2922_v0 = vsel %vm1739_vm0, %v2920_v7, %v2921_v47  ;;  %v9617_v7 = vld [vmem:[%s10463_s6 + $0x38] sm:$0xff] }
 0x305   :  { %10697 = vst [vmem:[#allocation14_spill] sm:$0xff] %v9530_v32  ;;  %v3983_v55 = vpop.f32.mrb[145].mxu1  ;;  %v7569_v47 = vld [vmem:[#allocation2 + $0xfc] sm:$0xff]  }
 0x306   :  { %v9533_v8 = vpop.f32.mrb[146].mxu1 }
 0x307   :  { %10698 = vst [vmem:[#allocation17_spill] sm:$0xff] %v9533_v8  ;;  %v3986_v12 = vpop.f32.mrb[147].mxu1 }
 0x308   :  { %4518 = vmatmul.mubr.bf16.gmra.mrb[136].mxu0 %v7567_v35  ;;  %v10706_v12 = vld [vmem:[#allocation52_spill] sm:$0xff]  ;;  %v10707_v35 = vld [vmem:[#allocation51_spill] sm:$0xff] }
 0x309   :  { %6679 = vmatmul.mubr.bf16.gmra.mrb[252].mxu1 %v9438_v23  ;;  %4525 = vmatprep.mubr.bf16.mxu0 %v2902_v45  ;;  %v9552_v23 = vld [vmem:[%s10463_s6] sm:$0xff] }
 0x30a   :  { %6682 = vmatprep.mubr.bf16.mxu1 %v9448_v58 }
 0x30c   :  { %v9544_v22 = vpop.f32.mrb[148].mxu1 }
 0x30d   :  { %10699 = vst [vmem:[#allocation50_spill] sm:$0xff] %v9544_v22  ;;  %v3991_v49 = vpop.f32.mrb[149].mxu1 }
 0x30e   :  { %v9546_v15 = vpop.f32.mrb[150].mxu1  ;;  %v9623_v49 = vld [vmem:[%s10463_s6 + $0x40] sm:$0xff] }
 0x30f   :  { %10700 = vst [vmem:[#allocation13_spill] sm:$0xff] %v9546_v15  ;;  %v3994_v13 = vpop.f32.mrb[151].mxu1 }
 0x310   :  { %4526 = vmatmul.mubr.bf16.gmra.mrb[140].mxu0 %v9486_v43  ;;  %v7568_v43 = vld [vmem:[#allocation2 + $0xf0] sm:$0xff]  }
 0x311   :  { %6683 = vmatmul.mubr.bf16.gmra.mrb[0].mxu1 %v2922_v0  ;;  %4533 = vmatprep.mubr.bf16.mxu0 %v10659_v51  ;;  %v9580_v51 = vld [vmem:[%s10463_s6 + $0x18] sm:$0xff] }
 0x312   :  { %6702 = vmatprep.mubr.msk.f32.mxu1 %vm5080_vm4, %v9552_v23 }
 0x314   :  { %v9557_v58 = vpop.f32.mrb[152].mxu1 }
 0x315   :  { %10701 = vst [vmem:[#allocation19_spill] sm:$0xff] %v9557_v58  ;;  %v3999_v21 = vpop.f32.mrb[153].mxu1 }
 0x316   :  { %v9560_v1 = vpop.f32.mrb[154].mxu1 }
 0x317   :  { %10702 = vst [vmem:[#allocation20_spill] sm:$0xff] %v9560_v1  ;;  %v4002_v60 = vpop.f32.mrb[155].mxu1 }
 0x318   :  { %4534 = vmatmul.mubr.bf16.gmra.mrb[144].mxu0 %v7568_v43  ;;  %v9638_v60 = vld [vmem:[%s10463_s6 + $0x48] sm:$0xff] }
 0x319   :  { %6703 = vmatmul.mubr.msk.f32.vlgmr.msra.gmra.mrb[66].mxu1 %vm5080_vm4, %v9565_v48  ;;  %4541 = vmatprep.mubr.bf16.mxu0 %v10662_v14  ;;  %v9607_v14 = vld [vmem:[%s10463_s6 + $0x30] sm:$0xff] }
 0x31a   :  { %6857 = vmatpush3.bf16.msra.mxu1 %v10674_v11  ;;  %6705 = vmatprep.mubr.msk.f32.mxu1 %vm5080_vm4, %v9570_v27 }
 0x31b   :  { %6859 = vmatprep.subr.bf16.mxu1 %v10703_v40 }
 0x31c   :  { %v9588_v55 = vpop.f32.mrb[156].mxu1 }
 0x31d   :  { %10704 = vst [vmem:[#allocation25_spill] sm:$0xff] %v9588_v55  ;;  %v4007_v11 = vpop.f32.mrb[157].mxu1  ;;  %6706 = vmatmul.mubr.msk.f32.gmra.mrb[4].mxu1 %vm5080_vm4, %v9580_v51 }
 0x31e   :  { %6861 = vmatpush3.bf16.msra.mxu1 %v10703_v40  ;;  %v9594_v24 = vpop.f32.mrb[158].mxu1  ;;  %6708 = vmatprep.mubr.msk.f32.mxu1 %vm5080_vm4, %v9586_v19  ;;  %v9652_v40 = vld [vmem:[%s10463_s6 + $0x58] sm:$0xff]  ;;  %v7570_v11 = vld [vmem:[#allocation2 + $0x108] sm:$0xff]  }
 0x31f   :  { %10705 = vst [vmem:[#allocation27_spill] sm:$0xff] %v9594_v24  ;;  %6863 = vmatprep.subr.bf16.mxu1 %v10706_v12  ;;  %v4010_v45 = vpop.f32.mrb[159].mxu1 }
 0x320   :  { %4542 = vmatmul.mubr.bf16.gmra.mrb[148].mxu0 %v7569_v47 }
 0x321   :  { %6709 = vmatmul.mubr.msk.f32.gmra.mrb[6].mxu1 %vm5080_vm4, %v9601_v39  ;;  %4549 = vmatprep.mubr.bf16.mxu0 %v9028_v57  ;;  %v9643_v57 = vld [vmem:[%s10463_s6 + $0x50] sm:$0xff] }
 0x322   :  { %6865 = vmatpush3.bf16.msra.mxu1 %v10706_v12  ;;  %6711 = vmatprep.mubr.msk.f32.mxu1 %vm5080_vm4, %v9607_v14  ;;  %v9657_v12 = vld [vmem:[%s10463_s6 + $0x60] sm:$0xff] }
 0x323   :  { %6867 = vmatprep.subr.bf16.mxu1 %v10707_v35 }
 0x324   :  { %v9625_v0 = vpop.f32.mrb[160].mxu1 }
 0x325   :  { %10708 = vst [vmem:[#allocation21_spill] sm:$0xff] %v9625_v0  ;;  %v4015_v13 = vpop.f32.mrb[161].mxu1  ;;  %6712 = vmatmul.mubr.msk.f32.gmra.mrb[8].mxu1 %vm5080_vm4, %v9617_v7 }
 0x326   :  { %6869 = vmatpush3.bf16.msra.mxu1 %v10707_v35  ;;  %v9631_v21 = vpop.f32.mrb[162].mxu1  ;;  %6714 = vmatprep.mubr.msk.f32.mxu1 %vm5080_vm4, %v9623_v49  ;;  %v9671_v13 = vld [vmem:[%s10463_s6 + $0x68] sm:$0xff] }
 0x327   :  { %10709 = vst [vmem:[#allocation29_spill] sm:$0xff] %v9631_v21  ;;  %v4018_v43 = vpop.f32.mrb[163].mxu1 }
 0x328   :  { %4550 = vmatmul.mubr.bf16.gmra.mrb[152].mxu0 %v7570_v11  ;;  %v9676_v11 = vld [vmem:[%s10463_s6 + $0x70] sm:$0xff] }
 0x329   :  { %6715 = vmatmul.mubr.msk.f32.gmra.mrb[10].mxu1 %vm5080_vm4, %v9638_v60  ;;  %4557 = vmatprep.mubr.bf16.mxu0 %v9056_v5  ;;  %v9685_v5 = vld [vmem:[%s10463_s6 + $0x78] sm:$0xff] }
 0x32a   :  { %6717 = vmatprep.mubr.msk.f32.mxu1 %vm5080_vm4, %v9643_v57 }
 0x32c   :  { %v9659_v45 = vpop.f32.mrb[164].mxu1 }
 0x32d   :  { %10710 = vst [vmem:[#allocation31_spill] sm:$0xff] %v9659_v45  ;;  %v4023_v47 = vpop.f32.mrb[165].mxu1  ;;  %6718 = vmatmul.mubr.msk.f32.gmra.mrb[12].mxu1 %vm5080_vm4, %v9652_v40 }
 0x32e   :  { %v9664_v35 = vpop.f32.mrb[166].mxu1  ;;  %6720 = vmatprep.mubr.msk.f32.mxu1 %vm5080_vm4, %v9657_v12  ;;  %v7571_v47 = vld [vmem:[#allocation2 + $0x114] sm:$0xff]  }
 0x32f   :  { %10711 = vst [vmem:[#allocation23_spill] sm:$0xff] %v9664_v35  ;;  %v4026_v43 = vpop.f32.mrb[167].mxu1 }
 0x330   :  { %4558 = vmatmul.mubr.bf16.gmra.mrb[156].mxu0 %v7571_v47  ;;  %v9690_v43 = vld [vmem:[%s10463_s6 + $0x80] sm:$0xff]  ;;  %v9704_v47 = vld [vmem:[%s10463_s6 + $0x88] sm:$0xff] }
 0x331   :  { %6721 = vmatmul.mubr.msk.f32.gmra.mrb[14].mxu1 %vm5080_vm4, %v9671_v13  ;;  %4565 = vmatprep.mubr.bf16.mxu0 %v9086_v29  ;;  %v9718_v29 = vld [vmem:[%s10463_s6 + $0x98] sm:$0xff] }
 0x332   :  { %6723 = vmatprep.mubr.msk.f32.mxu1 %vm5080_vm4, %v9676_v11 }
 0x334   :  { %v9692_v35 = vpop.f32.mrb[168].mxu1 }
 0x335   :  { %10712 = vst [vmem:[#allocation33_spill] sm:$0xff] %v9692_v35  ;;  %v4031_v45 = vpop.f32.mrb[169].mxu1  ;;  %6724 = vmatmul.mubr.msk.f32.gmra.mrb[16].mxu1 %vm5080_vm4, %v9685_v5  ;;  %v9709_v35 = vld [vmem:[%s10463_s6 + $0x90] sm:$0xff] }
 0x336   :  { %v9697_v21 = vpop.f32.mrb[170].mxu1  ;;  %6726 = vmatprep.mubr.msk.f32.mxu1 %vm5080_vm4, %v9690_v43  ;;  %v7572_v45 = vld [vmem:[#allocation2 + $0x120] sm:$0xff]  }
 0x337   :  { %10713 = vst [vmem:[#allocation36_spill] sm:$0xff] %v9697_v21  ;;  %v4034_v0 = vpop.f32.mrb[171].mxu1 }
 0x338   :  { %4566 = vmatmul.mubr.bf16.gmra.mrb[160].mxu0 %v7572_v45  ;;  %v9723_v0 = vld [vmem:[%s10463_s6 + $0xa0] sm:$0xff]  ;;  %v9737_v45 = vld [vmem:[%s10463_s6 + $0xa8] sm:$0xff] }
 0x339   :  { %6727 = vmatmul.mubr.msk.f32.gmra.mrb[18].mxu1 %vm5080_vm4, %v9704_v47  ;;  %4573 = vmatprep.mubr.bf16.mxu0 %v9110_v63  ;;  %v9751_v63 = vld [vmem:[%s10463_s6 + $0xb8] sm:$0xff] }
 0x33a   :  { %6729 = vmatprep.mubr.msk.f32.mxu1 %vm5080_vm4, %v9709_v35 }
 0x33c   :  { %v9725_v21 = vpop.f32.mrb[172].mxu1 }
 0x33d   :  { %10714 = vst [vmem:[#allocation12_spill] sm:$0xff] %v9725_v21  ;;  %v4039_v24 = vpop.f32.mrb[173].mxu1  ;;  %6730 = vmatmul.mubr.msk.f32.gmra.mrb[20].mxu1 %vm5080_vm4, %v9718_v29  ;;  %v9742_v21 = vld [vmem:[%s10463_s6 + $0xb0] sm:$0xff] }
 0x33e   :  { %v9730_v55 = vpop.f32.mrb[174].mxu1  ;;  %6732 = vmatprep.mubr.msk.f32.mxu1 %vm5080_vm4, %v9723_v0  ;;  %v7573_v24 = vld [vmem:[#allocation2 + $0x12c] sm:$0xff]  }
 0x33f   :  { %10715 = vst [vmem:[#allocation38_spill] sm:$0xff] %v9730_v55  ;;  %v4042_v1 = vpop.f32.mrb[175].mxu1 }
 0x340   :  { %4574 = vmatmul.mubr.bf16.gmra.mrb[164].mxu0 %v7573_v24  ;;  %v9756_v1 = vld [vmem:[%s10463_s6 + $0xc0] sm:$0xff]  ;;  %v9770_v24 = vld [vmem:[%s10463_s6 + $0xc8] sm:$0xff] }
 0x341   :  { %6733 = vmatmul.mubr.msk.f32.gmra.mrb[22].mxu1 %vm5080_vm4, %v9737_v45  ;;  %4581 = vmatprep.mubr.bf16.mxu0 %v9131_v16  ;;  %v9784_v16 = vld [vmem:[%s10463_s6 + $0xd8] sm:$0xff] }
 0x342   :  { %6735 = vmatprep.mubr.msk.f32.mxu1 %vm5080_vm4, %v9742_v21 }
 0x344   :  { %v9758_v55 = vpop.f32.mrb[176].mxu1 }
 0x345   :  { %10716 = vst [vmem:[#allocation15_spill] sm:$0xff] %v9758_v55  ;;  %v4047_v58 = vpop.f32.mrb[177].mxu1  ;;  %6736 = vmatmul.mubr.msk.f32.gmra.mrb[24].mxu1 %vm5080_vm4, %v9751_v63  ;;  %v9775_v55 = vld [vmem:[%s10463_s6 + $0xd0] sm:$0xff] }
 0x346   :  { %v9763_v15 = vpop.f32.mrb[178].mxu1  ;;  %6738 = vmatprep.mubr.msk.f32.mxu1 %vm5080_vm4, %v9756_v1  ;;  %v7574_v58 = vld [vmem:[#allocation2 + $0x138] sm:$0xff]  }
 0x347   :  { %10717 = vst [vmem:[#allocation22_spill] sm:$0xff] %v9763_v15  ;;  %v4050_v22 = vpop.f32.mrb[179].mxu1 }
 0x348   :  { %4582 = vmatmul.mubr.bf16.gmra.mrb[168].mxu0 %v7574_v58  ;;  %v9789_v22 = vld [vmem:[%s10463_s6 + $0xe0] sm:$0xff]  ;;  %v9803_v58 = vld [vmem:[%s10463_s6 + $0xe8] sm:$0xff] }
 0x349   :  { %6739 = vmatmul.mubr.msk.f32.gmra.mrb[26].mxu1 %vm5080_vm4, %v9770_v24  ;;  %4589 = vmatprep.mubr.bf16.mxu0 %v9145_v28  ;;  %v9817_v28 = vld [vmem:[%s10463_s6 + $0xf8] sm:$0xff] }
 0x34a   :  { %6741 = vmatprep.mubr.msk.f32.mxu1 %vm5080_vm4, %v9775_v55 }
 0x34c   :  { %v9791_v15 = vpop.f32.mrb[180].mxu1 }
 0x34d   :  { %10718 = vst [vmem:[#allocation26_spill] sm:$0xff] %v9791_v15  ;;  %v4055_v8 = vpop.f32.mrb[181].mxu1  ;;  %6742 = vmatmul.mubr.msk.f32.gmra.mrb[28].mxu1 %vm5080_vm4, %v9784_v16  ;;  %v9808_v15 = vld [vmem:[%s10463_s6 + $0xf0] sm:$0xff] }
 0x34e   :  { %v9796_v32 = vpop.f32.mrb[182].mxu1  ;;  %6744 = vmatprep.mubr.msk.f32.mxu1 %vm5080_vm4, %v9789_v22  ;;  %v7575_v8 = vld [vmem:[#allocation2 + $0x144] sm:$0xff]  }
 0x34f   :  { %10719 = vst [vmem:[#allocation28_spill] sm:$0xff] %v9796_v32  ;;  %v4058_v34 = vpop.f32.mrb[183].mxu1 }
 0x350   :  { %4590 = vmatmul.mubr.bf16.gmra.mrb[172].mxu0 %v7575_v8  ;;  %v7576_v8 = vld [vmem:[#allocation2 + $0x150] sm:$0xff]  }
 0x351   :  { %6745 = vmatmul.mubr.msk.f32.gmra.mrb[30].mxu1 %vm5080_vm4, %v9803_v58  ;;  %4597 = vmatprep.mubr.bf16.mxu0 %v9160_v52 }
 0x352   :  { %6747 = vmatprep.mubr.msk.f32.mxu1 %vm5080_vm4, %v9808_v15 }
 0x354   :  { %v9819_v32 = vpop.f32.mrb[184].mxu1 }
 0x355   :  { %10720 = vst [vmem:[#allocation30_spill] sm:$0xff] %v9819_v32  ;;  %v4063_v34 = vpop.f32.mrb[185].mxu1  ;;  %6748 = vmatmul.mubr.msk.f32.gmra.mrb[32].mxu1 %vm5080_vm4, %v9817_v28 }
 0x356   :  { %v9824_v42 = vpop.f32.mrb[186].mxu1  ;;  %6766 = vmatprep.mubr.msk.f32.mxu1 %vm5080_vm4, %v9552_v23  ;;  %v7577_v23 = vld [vmem:[#allocation2 + $0x15c] sm:$0xff]  }
 0x357   :  { %10721 = vst [vmem:[#allocation32_spill] sm:$0xff] %v9824_v42  ;;  %v4066_v31 = vpop.f32.mrb[187].mxu1 }
 0x358   :  { %4598 = vmatmul.mubr.bf16.gmra.mrb[176].mxu0 %v7576_v8  ;;  %v10728_v8 = vld [vmem:[#allocation53_spill] sm:$0xff] }
 0x359   :  { %6767 = vmatmul.mubr.msk.f32.vlgmr.msra.gmra.mrb[34].mxu1 %vm5080_vm4, %v9565_v48  ;;  %4605 = vmatprep.mubr.bf16.mxu0 %v9174_v54 }
 0x35a   :  { %6769 = vmatprep.mubr.msk.f32.mxu1 %vm5080_vm4, %v9570_v27 }
 0x35c   :  { %v9832_v32 = vpop.f32.mrb[188].mxu1 }
 0x35d   :  { %10722 = vst [vmem:[#allocation49_spill] sm:$0xff] %v9832_v32  ;;  %v4071_v52 = vpop.f32.mrb[189].mxu1  ;;  %6770 = vmatmul.mubr.msk.f32.gmra.mrb[36].mxu1 %vm5080_vm4, %v9580_v51  ;;  %v7579_v32 = vld [vmem:[#allocation2 + $0x174] sm:$0xff]  }
 0x35e   :  { %v9837_v34 = vpop.f32.mrb[190].mxu1  ;;  %6772 = vmatprep.mubr.msk.f32.mxu1 %vm5080_vm4, %v9586_v19  ;;  %v9859_v19 = vld [vmem:[%s10462_s5 + $0x1] ss:$0 sm:$0xff] }
 0x35f   :  { %10723 = vst [vmem:[#allocation52_spill] sm:$0xff] %v9837_v34  ;;  %v4074_v31 = vpop.f32.mrb[191].mxu1  ;;  %v3541_v52 = vadd.f32 %v9859_v19, %v10728_v8 }
 0x360   :  { %4606 = vmatmul.mubr.bf16.gmra.mrb[180].mxu0 %v7577_v23 }
 0x361   :  { %6773 = vmatmul.mubr.msk.f32.gmra.mrb[38].mxu1 %vm5080_vm4, %v9601_v39  ;;  %4613 = vmatprep.mubr.bf16.mxu0 %v9193_v4  ;;  %v7578_v4 = vld [vmem:[#allocation2 + $0x168] sm:$0xff]  }
 0x362   :  { %6775 = vmatprep.mubr.msk.f32.mxu1 %vm5080_vm4, %v9607_v14  ;;  %v10726_v14 = vld [vmem:[#allocation46_spill] sm:$0xff] }
 0x364   :  { %v9845_v48 = vpop.f32.mrb[192].mxu1 }
 0x365   :  { %10724 = vst [vmem:[#allocation51_spill] sm:$0xff] %v9845_v48  ;;  %v4079_v54 = vpop.f32.mrb[193].mxu1  ;;  %6776 = vmatmul.mubr.msk.f32.gmra.mrb[40].mxu1 %vm5080_vm4, %v9617_v7  ;;  %v10727_v7 = vld [vmem:[#allocation47_spill] sm:$0xff] }
 0x366   :  { %v9850_v27 = vpop.f32.mrb[194].mxu1  ;;  %6778 = vmatprep.mubr.msk.f32.mxu1 %vm5080_vm4, %v9623_v49  ;;  %v4966_v49 = vrot.slane %v10727_v7, %v10726_v14  ;;  %v10730_v14 = vld [vmem:[#allocation45_spill] sm:$0xff] }
 0x367   :  { %10725 = vst [vmem:[#allocation62_spill] sm:$0xff] %v9850_v27  ;;  %v4082_v51 = vpop.f32.mrb[195].mxu1  ;;  %v10731_v7 = vsub.s32 0, %v10730_v14 }
 0x368   :  { %4614 = vmatmul.mubr.bf16.gmra.mrb[184].mxu0 %v7578_v4 }
 0x369   :  { %6779 = vmatmul.mubr.msk.f32.gmra.mrb[42].mxu1 %vm5080_vm4, %v9638_v60  ;;  %4621 = vmatprep.mubr.bf16.mxu0 %v9211_v37  ;;  %v9876_v48 = vrot.slane %v4966_v49, %v10731_v7  ;;  %v10732_v49 = vld [vmem:[#allocation55_spill] sm:$0xff] }
 0x36a   :  { %6781 = vmatprep.mubr.msk.f32.mxu1 %vm5080_vm4, %v9643_v57  ;;  %v10729_v57 = vld [vmem:[#allocation54_spill] sm:$0xff] }
 0x36b   :  { %v4407_v31 = vpop.f32.mrb[80].mxu0  ;;  %v3544_v54 = vadd.f32 %v9859_v19, %v10729_v57 }
 0x36c   :  { %v6624_v39 = vpop.f32.mrb[196].mxu1  ;;  %v6903_v51 = vadd.f32 %v4407_v31, %v3541_v52  ;;  %v4409_v37 = vpop.f32.mrb[81].mxu0 }
 0x36d   :  { %6782 = vmatmul.mubr.msk.f32.gmra.mrb[44].mxu1 %vm5080_vm4, %v9652_v40  ;;  %v4696_v60 = vpop.f32.mrb[197].mxu1  ;;  %v4410_v27 = vpop.f32.mrb[82].mxu0 }
 0x36e   :  { %v6625_v23 = vpop.f32.mrb[198].mxu1  ;;  %6784 = vmatprep.mubr.msk.f32.mxu1 %vm5080_vm4, %v9657_v12  ;;  %v6905_v8 = vadd.f32 %v4410_v27, %v3544_v54  ;;  %v4697_v34 = vadd.f32 %v6903_v51, %v4696_v60  ;;  %v4412_v40 = vpop.f32.mrb[83].mxu0  ;;  %v3549_v27 = vadd.f32 %v9859_v19, %v10732_v49  ;;  %v2906_v49 = vshll.u32 %v9535_v44, 16 }
 0x36f   :  { %v4699_v4 = vpop.f32.mrb[199].mxu1 }
 0x370   :  { %v4700_v12 = vadd.f32 %v6905_v8, %v4699_v4  ;;  %4622 = vmatmul.mubr.bf16.gmra.mrb[188].mxu0 %v7579_v32  ;;  %v9883_v52 = vmul.f32 %v9876_v48, %v4697_v34  ;;  %v10733_v32 = vld [vmem:[#allocation56_spill] sm:$0xff]  ;;  %v7580_v8 = vld [vmem:[#allocation2 + $0x180] sm:$0xff]  }
 0x371   :  { %6785 = vmatmul.mubr.msk.f32.gmra.mrb[46].mxu1 %vm5080_vm4, %v9671_v13  ;;  %4629 = vmatprep.mubr.bf16.mxu0 %v9230_v18  ;;  %v3552_v34 = vadd.f32 %v9859_v19, %v10733_v32 }
 0x372   :  { %6787 = vmatprep.mubr.msk.f32.mxu1 %vm5080_vm4, %v9676_v11  ;;  %v9893_v60 = vmul.f32 %v9876_v48, %v4700_v12  ;;  %v10734_v12 = vld [vmem:[#allocation57_spill] sm:$0xff] }
 0x373   :  { %v4415_v11 = vpop.f32.mrb[84].mxu0 }
 0x374   :  { %v9885_v31 = vpop.f32.mrb[200].mxu1  ;;  %v6907_v18 = vadd.f32 %v4415_v11, %v3549_v27  ;;  %v4417_v54 = vpop.f32.mrb[85].mxu0  ;;  %v10735_v11 = vld [vmem:[#allocation58_spill] sm:$0xff] }
 0x375   :  { %6788 = vmatmul.mubr.msk.f32.gmra.mrb[48].mxu1 %vm5080_vm4, %v9685_v5  ;;  %v4712_v13 = vpop.f32.mrb[201].mxu1  ;;  %v4418_v37 = vpop.f32.mrb[86].mxu0 }
 0x376   :  { %v9895_v57 = vpop.f32.mrb[202].mxu1  ;;  %6790 = vmatprep.mubr.msk.f32.mxu1 %vm5080_vm4, %v9690_v43  ;;  %v4705_v4 = vadd.f32 %v6907_v18, %v6624_v39  ;;  %v6909_v14 = vadd.f32 %v4418_v37, %v3552_v34  ;;  %v4420_v5 = vpop.f32.mrb[87].mxu0  ;;  %v3557_v39 = vadd.f32 %v9859_v19, %v10734_v12 }
 0x377   :  { %v4715_v51 = vpop.f32.mrb[203].mxu1  ;;  %v2908_v5 = vrot.slane %v2906_v49, 1 }
 0x378   :  { %v4708_v7 = vadd.f32 %v6909_v14, %v6625_v23  ;;  %4630 = vmatmul.mubr.bf16.gmra.mrb[192].mxu0 %v7580_v8  ;;  %v9906_v43 = vmul.f32 %v9876_v48, %v4705_v4  ;;  %v7581_v8 = vld [vmem:[#allocation2 + $0x18c] sm:$0xff]  }
 0x379   :  { %6791 = vmatmul.mubr.msk.f32.gmra.mrb[50].mxu1 %vm5080_vm4, %v9704_v47  ;;  %4637 = vmatprep.mubr.bf16.mxu0 %v9245_v20  ;;  %v3560_v20 = vadd.f32 %v9859_v19, %v10735_v11 }
 0x37a   :  { %6793 = vmatprep.mubr.msk.f32.mxu1 %vm5080_vm4, %v9709_v35  ;;  %v9917_v35 = vmul.f32 %v9876_v48, %v4708_v7  ;;  %v2911_v7 = vshll.u32 %v9537_v3, 16 }
 0x37b   :  { %v4423_v23 = vpop.f32.mrb[88].mxu0 }
 0x37c   :  { %v9908_v40 = vpop.f32.mrb[204].mxu1  ;;  %v6911_v32 = vadd.f32 %v4423_v23, %v3557_v39  ;;  %v4425_v34 = vpop.f32.mrb[89].mxu0 }
 0x37d   :  { %6794 = vmatmul.mubr.msk.f32.gmra.mrb[52].mxu1 %vm5080_vm4, %v9718_v29  ;;  %v4728_v47 = vpop.f32.mrb[205].mxu1  ;;  %v4426_v54 = vpop.f32.mrb[90].mxu0  ;;  %v2904_v29 = vshrl.u32 %v9535_v44, 16 }
 0x37e   :  { %v9919_v27 = vpop.f32.mrb[206].mxu1  ;;  %6796 = vmatprep.mubr.msk.f32.mxu1 %vm5080_vm4, %v9723_v0  ;;  %v4713_v37 = vadd.f32 %v6911_v32, %v4712_v13  ;;  %v6913_v4 = vadd.f32 %v4426_v54, %v3560_v20  ;;  %v4428_v14 = vpop.f32.mrb[91].mxu0  ;;  %v10736_v13 = vld [vmem:[#allocation59_spill] sm:$0xff] }
 0x37f   :  { %v4731_v18 = vpop.f32.mrb[207].mxu1  ;;  %v3565_v23 = vadd.f32 %v9859_v19, %v10736_v13 }
 0x380   :  { %v4716_v0 = vadd.f32 %v6913_v4, %v4715_v51  ;;  %4638 = vmatmul.mubr.bf16.gmra.mrb[196].mxu0 %v7581_v8  ;;  %v9932_v12 = vmul.f32 %v9876_v48, %v4713_v37 }
 0x381   :  { %6797 = vmatmul.mubr.msk.f32.gmra.mrb[54].mxu1 %vm5080_vm4, %v9737_v45  ;;  %4645 = vmatprep.mubr.bf16.mxu0 %v9454_v30  ;;  %v2909_v45 = vor.u32 %v2908_v5, %v2904_v29  ;;  %v3568_v30 = vadd.f32 %v9859_v19, %v9242_v6 }
 0x382   :  { %6799 = vmatprep.mubr.msk.f32.mxu1 %vm5080_vm4, %v9742_v21  ;;  %v2913_v21 = vrot.slane %v2911_v7, 1  ;;  %v9944_v51 = vmul.f32 %v9876_v48, %v4716_v0 }
 0x383   :  { %v4431_v49 = vpop.f32.mrb[92].mxu0 }
 0x384   :  { %v9934_v39 = vpop.f32.mrb[208].mxu1  ;;  %v6915_v20 = vadd.f32 %v4431_v49, %v3565_v23  ;;  %v4433_v32 = vpop.f32.mrb[93].mxu0  ;;  %v2914_v4 = vsel %vm2275_vm3, %v2909_v45, %v2913_v21 }
 0x385   :  { %6800 = vmatmul.mubr.msk.f32.gmra.mrb[56].mxu1 %vm5080_vm4, %v9751_v63  ;;  %v9941_v3 = vpop.f32.mrb[209].mxu1  ;;  %v4434_v63 = vpop.f32.mrb[94].mxu0  ;;  %v10739_v32 = vld [vmem:[#allocation34_spill] sm:$0xff] }
 0x386   :  { %v9946_v11 = vpop.f32.mrb[210].mxu1  ;;  %6802 = vmatprep.mubr.msk.f32.mxu1 %vm5080_vm4, %v9756_v1  ;;  %v4721_v54 = vadd.f32 %v6915_v20, %v9885_v31  ;;  %v6917_v29 = vadd.f32 %v4434_v63, %v3568_v30  ;;  %v4436_v37 = vpop.f32.mrb[95].mxu0  ;;  %v10737_v31 = vld [vmem:[#allocation37_spill] sm:$0xff]  ;;  %v3581_v63 = vadd.f32 %v9859_v19, %v10739_v32 }
 0x387   :  { %v9952_v34 = vpop.f32.mrb[211].mxu1  ;;  %v3573_v5 = vadd.f32 %v9859_v19, %v10737_v31 }
 0x388   :  { %v4724_v1 = vadd.f32 %v6917_v29, %v9895_v57  ;;  %4646 = vmatmul.mubr.bf16.gmra.mrb[200].mxu0 %v9434_v25  ;;  %v9963_v6 = vmul.f32 %v9876_v48, %v4721_v54  ;;  %v10738_v25 = vld [vmem:[#allocation35_spill] sm:$0xff] }
 0x389   :  { %6803 = vmatmul.mubr.msk.f32.gmra.mrb[58].mxu1 %vm5080_vm4, %v9770_v24  ;;  %4653 = vmatprep.mubr.bf16.mxu0 %v2914_v4  ;;  %v3576_v0 = vadd.f32 %v9859_v19, %v10738_v25 }
 0x38a   :  { %6805 = vmatprep.mubr.msk.f32.mxu1 %vm5080_vm4, %v9775_v55  ;;  %v9974_v55 = vmul.f32 %v9876_v48, %v4724_v1 }
 0x38b   :  { %v4439_v57 = vpop.f32.mrb[96].mxu0 }
 0x38c   :  { %v9965_v14 = vpop.f32.mrb[212].mxu1  ;;  %v6919_v8 = vadd.f32 %v4439_v57, %v3573_v5  ;;  %v4441_v13 = vpop.f32.mrb[97].mxu0 }
 0x38d   :  { %6806 = vmatmul.mubr.msk.f32.gmra.mrb[60].mxu1 %vm5080_vm4, %v9784_v16  ;;  %v9971_v24 = vpop.f32.mrb[213].mxu1  ;;  %v4442_v45 = vpop.f32.mrb[98].mxu0 }
 0x38e   :  { %v9976_v7 = vpop.f32.mrb[214].mxu1  ;;  %6808 = vmatprep.mubr.msk.f32.mxu1 %vm5080_vm4, %v9789_v22  ;;  %v4729_v16 = vadd.f32 %v6919_v8, %v4728_v47  ;;  %v6921_v21 = vadd.f32 %v4442_v45, %v3576_v0  ;;  %v4444_v49 = vpop.f32.mrb[99].mxu0  ;;  %v3589_v0 = vadd.f32 %v9859_v19, %v9283_v50 }
 0x38f   :  { %v9982_v23 = vpop.f32.mrb[215].mxu1 }
 0x390   :  { %v4732_v30 = vadd.f32 %v6921_v21, %v4731_v18  ;;  %4654 = vmatmul.mubr.bf16.gmra.mrb[204].mxu0 %v9535_v44  ;;  %v9990_v22 = vmul.f32 %v9876_v48, %v4729_v16  ;;  %v3584_v44 = vadd.f32 %v9859_v19, %v9274_v26 }
 0x391   :  { %6809 = vmatmul.mubr.msk.f32.gmra.mrb[62].mxu1 %vm5080_vm4, %v9803_v58 }
 0x392   :  { %6811 = vmatprep.mubr.msk.f32.mxu1 %vm5080_vm4, %v9808_v15  ;;  %v10001_v58 = vmul.f32 %v9876_v48, %v4732_v30 }
 0x393   :  { %v4447_v15 = vpop.f32.mrb[100].mxu0 }
 0x394   :  { %v9992_v20 = vpop.f32.mrb[216].mxu1  ;;  %v6923_v54 = vadd.f32 %v4447_v15, %v3581_v63  ;;  %v4449_v29 = vpop.f32.mrb[101].mxu0 }
 0x395   :  { %v9996_v47 = vpop.f32.mrb[217].mxu1  ;;  %6812 = vmatmul.mubr.msk.f32.gmra.mrb[64].mxu1 %vm5080_vm4, %v9817_v28  ;;  %v4450_v4 = vpop.f32.mrb[102].mxu0 }
 0x396   :  { %v10003_v18 = vpop.f32.mrb[218].mxu1  ;;  %v4737_v1 = vadd.f32 %v6923_v54, %v9908_v40  ;;  %v6925_v31 = vadd.f32 %v4450_v4, %v3584_v44  ;;  %v4452_v5 = vpop.f32.mrb[103].mxu0  ;;  %v3592_v40 = vadd.f32 %v9859_v19, %v9288_v53  ;;  %v10740_v54 = vld [vmem:[#allocation39_spill] sm:$0xff] }
 0x397   :  { %v10007_v37 = vpop.f32.mrb[219].mxu1  ;;  %v3597_v29 = vadd.f32 %v9859_v19, %v10740_v54 }
 0x398   :  { %v4740_v28 = vadd.f32 %v6925_v31, %v9919_v27  ;;  %v10012_v57 = vmul.f32 %v9876_v48, %v4737_v1 }
 0x39a   :  { %v10021_v8 = vmul.f32 %v9876_v48, %v4740_v28 }
 0x39b   :  { %v4455_v13 = vpop.f32.mrb[104].mxu0 }
 0x39c   :  { %v10014_v25 = vpop.f32.mrb[220].mxu1  ;;  %v6927_v27 = vadd.f32 %v4455_v13, %v3589_v0  ;;  %v4457_v16 = vpop.f32.mrb[105].mxu0 }
 0x39d   :  { %v10018_v26 = vpop.f32.mrb[221].mxu1  ;;  %v4458_v49 = vpop.f32.mrb[106].mxu0 }
 0x39e   :  { %v10023_v45 = vpop.f32.mrb[222].mxu1  ;;  %v4745_v30 = vadd.f32 %v6927_v27, %v9941_v3  ;;  %v6929_v32 = vadd.f32 %v4458_v49, %v3592_v40  ;;  %v4460_v50 = vpop.f32.mrb[107].mxu0  ;;  %v10741_v3 = vld [vmem:[#allocation41_spill] sm:$0xff] }
 0x39f   :  { %v10027_v21 = vpop.f32.mrb[223].mxu1  ;;  %v3600_v5 = vadd.f32 %v9859_v19, %v10741_v3  ;;  %v3605_v50 = vadd.f32 %v9859_v19, %v9308_v36 }
 0x3a0   :  { %v4748_v63 = vadd.f32 %v6929_v32, %v9952_v34  ;;  %v10032_v15 = vmul.f32 %v9876_v48, %v4745_v30 }
 0x3a2   :  { %v10041_v4 = vmul.f32 %v9876_v48, %v4748_v63 }
 0x3a3   :  { %v4463_v1 = vpop.f32.mrb[108].mxu0 }
 0x3a4   :  { %v10034_v44 = vpop.f32.mrb[224].mxu1  ;;  %v6931_v34 = vadd.f32 %v4463_v1, %v3597_v29  ;;  %v4465_v28 = vpop.f32.mrb[109].mxu0 }
 0x3a5   :  { %v10038_v53 = vpop.f32.mrb[225].mxu1  ;;  %v4466_v13 = vpop.f32.mrb[110].mxu0 }
 0x3a6   :  { %v10043_v31 = vpop.f32.mrb[226].mxu1  ;;  %v4753_v40 = vadd.f32 %v6931_v34, %v9934_v39  ;;  %v6933_v27 = vadd.f32 %v4466_v13, %v3600_v5  ;;  %v4468_v16 = vpop.f32.mrb[111].mxu0  ;;  %v3608_v39 = vadd.f32 %v9859_v19, %v9313_v33 }
 0x3a7   :  { %v10047_v0 = vpop.f32.mrb[227].mxu1 }
 0x3a8   :  { %v4756_v49 = vadd.f32 %v6933_v27, %v9946_v11  ;;  %v10052_v30 = vmul.f32 %v9876_v48, %v4753_v40 }
 0x3aa   :  { %v10061_v54 = vmul.f32 %v9876_v48, %v4756_v49  ;;  %v3613_v49 = vadd.f32 %v9859_v19, %v9321_v10 }
 0x3ab   :  { %v4471_v29 = vpop.f32.mrb[112].mxu0 }
 0x3ac   :  { %v10054_v32 = vpop.f32.mrb[228].mxu1  ;;  %v6935_v11 = vadd.f32 %v4471_v29, %v3605_v50  ;;  %v4473_v3 = vpop.f32.mrb[113].mxu0 }
 0x3ad   :  { %v10058_v63 = vpop.f32.mrb[229].mxu1  ;;  %v4474_v34 = vpop.f32.mrb[114].mxu0 }
 0x3ae   :  { %v10063_v1 = vpop.f32.mrb[230].mxu1  ;;  %v4761_v28 = vadd.f32 %v6935_v11, %v9971_v24  ;;  %v6937_v13 = vadd.f32 %v4474_v34, %v3608_v39  ;;  %v4476_v36 = vpop.f32.mrb[115].mxu0  ;;  %v3616_v24 = vadd.f32 %v9859_v19, %v9326_v41 }
 0x3af   :  { %v10067_v5 = vpop.f32.mrb[231].mxu1 }
 0x3b0   :  { %v4764_v40 = vadd.f32 %v6937_v13, %v9982_v23  ;;  %v10072_v27 = vmul.f32 %v9876_v48, %v4761_v28 }
 0x3b2   :  { %10742 = vst [vmem:[#allocation46_spill] sm:$0xff] %v10072_v27  ;;  %v10081_v50 = vmul.f32 %v9876_v48, %v4764_v40  ;;  %v3621_v27 = vadd.f32 %v9859_v19, %v9335_v38 }
 0x3b3   :  { %v4479_v29 = vpop.f32.mrb[116].mxu0 }
 0x3b4   :  { %v10074_v16 = vpop.f32.mrb[232].mxu1  ;;  %v6939_v23 = vadd.f32 %v4479_v29, %v3613_v49  ;;  %v4481_v39 = vpop.f32.mrb[117].mxu0 }
 0x3b5   :  { %v10078_v33 = vpop.f32.mrb[233].mxu1  ;;  %v4482_v34 = vpop.f32.mrb[118].mxu0 }
 0x3b6   :  { %v10083_v3 = vpop.f32.mrb[234].mxu1  ;;  %v4769_v28 = vadd.f32 %v6939_v23, %v9965_v14  ;;  %v6941_v13 = vadd.f32 %v4482_v34, %v3616_v24  ;;  %v4484_v10 = vpop.f32.mrb[119].mxu0  ;;  %v10746_v14 = vld [vmem:[#allocation40_spill] sm:$0xff] }
 0x3b7   :  { %v10087_v11 = vpop.f32.mrb[235].mxu1  ;;  %v3624_v24 = vadd.f32 %v9859_v19, %v10746_v14 }
 0x3b8   :  { %v4772_v36 = vadd.f32 %v6941_v13, %v9976_v7  ;;  %v10092_v40 = vmul.f32 %v9876_v48, %v4769_v28 }
 0x3ba   :  { %10743 = vst [vmem:[#allocation47_spill] sm:$0xff] %v10092_v40  ;;  %v10101_v49 = vmul.f32 %v9876_v48, %v4772_v36 }
 0x3bb   :  { %v4487_v29 = vpop.f32.mrb[120].mxu0 }
 0x3bc   :  { %v10094_v42 = vpop.f32.mrb[236].mxu1  ;;  %v6943_v7 = vadd.f32 %v4487_v29, %v3621_v27  ;;  %v4489_v23 = vpop.f32.mrb[121].mxu0 }
 0x3bd   :  { %10744 = vst [vmem:[#allocation53_spill] sm:$0xff] %v10094_v42  ;;  %v10098_v41 = vpop.f32.mrb[237].mxu1  ;;  %v4490_v28 = vpop.f32.mrb[122].mxu0 }
 0x3be   :  { %v10103_v39 = vpop.f32.mrb[238].mxu1  ;;  %v4777_v13 = vadd.f32 %v6943_v7, %v9996_v47  ;;  %v6945_v10 = vadd.f32 %v4490_v28, %v3624_v24  ;;  %v4492_v38 = vpop.f32.mrb[123].mxu0  ;;  %v10750_v47 = vld [vmem:[#allocation42_spill] sm:$0xff] }
 0x3bf   :  { %10745 = vst [vmem:[#allocation54_spill] sm:$0xff] %v10103_v39  ;;  %v10107_v34 = vpop.f32.mrb[239].mxu1  ;;  %v3629_v39 = vadd.f32 %v9859_v19, %v9348_v62  ;;  %v3632_v24 = vadd.f32 %v9859_v19, %v10750_v47 }
 0x3c0   :  { %v4780_v42 = vadd.f32 %v6945_v10, %v10007_v37  ;;  %v10112_v36 = vmul.f32 %v9876_v48, %v4777_v13 }
 0x3c2   :  { %v10121_v27 = vmul.f32 %v9876_v48, %v4780_v42 }
 0x3c3   :  { %v4495_v29 = vpop.f32.mrb[124].mxu0 }
 0x3c4   :  { %v10114_v40 = vpop.f32.mrb[240].mxu1  ;;  %v6947_v37 = vadd.f32 %v4495_v29, %v3629_v39  ;;  %v4497_v7 = vpop.f32.mrb[125].mxu0 }
 0x3c5   :  { %10747 = vst [vmem:[#allocation45_spill] sm:$0xff] %v10114_v40  ;;  %v10118_v14 = vpop.f32.mrb[241].mxu1  ;;  %v4498_v13 = vpop.f32.mrb[126].mxu0 }
 0x3c6   :  { %10748 = vst [vmem:[#allocation55_spill] sm:$0xff] %v10118_v14  ;;  %v10123_v23 = vpop.f32.mrb[242].mxu1  ;;  %v4785_v10 = vadd.f32 %v6947_v37, %v9992_v20  ;;  %v6949_v38 = vadd.f32 %v4498_v13, %v3632_v24  ;;  %v4500_v62 = vpop.f32.mrb[127].mxu0  ;;  %v10754_v20 = vld [vmem:[#allocation43_spill] sm:$0xff] }
 0x3c7   :  { %10749 = vst [vmem:[#allocation56_spill] sm:$0xff] %v10123_v23  ;;  %v10127_v28 = vpop.f32.mrb[243].mxu1  ;;  %v3637_v23 = vadd.f32 %v9859_v19, %v9361_v46  ;;  %v3640_v24 = vadd.f32 %v9859_v19, %v10754_v20 }
 0x3c8   :  { %v4788_v40 = vadd.f32 %v6949_v38, %v10003_v18  ;;  %v10132_v42 = vmul.f32 %v9876_v48, %v4785_v10 }
 0x3ca   :  { %v10141_v39 = vmul.f32 %v9876_v48, %v4788_v40 }
 0x3cb   :  { %v4503_v29 = vpop.f32.mrb[128].mxu0 }
 0x3cc   :  { %v10134_v14 = vpop.f32.mrb[244].mxu1  ;;  %v6951_v18 = vadd.f32 %v4503_v29, %v3637_v23  ;;  %v4505_v37 = vpop.f32.mrb[129].mxu0 }
 0x3cd   :  { %10751 = vst [vmem:[#allocation57_spill] sm:$0xff] %v10134_v14  ;;  %v10138_v47 = vpop.f32.mrb[245].mxu1  ;;  %v4506_v10 = vpop.f32.mrb[130].mxu0 }
 0x3ce   :  { %10752 = vst [vmem:[#allocation58_spill] sm:$0xff] %v10138_v47  ;;  %v10143_v7 = vpop.f32.mrb[246].mxu1  ;;  %v4793_v38 = vadd.f32 %v6951_v18, %v10018_v26  ;;  %v6953_v62 = vadd.f32 %v4506_v10, %v3640_v24  ;;  %v4508_v46 = vpop.f32.mrb[131].mxu0  ;;  %v10758_v26 = vld [vmem:[#allocation44_spill] sm:$0xff] }
 0x3cf   :  { %10753 = vst [vmem:[#allocation59_spill] sm:$0xff] %v10143_v7  ;;  %v10147_v13 = vpop.f32.mrb[247].mxu1  ;;  %v3645_v7 = vadd.f32 %v9859_v19, %v9374_v56  ;;  %v3648_v24 = vadd.f32 %v9859_v19, %v10758_v26 }
 0x3d0   :  { %v4796_v14 = vadd.f32 %v6953_v62, %v10027_v21  ;;  %v10152_v40 = vmul.f32 %v9876_v48, %v4793_v38 }
 0x3d2   :  { %v10161_v23 = vmul.f32 %v9876_v48, %v4796_v14 }
 0x3d3   :  { %v4511_v29 = vpop.f32.mrb[132].mxu0 }
 0x3d4   :  { %v10154_v47 = vpop.f32.mrb[248].mxu1  ;;  %v6955_v21 = vadd.f32 %v4511_v29, %v3645_v7  ;;  %v4513_v18 = vpop.f32.mrb[133].mxu0 }
 0x3d5   :  { %10755 = vst [vmem:[#allocation37_spill] sm:$0xff] %v10154_v47  ;;  %v10158_v20 = vpop.f32.mrb[249].mxu1  ;;  %v4514_v38 = vpop.f32.mrb[134].mxu0 }
 0x3d6   :  { %10756 = vst [vmem:[#allocation35_spill] sm:$0xff] %v10158_v20  ;;  %v10163_v37 = vpop.f32.mrb[250].mxu1  ;;  %v4801_v62 = vadd.f32 %v6955_v21, %v10014_v25  ;;  %v6957_v46 = vadd.f32 %v4514_v38, %v3648_v24  ;;  %v4516_v56 = vpop.f32.mrb[135].mxu0  ;;  %v10762_v25 = vld [vmem:[#allocation60_spill] sm:$0xff] }
 0x3d7   :  { %10757 = vst [vmem:[#allocation34_spill] sm:$0xff] %v10163_v37  ;;  %v10167_v10 = vpop.f32.mrb[251].mxu1  ;;  %v3653_v37 = vadd.f32 %v9859_v19, %v9387_v2  ;;  %v3656_v24 = vadd.f32 %v9859_v19, %v10762_v25 }
 0x3d8   :  { %v4804_v47 = vadd.f32 %v6957_v46, %v10023_v45  ;;  %v10172_v14 = vmul.f32 %v9876_v48, %v4801_v62 }
 0x3da   :  { %v10181_v7 = vmul.f32 %v9876_v48, %v4804_v47 }
 0x3db   :  { %v4519_v29 = vpop.f32.mrb[136].mxu0 }
 0x3dc   :  { %v10174_v20 = vpop.f32.mrb[252].mxu1  ;;  %v6959_v45 = vadd.f32 %v4519_v29, %v3653_v37  ;;  %v4521_v21 = vpop.f32.mrb[137].mxu0 }
 0x3dd   :  { %10759 = vst [vmem:[#allocation39_spill] sm:$0xff] %v10174_v20  ;;  %v10178_v26 = vpop.f32.mrb[253].mxu1  ;;  %v4522_v62 = vpop.f32.mrb[138].mxu0 }
 0x3de   :  { %10760 = vst [vmem:[#allocation41_spill] sm:$0xff] %v10178_v26  ;;  %v10183_v18 = vpop.f32.mrb[254].mxu1  ;;  %v4809_v46 = vadd.f32 %v6959_v45, %v10038_v53  ;;  %v6961_v56 = vadd.f32 %v4522_v62, %v3656_v24  ;;  %v4524_v2 = vpop.f32.mrb[139].mxu0  ;;  %v10766_v53 = vld [vmem:[#allocation61_spill] sm:$0xff] }
 0x3df   :  { %10761 = vst [vmem:[#allocation40_spill] sm:$0xff] %v10183_v18  ;;  %v10187_v38 = vpop.f32.mrb[255].mxu1  ;;  %v3661_v18 = vadd.f32 %v9859_v19, %v9400_v17  ;;  %v3664_v24 = vadd.f32 %v9859_v19, %v10766_v53 }
 0x3e0   :  { %v4812_v20 = vadd.f32 %v6961_v56, %v10047_v0  ;;  %v10192_v47 = vmul.f32 %v9876_v48, %v4809_v46 }
 0x3e2   :  { %v10201_v37 = vmul.f32 %v9876_v48, %v4812_v20 }
 0x3e3   :  { %v4527_v29 = vpop.f32.mrb[140].mxu0 }
 0x3e4   :  { %v10194_v26 = vpop.f32.mrb[0].mxu1  ;;  %v6963_v0 = vadd.f32 %v4527_v29, %v3661_v18  ;;  %v4529_v45 = vpop.f32.mrb[141].mxu0 }
 0x3e5   :  { %10763 = vst [vmem:[#allocation42_spill] sm:$0xff] %v10194_v26  ;;  %v10198_v25 = vpop.f32.mrb[1].mxu1  ;;  %v4530_v46 = vpop.f32.mrb[142].mxu0 }
 0x3e6   :  { %10764 = vst [vmem:[#allocation43_spill] sm:$0xff] %v10198_v25  ;;  %v10203_v21 = vpop.f32.mrb[2].mxu1  ;;  %v4817_v56 = vadd.f32 %v6963_v0, %v10034_v44  ;;  %v6965_v2 = vadd.f32 %v4530_v46, %v3664_v24  ;;  %v4532_v17 = vpop.f32.mrb[143].mxu0  ;;  %v6968_v24 = vadd.f32 %v9859_v19, %v9509_v61 }
 0x3e7   :  { %10765 = vst [vmem:[#allocation44_spill] sm:$0xff] %v10203_v21  ;;  %v10207_v62 = vpop.f32.mrb[3].mxu1  ;;  %v6966_v21 = vadd.f32 %v9859_v19, %v9506_v59 }
 0x3e8   :  { %v4820_v26 = vadd.f32 %v6965_v2, %v10043_v31  ;;  %v10212_v20 = vmul.f32 %v9876_v48, %v4817_v56 }
 0x3ea   :  { %v10218_v29 = vmul.f32 %v9876_v48, %v4820_v26 }
 0x3eb   :  { %v4535_v45 = vpop.f32.mrb[144].mxu0 }
 0x3ec   :  { %v6704_v25 = vpop.f32.mrb[66].mxu1  ;;  %v6967_v31 = vadd.f32 %v6966_v21, %v4535_v45  ;;  %v4537_v46 = vpop.f32.mrb[145].mxu0  ;;  %v6970_v45 = vadd.f32 %v9859_v19, %v9513_v9 }
 0x3ed   :  { %v5249_v53 = vadd.f32 %v6704_v25, %v9893_v60  ;;  %v5243_v18 = vpop.f32.mrb[67].mxu1  ;;  %v4538_v2 = vpop.f32.mrb[146].mxu0 }
 0x3ee   :  { %v5244_v44 = vadd.f32 %v5243_v18, %v9883_v52  ;;  %v10224_v59 = vadd.f32 %v6967_v31, %v10058_v63  ;;  %v6969_v60 = vadd.f32 %v6968_v24, %v4538_v2  ;;  %v4540_v25 = vpop.f32.mrb[147].mxu0  ;;  %v10767_v31 = vld [vmem:[#allocation18_spill] sm:$0xff] }
 0x3ef   :  { %v5628_v0 = vmax.f32 %v5249_v53, 0.0 }
 0x3f0   :  { %v5627_v56 = vmax.f32 %v5244_v44, 0.0  ;;  %v6707_v17 = vpop.f32.mrb[4].mxu1  ;;  %v10229_v61 = vadd.f32 %v6969_v60, %v10067_v5 }
 0x3f1   :  { %5692 = vst [vmem:[#allocation8 + $0x8] sm:$0xff] %v5628_v0  ;;  %v5259_v48 = vadd.f32 %v6707_v17, %v9917_v35  ;;  %v5253_v26 = vpop.f32.mrb[5].mxu1 }
 0x3f2   :  { %5691 = vst [vmem:[#allocation8] sm:$0xff] %v5627_v56  ;;  %v5254_v52 = vadd.f32 %v5253_v26, %v9906_v43  ;;  %v6972_v43 = vadd.f32 %v9859_v19, %v10767_v31 }
 0x3f3   :  { %v5630_v21 = vmax.f32 %v5259_v48, 0.0  ;;  %v4543_v24 = vpop.f32.mrb[148].mxu0 }
 0x3f4   :  { %v5629_v53 = vmax.f32 %v5254_v52, 0.0  ;;  %v6710_v18 = vpop.f32.mrb[6].mxu1  ;;  %v6971_v0 = vadd.f32 %v6970_v45, %v4543_v24  ;;  %v4545_v46 = vpop.f32.mrb[149].mxu0  ;;  %v10769_v24 = vld [vmem:[#allocation24_spill] sm:$0xff] }
 0x3f5   :  { %5694 = vst [vmem:[#allocation8 + $0x18] sm:$0xff] %v5630_v21  ;;  %v5269_v63 = vadd.f32 %v6710_v18, %v9944_v51  ;;  %v5263_v44 = vpop.f32.mrb[7].mxu1  ;;  %v4546_v2 = vpop.f32.mrb[150].mxu0  ;;  %v10768_v18 = vld [vmem:[#allocation16_spill] sm:$0xff] }
 0x3f6   :  { %5693 = vst [vmem:[#allocation8 + $0x10] sm:$0xff] %v5629_v53  ;;  %v5264_v35 = vadd.f32 %v5263_v44, %v9932_v12  ;;  %v10238_v60 = vadd.f32 %v6971_v0, %v10054_v32  ;;  %v6973_v9 = vadd.f32 %v6972_v43, %v4546_v2  ;;  %v4548_v51 = vpop.f32.mrb[151].mxu0  ;;  %v6974_v45 = vadd.f32 %v9859_v19, %v10768_v18  ;;  %v10771_v18 = vld [vmem:[#allocation17_spill] sm:$0xff] }
 0x3f7   :  { %v5632_v5 = vmax.f32 %v5269_v63, 0.0 }
 0x3f8   :  { %v5631_v56 = vmax.f32 %v5264_v35, 0.0  ;;  %v6713_v17 = vpop.f32.mrb[8].mxu1  ;;  %v10243_v26 = vadd.f32 %v6973_v9, %v10063_v1 }
 0x3f9   :  { %5696 = vst [vmem:[#allocation8 + $0x28] sm:$0xff] %v5632_v5  ;;  %v5279_v25 = vadd.f32 %v6713_v17, %v9974_v55  ;;  %v5273_v48 = vpop.f32.mrb[9].mxu1 }
 0x3fa   :  { %5695 = vst [vmem:[#allocation8 + $0x20] sm:$0xff] %v5631_v56  ;;  %v5274_v12 = vadd.f32 %v5273_v48, %v9963_v6  ;;  %v6976_v6 = vadd.f32 %v9859_v19, %v10769_v24 }
 0x3fb   :  { %v5634_v52 = vmax.f32 %v5279_v25, 0.0  ;;  %v4551_v44 = vpop.f32.mrb[152].mxu0 }
 0x3fc   :  { %v5633_v21 = vmax.f32 %v5274_v12, 0.0  ;;  %v6716_v53 = vpop.f32.mrb[10].mxu1  ;;  %v6975_v35 = vadd.f32 %v6974_v45, %v4551_v44  ;;  %v4553_v31 = vpop.f32.mrb[153].mxu0  ;;  %v10770_v12 = vld [vmem:[#allocation14_spill] sm:$0xff] }
 0x3fd   :  { %5698 = vst [vmem:[#allocation8 + $0x38] sm:$0xff] %v5634_v52  ;;  %v5289_v32 = vadd.f32 %v6716_v53, %v10001_v58  ;;  %v5283_v63 = vpop.f32.mrb[11].mxu1  ;;  %v4554_v0 = vpop.f32.mrb[154].mxu0  ;;  %v6978_v52 = vadd.f32 %v9859_v19, %v10770_v12 }
 0x3fe   :  { %5697 = vst [vmem:[#allocation8 + $0x30] sm:$0xff] %v5633_v21  ;;  %v5284_v55 = vadd.f32 %v5283_v63, %v9990_v22  ;;  %v10252_v46 = vadd.f32 %v6975_v35, %v10078_v33  ;;  %v6977_v56 = vadd.f32 %v6976_v6, %v4554_v0  ;;  %v4556_v58 = vpop.f32.mrb[155].mxu0 }
 0x3ff   :  { %v5636_v1 = vmax.f32 %v5289_v32, 0.0 }
 0x400   :  { %v5635_v43 = vmax.f32 %v5284_v55, 0.0  ;;  %v6719_v5 = vpop.f32.mrb[12].mxu1  ;;  %v10257_v9 = vadd.f32 %v6977_v56, %v10087_v11  ;;  %v10772_v56 = vld [vmem:[#allocation50_spill] sm:$0xff] }
 0x401   :  { %5700 = vst [vmem:[#allocation8 + $0x48] sm:$0xff] %v5636_v1  ;;  %v5299_v2 = vadd.f32 %v6719_v5, %v10021_v8  ;;  %v5293_v17 = vpop.f32.mrb[13].mxu1  ;;  %v6982_v58 = vadd.f32 %v9859_v19, %v10772_v56 }
 0x402   :  { %5699 = vst [vmem:[#allocation8 + $0x40] sm:$0xff] %v5635_v43  ;;  %v5294_v22 = vadd.f32 %v5293_v17, %v10012_v57  ;;  %v6980_v57 = vadd.f32 %v9859_v19, %v10771_v18 }
 0x403   :  { %v5638_v51 = vmax.f32 %v5299_v2, 0.0  ;;  %v4559_v53 = vpop.f32.mrb[156].mxu0 }
 0x404   :  { %v5637_v25 = vmax.f32 %v5294_v22, 0.0  ;;  %v6722_v48 = vpop.f32.mrb[14].mxu1  ;;  %v6979_v45 = vadd.f32 %v6978_v52, %v4559_v53  ;;  %v4561_v32 = vpop.f32.mrb[157].mxu0 }
 0x405   :  { %5702 = vst [vmem:[#allocation8 + $0x58] sm:$0xff] %v5638_v51  ;;  %v5309_v33 = vadd.f32 %v6722_v48, %v10041_v4  ;;  %v5303_v21 = vpop.f32.mrb[15].mxu1  ;;  %v4562_v44 = vpop.f32.mrb[158].mxu0  ;;  %v10774_v51 = vld [vmem:[#allocation13_spill] sm:$0xff] }
 0x406   :  { %5701 = vst [vmem:[#allocation8 + $0x50] sm:$0xff] %v5637_v25  ;;  %v5304_v8 = vadd.f32 %v5303_v21, %v10032_v15  ;;  %v10266_v24 = vadd.f32 %v6979_v45, %v10074_v16  ;;  %v6981_v6 = vadd.f32 %v6980_v57, %v4562_v44  ;;  %v4564_v4 = vpop.f32.mrb[159].mxu0  ;;  %v10775_v57 = vld [vmem:[#allocation47_spill] sm:$0xff] }
 0x407   :  { %v5640_v11 = vmax.f32 %v5309_v33, 0.0 }
 0x408   :  { %v5639_v63 = vmax.f32 %v5304_v8, 0.0  ;;  %v6725_v55 = vpop.f32.mrb[16].mxu1  ;;  %v10271_v31 = vadd.f32 %v6981_v6, %v10083_v3 }
 0x409   :  { %5704 = vst [vmem:[#allocation8 + $0x68] sm:$0xff] %v5640_v11  ;;  %v5319_v35 = vadd.f32 %v6725_v55, %v10061_v54  ;;  %v5313_v1 = vpop.f32.mrb[17].mxu1  ;;  %v10773_v54 = vld [vmem:[#allocation46_spill] sm:$0xff]  ;;  %v10776_v55 = vld [vmem:[#allocation19_spill] sm:$0xff] }
 0x40a   :  { %5703 = vst [vmem:[#allocation8 + $0x60] sm:$0xff] %v5639_v63  ;;  %v5314_v15 = vadd.f32 %v5313_v1, %v10052_v30  ;;  %v6984_v30 = vadd.f32 %v9859_v19, %v10774_v51  ;;  %v6986_v6 = vadd.f32 %v9859_v19, %v10776_v55  ;;  %v10777_v1 = vld [vmem:[#allocation20_spill] sm:$0xff]  ;;  %v10779_v51 = vld [vmem:[#allocation54_spill] sm:$0xff]  ;;  %v10782_v55 = vld [vmem:[#allocation55_spill] sm:$0xff] }
 0x40b   :  { %v5642_v43 = vmax.f32 %v5319_v35, 0.0  ;;  %v4567_v17 = vpop.f32.mrb[160].mxu0 }
 0x40c   :  { %v5641_v0 = vmax.f32 %v5314_v15, 0.0  ;;  %v6728_v5 = vpop.f32.mrb[18].mxu1  ;;  %v6983_v25 = vadd.f32 %v6982_v58, %v4567_v17  ;;  %v4569_v48 = vpop.f32.mrb[161].mxu0  ;;  %v6988_v15 = vadd.f32 %v9859_v19, %v10777_v1 }
 0x40d   :  { %5706 = vst [vmem:[#allocation8 + $0x78] sm:$0xff] %v5642_v43  ;;  %v5329_v16 = vadd.f32 %v6728_v5, %v10081_v50  ;;  %v5323_v2 = vpop.f32.mrb[19].mxu1  ;;  %v4570_v52 = vpop.f32.mrb[162].mxu0 }
 0x40e   :  { %5705 = vst [vmem:[#allocation8 + $0x70] sm:$0xff] %v5641_v0  ;;  %v5324_v22 = vadd.f32 %v5323_v2, %v10773_v54  ;;  %v10280_v21 = vadd.f32 %v6983_v25, %v10098_v41  ;;  %v6985_v53 = vadd.f32 %v6984_v30, %v4570_v52  ;;  %v4572_v50 = vpop.f32.mrb[163].mxu0 }
 0x40f   :  { %v5644_v3 = vmax.f32 %v5329_v16, 0.0  ;;  %v10778_v16 = vld [vmem:[#allocation53_spill] sm:$0xff] }
 0x410   :  { %v5643_v12 = vmax.f32 %v5324_v22, 0.0  ;;  %v6731_v33 = vpop.f32.mrb[20].mxu1  ;;  %v10285_v11 = vadd.f32 %v6985_v53, %v10107_v34 }
 0x411   :  { %5708 = vst [vmem:[#allocation8 + $0x88] sm:$0xff] %v5644_v3  ;;  %v5339_v8 = vadd.f32 %v6731_v33, %v10101_v49  ;;  %v5333_v18 = vpop.f32.mrb[21].mxu1 }
 0x412   :  { %5707 = vst [vmem:[#allocation8 + $0x80] sm:$0xff] %v5643_v12  ;;  %v5334_v45 = vadd.f32 %v5333_v18, %v10775_v57  ;;  %v10780_v12 = vld [vmem:[#allocation25_spill] sm:$0xff] }
 0x413   :  { %v5646_v32 = vmax.f32 %v5339_v8, 0.0  ;;  %v4575_v35 = vpop.f32.mrb[164].mxu0  ;;  %v6990_v52 = vadd.f32 %v9859_v19, %v10780_v12  ;;  %v10781_v8 = vld [vmem:[#allocation27_spill] sm:$0xff] }
 0x414   :  { %v5645_v63 = vmax.f32 %v5334_v45, 0.0  ;;  %v6734_v44 = vpop.f32.mrb[22].mxu1  ;;  %v6987_v43 = vadd.f32 %v6986_v6, %v4575_v35  ;;  %v4577_v0 = vpop.f32.mrb[165].mxu0 }
 0x415   :  { %5710 = vst [vmem:[#allocation8 + $0x98] sm:$0xff] %v5646_v32  ;;  %v5349_v41 = vadd.f32 %v6734_v44, %v10121_v27  ;;  %v5343_v4 = vpop.f32.mrb[23].mxu1  ;;  %v4578_v56 = vpop.f32.mrb[166].mxu0 }
 0x416   :  { %5709 = vst [vmem:[#allocation8 + $0x90] sm:$0xff] %v5645_v63  ;;  %v5344_v49 = vadd.f32 %v5343_v4, %v10112_v36  ;;  %v10294_v2 = vadd.f32 %v6987_v43, %v10778_v16  ;;  %v6989_v17 = vadd.f32 %v6988_v15, %v4578_v56  ;;  %v4580_v27 = vpop.f32.mrb[167].mxu0  ;;  %v10784_v16 = vld [vmem:[#allocation29_spill] sm:$0xff] }
 0x417   :  { %v5648_v34 = vmax.f32 %v5349_v41, 0.0 }
 0x418   :  { %v5647_v5 = vmax.f32 %v5344_v49, 0.0  ;;  %v6737_v58 = vpop.f32.mrb[24].mxu1  ;;  %v10299_v30 = vadd.f32 %v6989_v17, %v10779_v51  ;;  %v10785_v51 = vld [vmem:[#allocation45_spill] sm:$0xff] }
 0x419   :  { %5712 = vst [vmem:[#allocation8 + $0xa8] sm:$0xff] %v5648_v34  ;;  %v5359_v54 = vadd.f32 %v6737_v58, %v10141_v39  ;;  %v5353_v22 = vpop.f32.mrb[25].mxu1  ;;  %v10783_v34 = vld [vmem:[#allocation21_spill] sm:$0xff] }
 0x41a   :  { %5711 = vst [vmem:[#allocation8 + $0xa0] sm:$0xff] %v5647_v5  ;;  %v5354_v36 = vadd.f32 %v5353_v22, %v10132_v42  ;;  %v6992_v42 = vadd.f32 %v9859_v19, %v10781_v8  ;;  %v6994_v0 = vadd.f32 %v9859_v19, %v10783_v34 }
 0x41b   :  { %v5650_v25 = vmax.f32 %v5359_v54, 0.0  ;;  %v4583_v50 = vpop.f32.mrb[168].mxu0 }
 0x41c   :  { %v5649_v3 = vmax.f32 %v5354_v36, 0.0  ;;  %v6740_v48 = vpop.f32.mrb[26].mxu1  ;;  %v6991_v18 = vadd.f32 %v6990_v52, %v4583_v50  ;;  %v4585_v45 = vpop.f32.mrb[169].mxu0  ;;  %v10786_v52 = vld [vmem:[#allocation56_spill] sm:$0xff] }
 0x41d   :  { %5714 = vst [vmem:[#allocation8 + $0xb8] sm:$0xff] %v5650_v25  ;;  %v5369_v33 = vadd.f32 %v6740_v48, %v10161_v23  ;;  %v5363_v53 = vpop.f32.mrb[27].mxu1  ;;  %v4586_v63 = vpop.f32.mrb[170].mxu0  ;;  %v10787_v50 = vld [vmem:[#allocation48_spill] sm:$0xff] }
 0x41e   :  { %5713 = vst [vmem:[#allocation8 + $0xb0] sm:$0xff] %v5649_v3  ;;  %v5364_v39 = vadd.f32 %v5363_v53, %v10152_v40  ;;  %v10308_v6 = vadd.f32 %v6991_v18, %v10782_v55  ;;  %v6993_v41 = vadd.f32 %v6992_v42, %v4586_v63  ;;  %v4588_v23 = vpop.f32.mrb[171].mxu0  ;;  %v5016_v18 = vmul.f32 %v10787_v50, %v10224_v59 }
 0x41f   :  { %v5652_v57 = vmax.f32 %v5369_v33, 0.0 }
 0x420   :  { %v5651_v32 = vmax.f32 %v5364_v39, 0.0  ;;  %v6743_v44 = vpop.f32.mrb[28].mxu1  ;;  %v10313_v49 = vadd.f32 %v6993_v41, %v10127_v28  ;;  %v5017_v39 = vmul.f32 %v10787_v50, %v10229_v61  ;;  %v10789_v61 = vld [vmem:[#allocation23_spill] sm:$0xff] }
 0x421   :  { %5716 = vst [vmem:[#allocation8 + $0xc8] sm:$0xff] %v5652_v57  ;;  %v5379_v4 = vadd.f32 %v6743_v44, %v10181_v7  ;;  %v5373_v35 = vpop.f32.mrb[29].mxu1  ;;  %v10788_v57 = vld [vmem:[#allocation31_spill] sm:$0xff]  ;;  %v10338_v44 = vld [vmem:[%s10462_s5 + $0x1] ss:$0 sm:$0xff]  ;;  %s7687_s5 = smov [#allocation8]  }
 0x422   :  { %5715 = vst [vmem:[#allocation8 + $0xc0] sm:$0xff] %v5651_v32  ;;  %v5374_v40 = vadd.f32 %v5373_v35, %v10172_v14  ;;  %v6996_v14 = vadd.f32 %v9859_v19, %v10784_v16  ;;  %v6998_v45 = vadd.f32 %v9859_v19, %v10788_v57  ;;  %v7000_v55 = vadd.f32 %v10338_v44, %v10789_v61  ;;  %s5760_s11 = sshll.u32 %s7687_s5, 4  ;;  %s5761_s11 = int_to_ptr.vmem [resolvable:$true] %s5760_s11 }
 0x423   :  { %v5654_v1 = vmax.f32 %v5379_v4, 0.0  ;;  %v4591_v58 = vpop.f32.mrb[172].mxu0  ;;  %v5019_v19 = vmul.f32 %v10787_v50, %v10243_v26  ;;  %v5021_v16 = vmul.f32 %v10787_v50, %v10257_v9  ;;  %s7649_s12 = scalar_lea.vmem %s5761_s11, 8192  ;;  %p7654_p11 = scmp.lt.s32.totalorder %s5761_s11, %s5761_s11 }
 0x424   :  { %v5653_v15 = vmax.f32 %v5374_v40, 0.0  ;;  %v6746_v43 = vpop.f32.mrb[30].mxu1  ;;  %v6995_v17 = vadd.f32 %v6994_v0, %v4591_v58  ;;  %v4593_v27 = vpop.f32.mrb[173].mxu0  ;;  %p7650_p10 = scmp.ne.s32.totalorder %s5761_s11, %s7649_s12  ;;  %p7655_p12 = scmp.lt.s32.totalorder %s7649_s12, %s7649_s12 }
 0x425   :  { %5718 = vst [vmem:[#allocation8 + $0xd8] sm:$0xff] %v5654_v1  ;;  %v5389_v5 = vadd.f32 %v6746_v43, %v10201_v37  ;;  %v5383_v56 = vpop.f32.mrb[31].mxu1  ;;  %v4594_v22 = vpop.f32.mrb[174].mxu0  ;;  %v5018_v1 = vmul.f32 %v10787_v50, %v10238_v60  ;;  %v5020_v60 = vmul.f32 %v10787_v50, %v10252_v46 }
 0x426   :  { %5717 = vst [vmem:[#allocation8 + $0xd0] sm:$0xff] %v5653_v15  ;;  %v5384_v7 = vadd.f32 %v5383_v56, %v10192_v47  ;;  %v10322_v25 = vadd.f32 %v6995_v17, %v10785_v51  ;;  %v6997_v3 = vadd.f32 %v6996_v14, %v4594_v22  ;;  %v4596_v37 = vpop.f32.mrb[175].mxu0  ;;  %v10790_v15 = vld [vmem:[#allocation58_spill] sm:$0xff]  ;;  %p7656_p13 = por %p7655_p12, %p7654_p11 }
 0x427   :  { %v5656_v28 = vmax.f32 %v5389_v5, 0.0 }
 0x428   :  { %v5655_v54 = vmax.f32 %v5384_v7, 0.0  ;;  %v6749_v36 = vpop.f32.mrb[32].mxu1  ;;  %v10327_v33 = vadd.f32 %v6997_v3, %v10786_v52  ;;  %p7657_p0 = pnand %p7656_p13, %p7650_p10 }
 0x429   :  { %5720 = vst [vmem:[#allocation8 + $0xe8] sm:$0xff] %v5656_v28  ;;  %v5399_v48 = vadd.f32 %v6749_v36, %v10218_v29  ;;  %v5393_v12 = vpop.f32.mrb[33].mxu1  ;;  %v10791_v28 = vld [vmem:[#allocation33_spill] sm:$0xff] }
 0x42a   :  { %5719 = vst [vmem:[#allocation8 + $0xe0] sm:$0xff] %v5655_v54  ;;  %v5394_v47 = vadd.f32 %v5393_v12, %v10212_v20  ;;  %v7002_v27 = vadd.f32 %v10338_v44, %v10791_v28  ;;  %v5023_v12 = vmul.f32 %v10787_v50, %v10271_v31 }
 0x42b   :  { %v5658_v53 = vmax.f32 %v5399_v48, 0.0  ;;  %v4599_v20 = vpop.f32.mrb[176].mxu0 }
 0x42c   :  { %v5657_v8 = vmax.f32 %v5394_v47, 0.0  ;;  %v6768_v42 = vpop.f32.mrb[34].mxu1  ;;  %v6999_v41 = vadd.f32 %v6998_v45, %v4599_v20  ;;  %v4601_v59 = vpop.f32.mrb[177].mxu0 }
 0x42d   :  { %5722 = vst [vmem:[#allocation8 + $0xf8] sm:$0xff] %v5658_v53  ;;  %v5474_v29 = vadd.f32 %v6768_v42, %v5017_v39  ;;  %v5468_v32 = vpop.f32.mrb[35].mxu1  ;;  %v4602_v35 = vpop.f32.mrb[178].mxu0  ;;  %v5022_v53 = vmul.f32 %v10787_v50, %v10266_v24  ;;  %v10793_v39 = vld [vmem:[#allocation57_spill] sm:$0xff]  ;;  %v5024_v24 = vmul.f32 %v10787_v50, %v10280_v21 }
 0x42e   :  { %5721 = vst [vmem:[#allocation8 + $0xf0] sm:$0xff] %v5657_v8  ;;  %v5469_v63 = vadd.f32 %v5468_v32, %v5016_v18  ;;  %v10347_v43 = vadd.f32 %v6999_v41, %v10790_v15  ;;  %v7001_v34 = vadd.f32 %v7000_v55, %v4602_v35  ;;  %v4604_v0 = vpop.f32.mrb[179].mxu0  ;;  %v10794_v32 = vld [vmem:[#allocation59_spill] sm:$0xff]  ;;  %v10795_v41 = vld [vmem:[#allocation12_spill] sm:$0xff] }
 0x42f   :  { %v5660_v23 = vmax.f32 %v5474_v29, 0.0  ;;  %v5027_v0 = vmul.f32 %v10787_v50, %v10299_v30  ;;  %v5029_v30 = vmul.f32 %v10787_v50, %v10313_v49 }
 0x430   :  { %v5659_v4 = vmax.f32 %v5469_v63, 0.0  ;;  %v6771_v40 = vpop.f32.mrb[36].mxu1  ;;  %v10350_v7 = vadd.f32 %v7001_v34, %v10147_v13  ;;  %v10792_v13 = vld [vmem:[#allocation36_spill] sm:$0xff]  ;;  %v5025_v63 = vmul.f32 %v10787_v50, %v10285_v11 }
 0x431   :  { %5724 = vst [vmem:[#allocation8 + $0x108] sm:$0xff] %v5660_v23  ;;  %v5484_v5 = vadd.f32 %v6771_v40, %v5019_v19  ;;  %v5478_v56 = vpop.f32.mrb[37].mxu1  ;;  %v7004_v3 = vadd.f32 %v10338_v44, %v10792_v13  ;;  %v7006_v23 = vadd.f32 %v10338_v44, %v10795_v41  ;;  %v10796_v40 = vld [vmem:[#allocation38_spill] sm:$0xff]  ;;  %v10798_v13 = vld [vmem:[#allocation15_spill] sm:$0xff] }
 0x432   :  { %5723 = vst [vmem:[#allocation8 + $0x100] sm:$0xff] %v5659_v4  ;;  %v5479_v58 = vadd.f32 %v5478_v56, %v5018_v1  ;;  %v7008_v1 = vadd.f32 %v10338_v44, %v10796_v40 }
 0x433   :  { %v5662_v26 = vmax.f32 %v5484_v5, 0.0  ;;  %v4607_v36 = vpop.f32.mrb[180].mxu0 }
 0x434   :  { %v5661_v14 = vmax.f32 %v5479_v58, 0.0  ;;  %v6774_v17 = vpop.f32.mrb[38].mxu1  ;;  %v7003_v37 = vadd.f32 %v7002_v27, %v4607_v36  ;;  %v4609_v9 = vpop.f32.mrb[181].mxu0  ;;  %v5026_v58 = vmul.f32 %v10787_v50, %v10294_v2  ;;  %v5028_v2 = vmul.f32 %v10787_v50, %v10308_v6 }
 0x435   :  { %5726 = vst [vmem:[#allocation8 + $0x118] sm:$0xff] %v5662_v26  ;;  %v5494_v54 = vadd.f32 %v6774_v17, %v5021_v16  ;;  %v5488_v22 = vpop.f32.mrb[39].mxu1  ;;  %v4610_v46 = vpop.f32.mrb[182].mxu0  ;;  %v10797_v26 = vld [vmem:[#allocation35_spill] sm:$0xff] }
 0x436   :  { %5725 = vst [vmem:[#allocation8 + $0x110] sm:$0xff] %v5661_v14  ;;  %v5489_v51 = vadd.f32 %v5488_v22, %v5020_v60  ;;  %v10365_v8 = vadd.f32 %v7003_v37, %v10793_v39  ;;  %v7005_v42 = vadd.f32 %v7004_v3, %v4610_v46  ;;  %v4612_v18 = vpop.f32.mrb[183].mxu0  ;;  %v7010_v3 = vadd.f32 %v10338_v44, %v10798_v13 }
 0x437   :  { %v5664_v48 = vmax.f32 %v5494_v54, 0.0  ;;  %v5030_v18 = vmul.f32 %v10787_v50, %v10322_v25  ;;  %v5032_v25 = vmul.f32 %v10787_v50, %v10347_v43 }
 0x438   :  { %v5663_v47 = vmax.f32 %v5489_v51, 0.0  ;;  %v6777_v52 = vpop.f32.mrb[40].mxu1  ;;  %v10368_v20 = vadd.f32 %v7005_v42, %v10794_v32 }
 0x439   :  { %5728 = vst [vmem:[#allocation8 + $0x128] sm:$0xff] %v5664_v48  ;;  %v5504_v57 = vadd.f32 %v6777_v52, %v5023_v12  ;;  %v5498_v45 = vpop.f32.mrb[41].mxu1 }
 0x43a   :  { %5727 = vst [vmem:[#allocation8 + $0x120] sm:$0xff] %v5663_v47  ;;  %v5499_v29 = vadd.f32 %v5498_v45, %v5022_v53  ;;  %v10799_v47 = vld [vmem:[#allocation22_spill] sm:$0xff]  ;;  %v5031_v53 = vmul.f32 %v10787_v50, %v10327_v33  ;;  %v5033_v33 = vmul.f32 %v10787_v50, %v10350_v7 }
 0x43b   :  { %v5666_v31 = vmax.f32 %v5504_v57, 0.0  ;;  %v4615_v4 = vpop.f32.mrb[184].mxu0  ;;  %v10800_v57 = vld [vmem:[#allocation37_spill] sm:$0xff] }
 0x43c   :  { %v5665_v61 = vmax.f32 %v5499_v29, 0.0  ;;  %v6780_v55 = vpop.f32.mrb[42].mxu1  ;;  %v7007_v15 = vadd.f32 %v7006_v23, %v4615_v4  ;;  %v4617_v11 = vpop.f32.mrb[185].mxu0 }
 0x43d   :  { %5730 = vst [vmem:[#allocation8 + $0x138] sm:$0xff] %v5666_v31  ;;  %v5514_v59 = vadd.f32 %v6780_v55, %v5025_v63  ;;  %v5508_v19 = vpop.f32.mrb[43].mxu1  ;;  %v4618_v21 = vpop.f32.mrb[186].mxu0  ;;  %v10801_v55 = vld [vmem:[#allocation34_spill] sm:$0xff] }
 0x43e   :  { %5729 = vst [vmem:[#allocation8 + $0x130] sm:$0xff] %v5665_v61  ;;  %v5509_v35 = vadd.f32 %v5508_v19, %v5024_v24  ;;  %v10383_v16 = vadd.f32 %v7007_v15, %v10797_v26  ;;  %v7009_v14 = vadd.f32 %v7008_v1, %v4618_v21  ;;  %v4620_v17 = vpop.f32.mrb[187].mxu0  ;;  %v10802_v19 = vld [vmem:[#allocation26_spill] sm:$0xff]  ;;  %v5035_v21 = vmul.f32 %v10787_v50, %v10368_v20 }
 0x43f   :  { %v5668_v34 = vmax.f32 %v5514_v59, 0.0  ;;  %v7014_v4 = vadd.f32 %v10338_v44, %v10802_v19  ;;  %v5034_v26 = vmul.f32 %v10787_v50, %v10365_v8  ;;  %v10805_v8 = vld [vmem:[#allocation30_spill] sm:$0xff] }
 0x440   :  { %v5667_v5 = vmax.f32 %v5509_v35, 0.0  ;;  %v6783_v56 = vpop.f32.mrb[44].mxu1  ;;  %v4908_v54 = vadd.f32 %v7009_v14, %v10167_v10  ;;  %v7012_v10 = vadd.f32 %v10338_v44, %v10799_v47  ;;  %v10804_v14 = vld [vmem:[#allocation41_spill] sm:$0xff] }
 0x441   :  { %5732 = vst [vmem:[#allocation8 + $0x148] sm:$0xff] %v5668_v34  ;;  %v5524_v60 = vadd.f32 %v6783_v56, %v5027_v0  ;;  %v5518_v28 = vpop.f32.mrb[45].mxu1  ;;  %v10803_v34 = vld [vmem:[#allocation28_spill] sm:$0xff] }
 0x442   :  { %5731 = vst [vmem:[#allocation8 + $0x140] sm:$0xff] %v5667_v5  ;;  %v5519_v27 = vadd.f32 %v5518_v28, %v5026_v58  ;;  %v7016_v11 = vadd.f32 %v10338_v44, %v10803_v34  ;;  %v5037_v20 = vmul.f32 %v10787_v50, %v4908_v54 }
 0x443   :  { %v5670_v22 = vmax.f32 %v5524_v60, 0.0  ;;  %v4623_v9 = vpop.f32.mrb[188].mxu0 }
 0x444   :  { %v5669_v36 = vmax.f32 %v5519_v27, 0.0  ;;  %v6786_v51 = vpop.f32.mrb[46].mxu1  ;;  %v7011_v46 = vadd.f32 %v7010_v3, %v4623_v9  ;;  %v4625_v49 = vpop.f32.mrb[189].mxu0  ;;  %v5036_v3 = vmul.f32 %v10787_v50, %v10383_v16 }
 0x445   :  { %5734 = vst [vmem:[#allocation8 + $0x158] sm:$0xff] %v5670_v22  ;;  %v5534_v37 = vadd.f32 %v6786_v51, %v5029_v30  ;;  %v5528_v48 = vpop.f32.mrb[47].mxu1  ;;  %v4626_v6 = vpop.f32.mrb[190].mxu0 }
 0x446   :  { %5733 = vst [vmem:[#allocation8 + $0x150] sm:$0xff] %v5669_v36  ;;  %v5529_v12 = vadd.f32 %v5528_v48, %v5028_v2  ;;  %v4913_v45 = vadd.f32 %v7011_v46, %v10800_v57  ;;  %v7013_v29 = vadd.f32 %v7012_v10, %v4626_v6  ;;  %v4628_v32 = vpop.f32.mrb[191].mxu0  ;;  %v10806_v10 = vld [vmem:[#allocation32_spill] sm:$0xff] }
 0x447   :  { %v5672_v52 = vmax.f32 %v5534_v37, 0.0  ;;  %v7018_v37 = vadd.f32 %v10338_v44, %v10805_v8 }
 0x448   :  { %v5671_v39 = vmax.f32 %v5529_v12, 0.0  ;;  %v6789_v42 = vpop.f32.mrb[48].mxu1  ;;  %v4916_v24 = vadd.f32 %v7013_v29, %v10801_v55  ;;  %v5038_v6 = vmul.f32 %v10787_v50, %v4913_v45 }
 0x449   :  { %5736 = vst [vmem:[#allocation8 + $0x168] sm:$0xff] %v5672_v52  ;;  %v5544_v31 = vadd.f32 %v6789_v42, %v5031_v53  ;;  %v5538_v63 = vpop.f32.mrb[49].mxu1  ;;  %v10807_v42 = vld [vmem:[#allocation39_spill] sm:$0xff] }
 0x44a   :  { %5735 = vst [vmem:[#allocation8 + $0x160] sm:$0xff] %v5671_v39  ;;  %v5539_v61 = vadd.f32 %v5538_v63, %v5030_v18  ;;  %v5039_v49 = vmul.f32 %v10787_v50, %v4916_v24 }
 0x44b   :  { %v5674_v41 = vmax.f32 %v5544_v31, 0.0  ;;  %v4631_v1 = vpop.f32.mrb[192].mxu0 }
 0x44c   :  { %v5673_v23 = vmax.f32 %v5539_v61, 0.0  ;;  %v6792_v59 = vpop.f32.mrb[50].mxu1  ;;  %v7015_v0 = vadd.f32 %v7014_v4, %v4631_v1  ;;  %v4633_v7 = vpop.f32.mrb[193].mxu0  ;;  %v10808_v61 = vld [vmem:[#allocation40_spill] sm:$0xff] }
 0x44d   :  { %5738 = vst [vmem:[#allocation8 + $0x178] sm:$0xff] %v5674_v41  ;;  %v5554_v35 = vadd.f32 %v6792_v59, %v5033_v33  ;;  %v5548_v40 = vpop.f32.mrb[51].mxu1  ;;  %v4634_v43 = vpop.f32.mrb[194].mxu0  ;;  %v10810_v1 = vld [vmem:[#allocation52_spill] sm:$0xff] }
 0x44e   :  { %5737 = vst [vmem:[#allocation8 + $0x170] sm:$0xff] %v5673_v23  ;;  %v5549_v15 = vadd.f32 %v5548_v40, %v5032_v25  ;;  %v4921_v17 = vadd.f32 %v7015_v0, %v10804_v14  ;;  %v7017_v60 = vadd.f32 %v7016_v11, %v4634_v43  ;;  %v4636_v28 = vpop.f32.mrb[195].mxu0  ;;  %v10809_v25 = vld [vmem:[#allocation49_spill] sm:$0xff] }
 0x44f   :  { %v5676_v5 = vmax.f32 %v5554_v35, 0.0  ;;  %v7022_v45 = vadd.f32 %v10338_v44, %v10809_v25 }
 0x450   :  { %v5675_v56 = vmax.f32 %v5549_v15, 0.0  ;;  %v6795_v58 = vpop.f32.mrb[52].mxu1  ;;  %v4924_v36 = vadd.f32 %v7017_v60, %v10187_v38  ;;  %v7020_v38 = vadd.f32 %v10338_v44, %v10806_v10  ;;  %v5040_v59 = vmul.f32 %v10787_v50, %v4921_v17 }
 0x451   :  { %5740 = vst [vmem:[#allocation8 + $0x188] sm:$0xff] %v5676_v5  ;;  %v5564_v27 = vadd.f32 %v6795_v58, %v5035_v21  ;;  %v5558_v22 = vpop.f32.mrb[53].mxu1  ;;  %v7024_v15 = vadd.f32 %v10338_v44, %v10810_v1  ;;  %v10811_v58 = vld [vmem:[#allocation43_spill] sm:$0xff] }
 0x452   :  { %5739 = vst [vmem:[#allocation8 + $0x180] sm:$0xff] %v5675_v56  ;;  %v5559_v30 = vadd.f32 %v5558_v22, %v5034_v26  ;;  %v5041_v33 = vmul.f32 %v10787_v50, %v4924_v36 }
 0x453   :  { %v5678_v51 = vmax.f32 %v5564_v27, 0.0  ;;  %v4639_v12 = vpop.f32.mrb[196].mxu0 }
 0x454   :  { %v5677_v2 = vmax.f32 %v5559_v30, 0.0  ;;  %v6798_v13 = vpop.f32.mrb[54].mxu1  ;;  %v7019_v46 = vadd.f32 %v7018_v37, %v4639_v12  ;;  %v4641_v54 = vpop.f32.mrb[197].mxu0 }
 0x455   :  { %5742 = vst [vmem:[#allocation8 + $0x198] sm:$0xff] %v5678_v51  ;;  %v5574_v48 = vadd.f32 %v6798_v13, %v5037_v20  ;;  %v5568_v9 = vpop.f32.mrb[55].mxu1  ;;  %v4642_v39 = vpop.f32.mrb[198].mxu0  ;;  %v10814_v54 = vld [vmem:[#allocation42_spill] sm:$0xff] }
 0x456   :  { %5741 = vst [vmem:[#allocation8 + $0x190] sm:$0xff] %v5677_v2  ;;  %v5569_v47 = vadd.f32 %v5568_v9, %v5036_v3  ;;  %v4929_v18 = vadd.f32 %v7019_v46, %v10807_v42  ;;  %v7021_v57 = vadd.f32 %v7020_v38, %v4642_v39  ;;  %v4644_v29 = vpop.f32.mrb[199].mxu0  ;;  %v10812_v2 = vld [vmem:[#allocation51_spill] sm:$0xff]  ;;  %v10813_v9 = vld [vmem:[#allocation62_spill] sm:$0xff]  ;;  %v10815_v42 = vld [vmem:[#allocation44_spill] sm:$0xff] }
 0x457   :  { %v5680_v52 = vmax.f32 %v5574_v48, 0.0  ;;  %v7026_v13 = vadd.f32 %v10338_v44, %v10812_v2  ;;  %v7028_v12 = vadd.f32 %v10338_v44, %v10813_v9 }
 0x458   :  { %v5679_v53 = vmax.f32 %v5569_v47, 0.0  ;;  %v6801_v16 = vpop.f32.mrb[56].mxu1  ;;  %v4932_v55 = vadd.f32 %v7021_v57, %v10808_v61  ;;  %v5042_v43 = vmul.f32 %v10787_v50, %v4929_v18 }
 0x459   :  { %5744 = vst [vmem:[#allocation8 + $0x1a8] sm:$0xff] %v5680_v52  ;;  %v5584_v32 = vadd.f32 %v6801_v16, %v5039_v49  ;;  %v5578_v31 = vpop.f32.mrb[57].mxu1 }
 0x45a   :  { %5743 = vst [vmem:[#allocation8 + $0x1a0] sm:$0xff] %v5679_v53  ;;  %v5579_v63 = vadd.f32 %v5578_v31, %v5038_v6  ;;  %v5043_v5 = vmul.f32 %v10787_v50, %v4932_v55 }
 0x45b   :  { %v5682_v41 = vmax.f32 %v5584_v32, 0.0  ;;  %v4647_v35 = vpop.f32.mrb[200].mxu0 }
 0x45c   :  { %v5681_v24 = vmax.f32 %v5579_v63, 0.0  ;;  %v6804_v23 = vpop.f32.mrb[58].mxu1  ;;  %v7023_v34 = vadd.f32 %v7022_v45, %v4647_v35  ;;  %v4649_v0 = vpop.f32.mrb[201].mxu0 }
 0x45d   :  { %5746 = vst [vmem:[#allocation8 + $0x1b8] sm:$0xff] %v5682_v41  ;;  %v5594_v19 = vadd.f32 %v6804_v23, %v5041_v33  ;;  %v5588_v4 = vpop.f32.mrb[59].mxu1  ;;  %v4650_v21 = vpop.f32.mrb[202].mxu0 }
 0x45e   :  { %5745 = vst [vmem:[#allocation8 + $0x1b0] sm:$0xff] %v5681_v24  ;;  %v5589_v40 = vadd.f32 %v5588_v4, %v5040_v59  ;;  %v4937_v26 = vadd.f32 %v7023_v34, %v10811_v58  ;;  %v7025_v14 = vadd.f32 %v7024_v15, %v4650_v21  ;;  %v4652_v17 = vpop.f32.mrb[203].mxu0 }
 0x45f   :  { %v5684_v11 = vmax.f32 %v5594_v19, 0.0 }
 0x460   :  { %v5683_v7 = vmax.f32 %v5589_v40, 0.0  ;;  %v6807_v56 = vpop.f32.mrb[60].mxu1  ;;  %v4940_v22 = vadd.f32 %v7025_v14, %v10207_v62  ;;  %v5044_v20 = vmul.f32 %v10787_v50, %v4937_v26 }
 0x461   :  { %5748 = vst [vmem:[#allocation8 + $0x1c8] sm:$0xff] %v5684_v11  ;;  %v5604_v60 = vadd.f32 %v6807_v56, %v5043_v5  ;;  %v5598_v28 = vpop.f32.mrb[61].mxu1 }
 0x462   :  { %5747 = vst [vmem:[#allocation8 + $0x1c0] sm:$0xff] %v5683_v7  ;;  %v5599_v27 = vadd.f32 %v5598_v28, %v5042_v43  ;;  %v5045_v3 = vmul.f32 %v10787_v50, %v4940_v22 }
 0x463   :  { %v5686_v30 = vmax.f32 %v5604_v60, 0.0  ;;  %v4655_v37 = vpop.f32.mrb[204].mxu0 }
 0x464   :  { %v5685_v36 = vmax.f32 %v5599_v27, 0.0  ;;  %v6810_v51 = vpop.f32.mrb[62].mxu1  ;;  %v7027_v47 = vadd.f32 %v7026_v13, %v4655_v37  ;;  %v4657_v10 = vpop.f32.mrb[205].mxu0 }
 0x465   :  { %5750 = vst [vmem:[#allocation8 + $0x1d8] sm:$0xff] %v5686_v30  ;;  %v5608_v8 = vpop.f32.mrb[63].mxu1  ;;  %v5614_v62 = vadd.f32 %v6810_v51, %v5045_v3  ;;  %v4658_v46 = vpop.f32.mrb[206].mxu0 }
 0x466   :  { %5749 = vst [vmem:[#allocation8 + $0x1d0] sm:$0xff] %v5685_v36  ;;  %v5609_v48 = vadd.f32 %v5608_v8, %v5044_v20  ;;  %v4945_v49 = vadd.f32 %v7027_v47, %v10814_v54  ;;  %v7029_v39 = vadd.f32 %v7028_v12, %v4658_v46  ;;  %v4660_v16 = vpop.f32.mrb[207].mxu0 }
 0x467   :  { %v5688_v53 = vmax.f32 %v5614_v62, 0.0 }
 0x468   :  { %v5687_v38 = vmax.f32 %v5609_v48, 0.0  ;;  %v6813_v52 = vpop.f32.mrb[64].mxu1  ;;  %v4948_v18 = vadd.f32 %v7029_v39, %v10815_v42  ;;  %v5046_v57 = vmul.f32 %v10787_v50, %v4945_v49 }
 0x469   :  { %v5618_v6 = vpop.f32.mrb[65].mxu1  ;;  %5752 = vst [vmem:[#allocation8 + $0x1e8] sm:$0xff] %v5688_v53 }
 0x46a   :  { %5751 = vst [vmem:[#allocation8 + $0x1e0] sm:$0xff] %v5687_v38  ;;  %v5047_v44 = vmul.f32 %v10787_v50, %v4948_v18  ;;  %v5619_v29 = vadd.f32 %v5618_v6, %v5046_v57 }
 0x46c   :  { %v5624_v32 = vadd.f32 %v6813_v52, %v5047_v44  ;;  %v5689_v31 = vmax.f32 %v5619_v29, 0.0 }
 0x46e   :  { %v5690_v63 = vmax.f32 %v5624_v32, 0.0  ;;  %5753 = vst [vmem:[#allocation8 + $0x1f0] sm:$0xff] %v5689_v31 }
 0x470   :  { %5754 = vst [vmem:[#allocation8 + $0x1f8] sm:$0xff] %v5690_v63 }
 0x471   :  { %7660 = shalt.err (!%p7657_p0)
}
 0x472   :  { %s7661_s27 = scalar_lea.hbm %s10464_s7, 8192 }
 0x473   :  { %p7662_p1 = scmp.ne.s32.totalorder %s10464_s7, %s7661_s27  ;;  %p7665_p2 = scmp.lt.u32.totalorder %s7661_s27, %s10464_s7 }
 0x475   :  { %p7667_p3 = pnand %p7665_p2, %p7662_p1 }
 0x477   :  { %7670 = shalt.err (!%p7667_p3)
}
 0x478   :  { %s7688_s17 = smov 128   ;;  %s7689_s18 = smov 8  }
 0x479   :  { %5766 = dma.vmem_to_hbm [thread:$0]  %s5761_s11, 8192, %s10464_s7, [#allocation4], %s7688_s17, %s7688_s17, %s7689_s18  }
 0x47a   :  { %7675 = dma.done.wait [#allocation4], 8192  }
 0x47b   :  { %7676 = vsyncadd [#allocation4], 4294959104 }
 0x47c   :  { %5770 = vsyncpa [#allocation3], 1 }
 0x47d   :  { %5771 = vsyncpa [#allocation6], 1 }
 0x47e   :  { %5772 = vsyncpa [#allocation4], 1 }

</bundles_post_ra>
